<compile_context>
chip_gen: v7x
topology: tpu7x:2x2x1
jax: 0.10.0
libtpu: 0.0.40
codegen_flags: <defaults>
</compile_context>

<pallas_src>
import math
import numpy as np

import jax
import jax.numpy as jnp
from jax import lax
from jax.experimental import pallas as pl
from jax.experimental.pallas import tpu as pltpu

LN_EPS = 1e-5
F32_MIN = float(np.finfo(np.float32).min)


# ----------------------------------------------------------------------------
# Pallas kernel
# ----------------------------------------------------------------------------
def _make_kernel(n_head: int, d_k: int, bb: int, t1: int, t2: int,
                 has_mask: bool, has_pos: bool, lane_pack: bool):
    H = n_head
    F = H * d_k
    inv_sqrt_dk = 1.0 / math.sqrt(d_k)
    R = (128 // F) if lane_pack else 1         # rows packed per lane-dense output row
    M_out = bb * t1
    M4 = M_out // R

    def kernel(*refs):
        it = iter(refs)
        q_ref = next(it)
        k_ref = next(it)
        v_ref = next(it)
        mask_ref = next(it) if has_mask else None
        pos_ref = next(it) if has_pos else None
        (lnq_s, lnq_b, lnkv_s, lnkv_b,
         wq, bq, wk, bk, wv, bv, wo, bo, lscale, out_ref) = it

        q = q_ref[0]                            # (BB*T1, F)
        k = k_ref[0]                            # (BB*T2, F)
        v = v_ref[0]                            # (BB*T2, F)

        def layer_norm(x, s, b):
            mu = jnp.mean(x, axis=-1, keepdims=True)
            xc = x - mu
            var = jnp.mean(xc * xc, axis=-1, keepdims=True)
            return xc * lax.rsqrt(var + LN_EPS) * s + b

        qn = layer_norm(q, lnq_s[0], lnq_b[0])
        kn = layer_norm(k, lnkv_s[0], lnkv_b[0])
        vn = layer_norm(v, lnkv_s[0], lnkv_b[0])

        # Batch-folded projections (M = BB*T).  Q is pre-scaled by 1/sqrt(d_k), which
        # scales both the QK^T and the relative-position score terms.
        qp = (jnp.dot(qn, wq[...], preferred_element_type=jnp.float32) + bq[0]) * inv_sqrt_dk
        kp = jnp.dot(kn, wk[...], preferred_element_type=jnp.float32) + bk[0]
        vp = jnp.dot(vn, wv[...], preferred_element_type=jnp.float32) + bv[0]

        # (BB*T, F) -> (H*BB, T, d_k): H static lane slices + leading-dim reshapes + one
        # stack; O(H) relayout ops instead of O(BB*H) tiny slices.  Head-major batch index
        # bh = h*BB + b.
        def split_heads(x, t):
            per_head = [x[:, h * d_k:(h + 1) * d_k].reshape(bb, t, d_k) for h in range(H)]
            return jnp.stack(per_head, axis=0).reshape(H * bb, t, d_k)

        qbh = split_heads(qp, t1)               # (H*BB, T1, d_k), pre-scaled
        kbh = split_heads(kp, t2)               # (H*BB, T2, d_k)
        vbh = split_heads(vp, t2)               # (H*BB, T2, d_k)

        # One head-batched MXU matmul (contracts d_k directly, no explicit k.T).
        scores = jnp.einsum('bqd,bkd->bqk', qbh, kbh,
                            preferred_element_type=jnp.float32)    # (H*BB, T1, T2)

        if has_pos:
            pos = pos_ref[...]                                      # (T1, T2, d_k)
            # Relative-position term for all heads/batches at once (broadcast-reduce).
            scores = scores + jnp.sum(qbh[:, :, None, :] * pos[None], axis=-1)

        if has_mask:
            # int8 mask; exact compare against 0 == torch's mask.eq(0).
            is_zero = mask_ref[0].astype(jnp.float32) == 0.0        # (BB, T1, T2)
            s4 = scores.reshape(H, bb, t1, t2)
            s4 = jnp.where(is_zero[None], F32_MIN, s4)              # where-replace: NaN-safe
            m = jnp.max(s4, axis=-1, keepdims=True)
            e = jnp.exp(s4 - m)
            denom = jnp.sum(e, axis=-1, keepdims=True)
            attn4 = e * pl.reciprocal(denom, approx=True)           # EUP; ~1e-3 rel err
            attn4 = jnp.where(is_zero[None], 0.0, attn4)            # post-softmax zeroing
            attn = attn4.reshape(H * bb, t1, t2)
        else:
            m = jnp.max(scores, axis=-1, keepdims=True)
            e = jnp.exp(scores - m)
            denom = jnp.sum(e, axis=-1, keepdims=True)
            attn = e * pl.reciprocal(denom, approx=True)

        # Context: one head-batched MXU matmul.
        ctx = jnp.einsum('bqk,bkd->bqd', attn, vbh,
                         preferred_element_type=jnp.float32)        # (H*BB, T1, d_k)

        # (H*BB, T1, d_k) -> (BB*T1, F): H leading-dim slices + one lane concat.
        x = jnp.concatenate(
            [ctx[h * bb:(h + 1) * bb].reshape(bb * t1, d_k) for h in range(H)], axis=-1)

        # Output projection + layer scale, batch-folded.
        out = (jnp.dot(x, wo[...], preferred_element_type=jnp.float32) + bo[0]) * lscale[0]

        if lane_pack:
            # Pack R = 128//F row groups into lanes -> (M4, 128) lane-dense slab so the
            # final store is an unmasked vst; the wrapper undoes the packing on HBM.
            out_ld = jnp.concatenate(
                [out[j * M4:(j + 1) * M4, :] for j in range(R)], axis=-1)
            out_ref[0] = out_ld
        else:
            out_ref[0] = out

    return kernel


# ----------------------------------------------------------------------------
# Wrapper helpers: VMEM budget + generation-aware grid selection
# ----------------------------------------------------------------------------
def _vmem_bytes_estimate(bb, t1, t2, F, H, d_k, has_mask, has_pos):
    f32 = 4
    BH = bb * H
    act_in = (bb * t1 * F + 2 * bb * t2 * F) * f32          # q,k,v blocks
    out_b = bb * t1 * F * f32
    mask_b = bb * t1 * t2 * 1 if has_mask else 0             # int8
    pos_b = t1 * t2 * d_k * f32 if has_pos else 0
    params = (4 * F + 4 * F * F + 4 * F + F) * f32
    pipelined = 2 * (act_in + out_b + mask_b + pos_b + params)   # double buffering
    tmp = 3 * act_in                                          # layer-normed copies
    tmp += 3 * act_in                                         # projections
    tmp += 3 * act_in                                         # head-stacked copies
    tmp += 3 * BH * t1 * t2 * f32                             # scores / exp / attn
    if has_pos:
        tmp += BH * t1 * t2 * d_k * f32                       # broadcast-reduce temp
    tmp += BH * t1 * d_k * f32 + 2 * bb * t1 * F * f32        # ctx, x, out
    return pipelined + tmp


def _pick_grid(B, t1, t2, F, H, d_k, has_mask, has_pos):
    kind = ""
    try:
        kind = jax.devices()[0].device_kind.lower()
    except Exception:
        pass
    is_v7 = ("v7" in kind) or ("7x" in kind)
    # v7x: 64 MiB physical VMEM per TensorCore; v5e/v6e: 128 MiB.  Leave headroom.
    budget = (48 if is_v7 else 96) << 20
    # G=2 only on v7x (two TensorCores, "parallel" shards the steps); G=1 elsewhere
    # (grid is a serial loop on a single TC, splitting just shrinks the matmul M dim).
    g_pref = 2 if (is_v7 and B % 2 == 0) else 1
    g = B                                                     # worst case: 1 batch/step
    for cand in range(g_pref, B + 1):
        if B % cand:
            continue
        if _vmem_bytes_estimate(B // cand, t1, t2, F, H, d_k, has_mask, has_pos) <= budget:
            g = cand
            break
    return g, budget


# ----------------------------------------------------------------------------
# Wrapper
# ----------------------------------------------------------------------------
def mhca_forward(q, k, v, pos_k, mask, params, n_head):
    B, T1, F = q.shape
    T2 = k.shape[1]
    d_k = F // n_head
    has_pos = pos_k is not None
    has_mask = mask is not None

    G, vmem_budget = _pick_grid(B, T1, T2, F, n_head, d_k, has_mask, has_pos)
    BB = B // G

    lane_pack = (F < 128) and (128 % F == 0) and ((BB * T1) % (128 // F) == 0)
    R = (128 // F) if lane_pack else 1
    M4 = (BB * T1) // R

    (lnq_s, lnq_b, lnkv_s, lnkv_b,
     wq, bq, wk, bk, wv, bv, wo, bo, lscale) = params

    args = [q.reshape(G, BB * T1, F),
            k.reshape(G, BB * T2, F),
            v.reshape(G, BB * T2, F)]
    in_specs = [pl.BlockSpec((1, BB * T1, F), lambda g: (g, 0, 0)),
                pl.BlockSpec((1, BB * T2, F), lambda g: (g, 0, 0)),
                pl.BlockSpec((1, BB * T2, F), lambda g: (g, 0, 0))]

    if has_mask:  # ship as int8: 4x less DMA than f32, eq(0) semantics preserved
        args.append((mask != 0).astype(jnp.int8).reshape(G, BB, T1, T2))
        in_specs.append(pl.BlockSpec((1, BB, T1, T2), lambda g: (g, 0, 0, 0)))
    if has_pos:   # trace-time specialization: no pos DMA / compute when absent
        args.append(pos_k.astype(jnp.float32))
        in_specs.append(pl.BlockSpec((T1, T2, d_k), lambda g: (0, 0, 0)))

    r2 = lambda a: a.reshape(1, -1)
    param_args = (r2(lnq_s), r2(lnq_b), r2(lnkv_s), r2(lnkv_b),
                  wq.T, r2(bq), wk.T, r2(bk), wv.T, r2(bv), wo.T, r2(bo),
                  lscale.reshape(1, F))
    args.extend(param_args)
    in_specs.extend([pl.BlockSpec(a.shape, lambda g: (0, 0)) for a in param_args])

    if lane_pack:
        out_shape = jax.ShapeDtypeStruct((G, M4, 128), jnp.float32)
        out_specs = pl.BlockSpec((1, M4, 128), lambda g: (g, 0, 0))
    else:
        out_shape = jax.ShapeDtypeStruct((G, BB * T1, F), jnp.float32)
        out_specs = pl.BlockSpec((1, BB * T1, F), lambda g: (g, 0, 0))

    out = pl.pallas_call(
        _make_kernel(n_head, d_k, BB, T1, T2, has_mask, has_pos, lane_pack),
        out_shape=out_shape,
        grid=(G,),
        in_specs=in_specs,
        out_specs=out_specs,
        compiler_params=pltpu.CompilerParams(
            dimension_semantics=("parallel",) if G > 1 else ("arbitrary",),
            vmem_limit_bytes=int(vmem_budget)),
    )(*args)

    if lane_pack:
        # Undo the lane-dense packing on HBM (cheap XLA reshape/transpose).
        out = (out.reshape(G, M4, R, F)
                  .transpose(0, 2, 1, 3)
                  .reshape(G, BB * T1, F))
    return out.reshape(B, T1, F)


# ----------------------------------------------------------------------------
# Pure-JAX reference (mirrors the PyTorch forward exactly)
# ----------------------------------------------------------------------------
def mhca_reference(q, k, v, pos_k, mask, params, n_head):
    (lnq_s, lnq_b, lnkv_s, lnkv_b,
     wq, bq, wk, bk, wv, bv, wo, bo, lscale) = params
    B, T1, F = q.shape
    d_k = F // n_head

    def ln(x, s, b):
        mu = jnp.mean(x, axis=-1, keepdims=True)
        var = jnp.mean((x - mu) ** 2, axis=-1, keepdims=True)
        return (x - mu) / jnp.sqrt(var + LN_EPS) * s + b

    qn = ln(q, lnq_s, lnq_b)
    kn = ln(k, lnkv_s, lnkv_b)
    vn = ln(v, lnkv_s, lnkv_b)

    qp = (qn @ wq.T + bq).reshape(B, -1, n_head, d_k).transpose(0, 2, 1, 3)
    kp = (kn @ wk.T + bk).reshape(B, -1, n_head, d_k).transpose(0, 2, 1, 3)
    vp = (vn @ wv.T + bv).reshape(B, -1, n_head, d_k).transpose(0, 2, 1, 3)

    A = jnp.einsum('bhqd,bhkd->bhqk', qp, kp)
    if pos_k is not None:
        Brel = jnp.einsum('bhqd,qkd->bhqk', qp, pos_k)
        scores = (A + Brel) / math.sqrt(d_k)
    else:
        scores = A / math.sqrt(d_k)

    if mask is not None:
        neg = (mask[:, None, :, :] == 0)
        scores = jnp.where(neg, F32_MIN, scores)
        attn = jax.nn.softmax(scores, axis=-1)
        attn = jnp.where(neg, 0.0, attn)
    else:
        attn = jax.nn.softmax(scores, axis=-1)

    x = jnp.einsum('bhqk,bhkd->bhqd', attn, vp)
    x = x.transpose(0, 2, 1, 3).reshape(B, T1, F)
    return (x @ wo.T + bo) * lscale.reshape(1, 1, F)


# ----------------------------------------------------------------------------
if __name__ == "__main__":
    n_head, n_feat = 4, 32
    B, T1, T2 = 2, 8, 16
    d_k = n_feat // n_head

    key = jax.random.PRNGKey(0)
    keys = jax.random.split(key, 20)

    q = jax.random.normal(keys[0], (B, T1, n_feat), jnp.float32)
    k = jax.random.normal(keys[1], (B, T2, n_feat), jnp.float32)
    v = jax.random.normal(keys[2], (B, T2, n_feat), jnp.float32)
    pos_k = jax.random.normal(keys[3], (T1, T2, d_k), jnp.float32) * 0.1
    mask = (jax.random.uniform(keys[4], (B, T1, T2)) > 0.25).astype(jnp.float32)

    params = (
        1.0 + 0.1 * jax.random.normal(keys[5], (n_feat,), jnp.float32),   # layer_norm_q weight
        0.1 * jax.random.normal(keys[6], (n_feat,), jnp.float32),         # layer_norm_q bias
        1.0 + 0.1 * jax.random.normal(keys[7], (n_feat,), jnp.float32),   # layer_norm_kv weight
        0.1 * jax.random.normal(keys[8], (n_feat,), jnp.float32),         # layer_norm_kv bias
        jax.random.normal(keys[9], (n_feat, n_feat), jnp.float32) * 0.1,  # W_q (out, in)
        jax.random.normal(keys[10], (n_feat,), jnp.float32) * 0.1,        # b_q
        jax.random.normal(keys[11], (n_feat, n_feat), jnp.float32) * 0.1, # W_k
        jax.random.normal(keys[12], (n_feat,), jnp.float32) * 0.1,        # b_k
        jax.random.normal(keys[13], (n_feat, n_feat), jnp.float32) * 0.1, # W_v
        jax.random.normal(keys[14], (n_feat,), jnp.float32) * 0.1,        # b_v
        jax.random.normal(keys[15], (n_feat, n_feat), jnp.float32) * 0.1, # W_out
        jax.random.normal(keys[16], (n_feat,), jnp.float32) * 0.1,        # b_out
        jnp.full((1, 1, n_feat), 1e-05, jnp.float32),                     # Layer_scale
    )

    # Full path: pos_k + mask.
    out = jax.block_until_ready(mhca_forward(q, k, v, pos_k, mask, params, n_head))
    ref = mhca_reference(q, k, v, pos_k, mask, params, n_head)
    np.testing.assert_allclose(np.asarray(out), np.asarray(ref), rtol=2e-3, atol=1e-7)

    # Specialized path: pos_k=None, mask=None (no pos DMA, no mask work).
    out2 = jax.block_until_ready(mhca_forward(q, k, v, None, None, params, n_head))
    ref2 = mhca_reference(q, k, v, None, None, params, n_head)
    np.testing.assert_allclose(np.asarray(out2), np.asarray(ref2), rtol=2e-3, atol=1e-7)

    print("KERNEL_OK")
</pallas_src>

<mosaic_0001>
module attributes {stable_mosaic.version = 11 : i64} {
  func.func @kernel(%arg0: i32, %arg1: memref<1x16x32xf32, #tpu.memory_space<vmem>>, %arg2: memref<1x32x32xf32, #tpu.memory_space<vmem>>, %arg3: memref<1x32x32xf32, #tpu.memory_space<vmem>>, %arg4: memref<1x2x8x16xi8, #tpu.memory_space<vmem>>, %arg5: memref<8x16x8xf32, #tpu.memory_space<vmem>>, %arg6: memref<1x32xf32, #tpu.memory_space<vmem>>, %arg7: memref<1x32xf32, #tpu.memory_space<vmem>>, %arg8: memref<1x32xf32, #tpu.memory_space<vmem>>, %arg9: memref<1x32xf32, #tpu.memory_space<vmem>>, %arg10: memref<32x32xf32, #tpu.memory_space<vmem>>, %arg11: memref<1x32xf32, #tpu.memory_space<vmem>>, %arg12: memref<32x32xf32, #tpu.memory_space<vmem>>, %arg13: memref<1x32xf32, #tpu.memory_space<vmem>>, %arg14: memref<32x32xf32, #tpu.memory_space<vmem>>, %arg15: memref<1x32xf32, #tpu.memory_space<vmem>>, %arg16: memref<32x32xf32, #tpu.memory_space<vmem>>, %arg17: memref<1x32xf32, #tpu.memory_space<vmem>>, %arg18: memref<1x32xf32, #tpu.memory_space<vmem>>, %arg19: memref<1x4x128xf32, #tpu.memory_space<vmem>>) attributes {dimension_semantics = [#tpu.dimension_semantics<arbitrary>], iteration_bounds = array<i64: 1>, scalar_prefetch = 0 : i64, scratch_operands = 0 : i64, tpu.core_type = #tpu.core_type<tc>, window_params = [{transform_indices = @transform_0, window_bounds = array<i64: 1, 16, 32>}, {transform_indices = @transform_1, window_bounds = array<i64: 1, 32, 32>}, {transform_indices = @transform_2, window_bounds = array<i64: 1, 32, 32>}, {transform_indices = @transform_3, window_bounds = array<i64: 1, 2, 8, 16>}, {pipeline_mode = #tpu.pipeline_mode<synchronous>, transform_indices = @transform_4, window_bounds = array<i64: 8, 16, 8>}, {pipeline_mode = #tpu.pipeline_mode<synchronous>, transform_indices = @transform_5, window_bounds = array<i64: 1, 32>}, {pipeline_mode = #tpu.pipeline_mode<synchronous>, transform_indices = @transform_6, window_bounds = array<i64: 1, 32>}, {pipeline_mode = #tpu.pipeline_mode<synchronous>, transform_indices = @transform_7, window_bounds = array<i64: 1, 32>}, {pipeline_mode = #tpu.pipeline_mode<synchronous>, transform_indices = @transform_8, window_bounds = array<i64: 1, 32>}, {pipeline_mode = #tpu.pipeline_mode<synchronous>, transform_indices = @transform_9, window_bounds = array<i64: 32, 32>}, {pipeline_mode = #tpu.pipeline_mode<synchronous>, transform_indices = @transform_10, window_bounds = array<i64: 1, 32>}, {pipeline_mode = #tpu.pipeline_mode<synchronous>, transform_indices = @transform_11, window_bounds = array<i64: 32, 32>}, {pipeline_mode = #tpu.pipeline_mode<synchronous>, transform_indices = @transform_12, window_bounds = array<i64: 1, 32>}, {pipeline_mode = #tpu.pipeline_mode<synchronous>, transform_indices = @transform_13, window_bounds = array<i64: 32, 32>}, {pipeline_mode = #tpu.pipeline_mode<synchronous>, transform_indices = @transform_14, window_bounds = array<i64: 1, 32>}, {pipeline_mode = #tpu.pipeline_mode<synchronous>, transform_indices = @transform_15, window_bounds = array<i64: 32, 32>}, {pipeline_mode = #tpu.pipeline_mode<synchronous>, transform_indices = @transform_16, window_bounds = array<i64: 1, 32>}, {pipeline_mode = #tpu.pipeline_mode<synchronous>, transform_indices = @transform_17, window_bounds = array<i64: 1, 32>}, {transform_indices = @transform_18, window_bounds = array<i64: 1, 4, 128>}]} {
    %c0 = arith.constant 0 : index
    %c0_0 = arith.constant 0 : index
    %c0_1 = arith.constant 0 : index
    %0 = vector.load %arg1[%c0, %c0_0, %c0_1] : memref<1x16x32xf32, #tpu.memory_space<vmem>>, vector<1x16x32xf32>
    %1 = vector.shape_cast %0 : vector<1x16x32xf32> to vector<16x32xf32>
    %c0_2 = arith.constant 0 : index
    %c0_3 = arith.constant 0 : index
    %c0_4 = arith.constant 0 : index
    %2 = vector.load %arg2[%c0_2, %c0_3, %c0_4] : memref<1x32x32xf32, #tpu.memory_space<vmem>>, vector<1x32x32xf32>
    %3 = vector.shape_cast %2 : vector<1x32x32xf32> to vector<32x32xf32>
    %c0_5 = arith.constant 0 : index
    %c0_6 = arith.constant 0 : index
    %c0_7 = arith.constant 0 : index
    %4 = vector.load %arg3[%c0_5, %c0_6, %c0_7] : memref<1x32x32xf32, #tpu.memory_space<vmem>>, vector<1x32x32xf32>
    %5 = vector.shape_cast %4 : vector<1x32x32xf32> to vector<32x32xf32>
    %c0_8 = arith.constant 0 : index
    %c0_9 = arith.constant 0 : index
    %6 = vector.load %arg6[%c0_8, %c0_9] : memref<1x32xf32, #tpu.memory_space<vmem>>, vector<1x32xf32>
    %7 = vector.shape_cast %6 : vector<1x32xf32> to vector<32xf32>
    %c0_10 = arith.constant 0 : index
    %c0_11 = arith.constant 0 : index
    %8 = vector.load %arg7[%c0_10, %c0_11] : memref<1x32xf32, #tpu.memory_space<vmem>>, vector<1x32xf32>
    %9 = vector.shape_cast %8 : vector<1x32xf32> to vector<32xf32>
    %cst = arith.constant dense<0.000000e+00> : vector<16xf32>
    %10 = vector.multi_reduction <add>, %1, %cst [1] : vector<16x32xf32> to vector<16xf32>
    %11 = vector.shape_cast %10 : vector<16xf32> to vector<16x1xf32>
    %cst_12 = arith.constant 3.200000e+01 : f32
    %12 = vector.broadcast %cst_12 : f32 to vector<16x1xf32>
    %13 = arith.divf %11, %12 : vector<16x1xf32>
    %14 = vector.broadcast %13 : vector<16x1xf32> to vector<16x32xf32>
    %15 = arith.subf %1, %14 : vector<16x32xf32>
    %16 = arith.mulf %15, %15 : vector<16x32xf32>
    %cst_13 = arith.constant dense<0.000000e+00> : vector<16xf32>
    %17 = vector.multi_reduction <add>, %16, %cst_13 [1] : vector<16x32xf32> to vector<16xf32>
    %18 = vector.shape_cast %17 : vector<16xf32> to vector<16x1xf32>
    %cst_14 = arith.constant 3.200000e+01 : f32
    %19 = vector.broadcast %cst_14 : f32 to vector<16x1xf32>
    %20 = arith.divf %18, %19 : vector<16x1xf32>
    %cst_15 = arith.constant 9.99999974E-6 : f32
    %21 = vector.broadcast %cst_15 : f32 to vector<16x1xf32>
    %22 = arith.addf %20, %21 : vector<16x1xf32>
    %23 = math.rsqrt %22 : vector<16x1xf32>
    %24 = vector.broadcast %23 : vector<16x1xf32> to vector<16x32xf32>
    %25 = arith.mulf %15, %24 : vector<16x32xf32>
    %26 = vector.shape_cast %7 : vector<32xf32> to vector<1x32xf32>
    %27 = vector.broadcast %26 : vector<1x32xf32> to vector<16x32xf32>
    %28 = arith.mulf %25, %27 : vector<16x32xf32>
    %29 = vector.shape_cast %9 : vector<32xf32> to vector<1x32xf32>
    %30 = vector.broadcast %29 : vector<1x32xf32> to vector<16x32xf32>
    %31 = arith.addf %28, %30 : vector<16x32xf32>
    %c0_16 = arith.constant 0 : index
    %c0_17 = arith.constant 0 : index
    %32 = vector.load %arg8[%c0_16, %c0_17] : memref<1x32xf32, #tpu.memory_space<vmem>>, vector<1x32xf32>
    %33 = vector.shape_cast %32 : vector<1x32xf32> to vector<32xf32>
    %c0_18 = arith.constant 0 : index
    %c0_19 = arith.constant 0 : index
    %34 = vector.load %arg9[%c0_18, %c0_19] : memref<1x32xf32, #tpu.memory_space<vmem>>, vector<1x32xf32>
    %35 = vector.shape_cast %34 : vector<1x32xf32> to vector<32xf32>
    %cst_20 = arith.constant dense<0.000000e+00> : vector<32xf32>
    %36 = vector.multi_reduction <add>, %3, %cst_20 [1] : vector<32x32xf32> to vector<32xf32>
    %37 = vector.shape_cast %36 : vector<32xf32> to vector<32x1xf32>
    %cst_21 = arith.constant 3.200000e+01 : f32
    %38 = vector.broadcast %cst_21 : f32 to vector<32x1xf32>
    %39 = arith.divf %37, %38 : vector<32x1xf32>
    %40 = vector.broadcast %39 : vector<32x1xf32> to vector<32x32xf32>
    %41 = arith.subf %3, %40 : vector<32x32xf32>
    %42 = arith.mulf %41, %41 : vector<32x32xf32>
    %cst_22 = arith.constant dense<0.000000e+00> : vector<32xf32>
    %43 = vector.multi_reduction <add>, %42, %cst_22 [1] : vector<32x32xf32> to vector<32xf32>
    %44 = vector.shape_cast %43 : vector<32xf32> to vector<32x1xf32>
    %cst_23 = arith.constant 3.200000e+01 : f32
    %45 = vector.broadcast %cst_23 : f32 to vector<32x1xf32>
    %46 = arith.divf %44, %45 : vector<32x1xf32>
    %cst_24 = arith.constant 9.99999974E-6 : f32
    %47 = vector.broadcast %cst_24 : f32 to vector<32x1xf32>
    %48 = arith.addf %46, %47 : vector<32x1xf32>
    %49 = math.rsqrt %48 : vector<32x1xf32>
    %50 = vector.broadcast %49 : vector<32x1xf32> to vector<32x32xf32>
    %51 = arith.mulf %41, %50 : vector<32x32xf32>
    %52 = vector.shape_cast %33 : vector<32xf32> to vector<1x32xf32>
    %53 = vector.broadcast %52 : vector<1x32xf32> to vector<32x32xf32>
    %54 = arith.mulf %51, %53 : vector<32x32xf32>
    %55 = vector.shape_cast %35 : vector<32xf32> to vector<1x32xf32>
    %56 = vector.broadcast %55 : vector<1x32xf32> to vector<32x32xf32>
    %57 = arith.addf %54, %56 : vector<32x32xf32>
    %c0_25 = arith.constant 0 : index
    %c0_26 = arith.constant 0 : index
    %58 = vector.load %arg8[%c0_25, %c0_26] : memref<1x32xf32, #tpu.memory_space<vmem>>, vector<1x32xf32>
    %59 = vector.shape_cast %58 : vector<1x32xf32> to vector<32xf32>
    %c0_27 = arith.constant 0 : index
    %c0_28 = arith.constant 0 : index
    %60 = vector.load %arg9[%c0_27, %c0_28] : memref<1x32xf32, #tpu.memory_space<vmem>>, vector<1x32xf32>
    %61 = vector.shape_cast %60 : vector<1x32xf32> to vector<32xf32>
    %cst_29 = arith.constant dense<0.000000e+00> : vector<32xf32>
    %62 = vector.multi_reduction <add>, %5, %cst_29 [1] : vector<32x32xf32> to vector<32xf32>
    %63 = vector.shape_cast %62 : vector<32xf32> to vector<32x1xf32>
    %cst_30 = arith.constant 3.200000e+01 : f32
    %64 = vector.broadcast %cst_30 : f32 to vector<32x1xf32>
    %65 = arith.divf %63, %64 : vector<32x1xf32>
    %66 = vector.broadcast %65 : vector<32x1xf32> to vector<32x32xf32>
    %67 = arith.subf %5, %66 : vector<32x32xf32>
    %68 = arith.mulf %67, %67 : vector<32x32xf32>
    %cst_31 = arith.constant dense<0.000000e+00> : vector<32xf32>
    %69 = vector.multi_reduction <add>, %68, %cst_31 [1] : vector<32x32xf32> to vector<32xf32>
    %70 = vector.shape_cast %69 : vector<32xf32> to vector<32x1xf32>
    %cst_32 = arith.constant 3.200000e+01 : f32
    %71 = vector.broadcast %cst_32 : f32 to vector<32x1xf32>
    %72 = arith.divf %70, %71 : vector<32x1xf32>
    %cst_33 = arith.constant 9.99999974E-6 : f32
    %73 = vector.broadcast %cst_33 : f32 to vector<32x1xf32>
    %74 = arith.addf %72, %73 : vector<32x1xf32>
    %75 = math.rsqrt %74 : vector<32x1xf32>
    %76 = vector.broadcast %75 : vector<32x1xf32> to vector<32x32xf32>
    %77 = arith.mulf %67, %76 : vector<32x32xf32>
    %78 = vector.shape_cast %59 : vector<32xf32> to vector<1x32xf32>
    %79 = vector.broadcast %78 : vector<1x32xf32> to vector<32x32xf32>
    %80 = arith.mulf %77, %79 : vector<32x32xf32>
    %81 = vector.shape_cast %61 : vector<32xf32> to vector<1x32xf32>
    %82 = vector.broadcast %81 : vector<1x32xf32> to vector<32x32xf32>
    %83 = arith.addf %80, %82 : vector<32x32xf32>
    %c0_34 = arith.constant 0 : index
    %c0_35 = arith.constant 0 : index
    %84 = vector.load %arg10[%c0_34, %c0_35] : memref<32x32xf32, #tpu.memory_space<vmem>>, vector<32x32xf32>
    %cst_36 = arith.constant dense<0.000000e+00> : vector<16x32xf32>
    %85 = tpu.matmul %31, %84, %cst_36 {dimension_numbers = #tpu.dot_dimension_numbers<[1], [0], [0], [1], [0, 0, 1, 1], [], []>} : vector<16x32xf32>, vector<32x32xf32>, vector<16x32xf32> -> vector<16x32xf32>
    %c0_37 = arith.constant 0 : index
    %c0_38 = arith.constant 0 : index
    %86 = vector.load %arg11[%c0_37, %c0_38] : memref<1x32xf32, #tpu.memory_space<vmem>>, vector<1x32xf32>
    %87 = vector.shape_cast %86 : vector<1x32xf32> to vector<32xf32>
    %88 = vector.shape_cast %87 : vector<32xf32> to vector<1x32xf32>
    %89 = vector.broadcast %88 : vector<1x32xf32> to vector<16x32xf32>
    %90 = arith.addf %85, %89 : vector<16x32xf32>
    %cst_39 = arith.constant 0.353553385 : f32
    %91 = vector.broadcast %cst_39 : f32 to vector<16x32xf32>
    %92 = arith.mulf %90, %91 : vector<16x32xf32>
    %c0_40 = arith.constant 0 : index
    %c0_41 = arith.constant 0 : index
    %93 = vector.load %arg12[%c0_40, %c0_41] : memref<32x32xf32, #tpu.memory_space<vmem>>, vector<32x32xf32>
    %cst_42 = arith.constant dense<0.000000e+00> : vector<32x32xf32>
    %94 = tpu.matmul %57, %93, %cst_42 {dimension_numbers = #tpu.dot_dimension_numbers<[1], [0], [0], [1], [0, 0, 1, 1], [], []>} : vector<32x32xf32>, vector<32x32xf32>, vector<32x32xf32> -> vector<32x32xf32>
    %c0_43 = arith.constant 0 : index
    %c0_44 = arith.constant 0 : index
    %95 = vector.load %arg13[%c0_43, %c0_44] : memref<1x32xf32, #tpu.memory_space<vmem>>, vector<1x32xf32>
    %96 = vector.shape_cast %95 : vector<1x32xf32> to vector<32xf32>
    %97 = vector.shape_cast %96 : vector<32xf32> to vector<1x32xf32>
    %98 = vector.broadcast %97 : vector<1x32xf32> to vector<32x32xf32>
    %99 = arith.addf %94, %98 : vector<32x32xf32>
    %c0_45 = arith.constant 0 : index
    %c0_46 = arith.constant 0 : index
    %100 = vector.load %arg14[%c0_45, %c0_46] : memref<32x32xf32, #tpu.memory_space<vmem>>, vector<32x32xf32>
    %cst_47 = arith.constant dense<0.000000e+00> : vector<32x32xf32>
    %101 = tpu.matmul %83, %100, %cst_47 {dimension_numbers = #tpu.dot_dimension_numbers<[1], [0], [0], [1], [0, 0, 1, 1], [], []>} : vector<32x32xf32>, vector<32x32xf32>, vector<32x32xf32> -> vector<32x32xf32>
    %c0_48 = arith.constant 0 : index
    %c0_49 = arith.constant 0 : index
    %102 = vector.load %arg15[%c0_48, %c0_49] : memref<1x32xf32, #tpu.memory_space<vmem>>, vector<1x32xf32>
    %103 = vector.shape_cast %102 : vector<1x32xf32> to vector<32xf32>
    %104 = vector.shape_cast %103 : vector<32xf32> to vector<1x32xf32>
    %105 = vector.broadcast %104 : vector<1x32xf32> to vector<32x32xf32>
    %106 = arith.addf %101, %105 : vector<32x32xf32>
    %107 = vector.extract_strided_slice %92 {offsets = [0, 0], sizes = [16, 8], strides = [1, 1]} : vector<16x32xf32> to vector<16x8xf32>
    %108 = vector.shape_cast %107 : vector<16x8xf32> to vector<2x8x8xf32>
    %109 = vector.extract_strided_slice %92 {offsets = [0, 8], sizes = [16, 8], strides = [1, 1]} : vector<16x32xf32> to vector<16x8xf32>
    %110 = vector.shape_cast %109 : vector<16x8xf32> to vector<2x8x8xf32>
    %111 = vector.extract_strided_slice %92 {offsets = [0, 16], sizes = [16, 8], strides = [1, 1]} : vector<16x32xf32> to vector<16x8xf32>
    %112 = vector.shape_cast %111 : vector<16x8xf32> to vector<2x8x8xf32>
    %113 = vector.extract_strided_slice %92 {offsets = [0, 24], sizes = [16, 8], strides = [1, 1]} : vector<16x32xf32> to vector<16x8xf32>
    %114 = vector.shape_cast %113 : vector<16x8xf32> to vector<2x8x8xf32>
    %115 = vector.shape_cast %108 : vector<2x8x8xf32> to vector<1x2x8x8xf32>
    %116 = vector.shape_cast %110 : vector<2x8x8xf32> to vector<1x2x8x8xf32>
    %117 = vector.shape_cast %112 : vector<2x8x8xf32> to vector<1x2x8x8xf32>
    %118 = vector.shape_cast %114 : vector<2x8x8xf32> to vector<1x2x8x8xf32>
    %119 = tpu.concatenate %115, %116, %117, %118 in 0 : vector<1x2x8x8xf32>, vector<1x2x8x8xf32>, vector<1x2x8x8xf32>, vector<1x2x8x8xf32> -> vector<4x2x8x8xf32>
    %120 = vector.shape_cast %119 : vector<4x2x8x8xf32> to vector<8x8x8xf32>
    %121 = vector.extract_strided_slice %99 {offsets = [0, 0], sizes = [32, 8], strides = [1, 1]} : vector<32x32xf32> to vector<32x8xf32>
    %122 = vector.shape_cast %121 : vector<32x8xf32> to vector<2x16x8xf32>
    %123 = vector.extract_strided_slice %99 {offsets = [0, 8], sizes = [32, 8], strides = [1, 1]} : vector<32x32xf32> to vector<32x8xf32>
    %124 = vector.shape_cast %123 : vector<32x8xf32> to vector<2x16x8xf32>
    %125 = vector.extract_strided_slice %99 {offsets = [0, 16], sizes = [32, 8], strides = [1, 1]} : vector<32x32xf32> to vector<32x8xf32>
    %126 = vector.shape_cast %125 : vector<32x8xf32> to vector<2x16x8xf32>
    %127 = vector.extract_strided_slice %99 {offsets = [0, 24], sizes = [32, 8], strides = [1, 1]} : vector<32x32xf32> to vector<32x8xf32>
    %128 = vector.shape_cast %127 : vector<32x8xf32> to vector<2x16x8xf32>
    %129 = vector.shape_cast %122 : vector<2x16x8xf32> to vector<1x2x16x8xf32>
    %130 = vector.shape_cast %124 : vector<2x16x8xf32> to vector<1x2x16x8xf32>
    %131 = vector.shape_cast %126 : vector<2x16x8xf32> to vector<1x2x16x8xf32>
    %132 = vector.shape_cast %128 : vector<2x16x8xf32> to vector<1x2x16x8xf32>
    %133 = tpu.concatenate %129, %130, %131, %132 in 0 : vector<1x2x16x8xf32>, vector<1x2x16x8xf32>, vector<1x2x16x8xf32>, vector<1x2x16x8xf32> -> vector<4x2x16x8xf32>
    %134 = vector.shape_cast %133 : vector<4x2x16x8xf32> to vector<8x16x8xf32>
    %135 = vector.extract_strided_slice %106 {offsets = [0, 0], sizes = [32, 8], strides = [1, 1]} : vector<32x32xf32> to vector<32x8xf32>
    %136 = vector.shape_cast %135 : vector<32x8xf32> to vector<2x16x8xf32>
    %137 = vector.extract_strided_slice %106 {offsets = [0, 8], sizes = [32, 8], strides = [1, 1]} : vector<32x32xf32> to vector<32x8xf32>
    %138 = vector.shape_cast %137 : vector<32x8xf32> to vector<2x16x8xf32>
    %139 = vector.extract_strided_slice %106 {offsets = [0, 16], sizes = [32, 8], strides = [1, 1]} : vector<32x32xf32> to vector<32x8xf32>
    %140 = vector.shape_cast %139 : vector<32x8xf32> to vector<2x16x8xf32>
    %141 = vector.extract_strided_slice %106 {offsets = [0, 24], sizes = [32, 8], strides = [1, 1]} : vector<32x32xf32> to vector<32x8xf32>
    %142 = vector.shape_cast %141 : vector<32x8xf32> to vector<2x16x8xf32>
    %143 = vector.shape_cast %136 : vector<2x16x8xf32> to vector<1x2x16x8xf32>
    %144 = vector.shape_cast %138 : vector<2x16x8xf32> to vector<1x2x16x8xf32>
    %145 = vector.shape_cast %140 : vector<2x16x8xf32> to vector<1x2x16x8xf32>
    %146 = vector.shape_cast %142 : vector<2x16x8xf32> to vector<1x2x16x8xf32>
    %147 = tpu.concatenate %143, %144, %145, %146 in 0 : vector<1x2x16x8xf32>, vector<1x2x16x8xf32>, vector<1x2x16x8xf32>, vector<1x2x16x8xf32> -> vector<4x2x16x8xf32>
    %148 = vector.shape_cast %147 : vector<4x2x16x8xf32> to vector<8x16x8xf32>
    "tpu.trace_start"() <{level = 10 : i32, message = "bqd,bkd->bqk"}> : () -> ()
    %cst_50 = arith.constant dense<0.000000e+00> : vector<8x8x16xf32>
    %149 = tpu.matmul %120, %134, %cst_50 {dimension_numbers = #tpu.dot_dimension_numbers<[2], [2], [1], [1], [0, 0, 0, 1, 1, 1], [0], [0]>} : vector<8x8x8xf32>, vector<8x16x8xf32>, vector<8x8x16xf32> -> vector<8x8x16xf32>
    "tpu.trace_stop"() : () -> ()
    %c0_51 = arith.constant 0 : index
    %c0_52 = arith.constant 0 : index
    %c0_53 = arith.constant 0 : index
    %150 = vector.load %arg5[%c0_51, %c0_52, %c0_53] : memref<8x16x8xf32, #tpu.memory_space<vmem>>, vector<8x16x8xf32>
    %151 = vector.shape_cast %120 : vector<8x8x8xf32> to vector<8x8x1x8xf32>
    %152 = vector.shape_cast %150 : vector<8x16x8xf32> to vector<1x8x16x8xf32>
    %153 = vector.broadcast %151 : vector<8x8x1x8xf32> to vector<8x8x16x8xf32>
    %154 = vector.broadcast %152 : vector<1x8x16x8xf32> to vector<8x8x16x8xf32>
    %155 = arith.mulf %153, %154 : vector<8x8x16x8xf32>
    %cst_54 = arith.constant dense<0.000000e+00> : vector<8x8x16xf32>
    %156 = vector.multi_reduction <add>, %155, %cst_54 [3] : vector<8x8x16x8xf32> to vector<8x8x16xf32>
    %157 = arith.addf %149, %156 : vector<8x8x16xf32>
    %c0_55 = arith.constant 0 : index
    %c0_56 = arith.constant 0 : index
    %c0_57 = arith.constant 0 : index
    %c0_58 = arith.constant 0 : index
    %158 = vector.load %arg4[%c0_55, %c0_56, %c0_57, %c0_58] : memref<1x2x8x16xi8, #tpu.memory_space<vmem>>, vector<1x2x8x16xi8>
    %159 = vector.shape_cast %158 : vector<1x2x8x16xi8> to vector<2x8x16xi8>
    %160 = arith.sitofp %159 : vector<2x8x16xi8> to vector<2x8x16xf32>
    %cst_59 = arith.constant 0.000000e+00 : f32
    %161 = vector.broadcast %cst_59 : f32 to vector<2x8x16xf32>
    %162 = arith.cmpf oeq, %160, %161 : vector<2x8x16xf32>
    %163 = vector.shape_cast %157 : vector<8x8x16xf32> to vector<4x2x8x16xf32>
    %164 = vector.shape_cast %162 : vector<2x8x16xi1> to vector<1x2x8x16xi1>
    %cst_60 = arith.constant -3.40282347E+38 : f32
    %165 = vector.shape_cast %164 : vector<1x2x8x16xi1> to vector<1x2x8x16xi1>
    %166 = vector.broadcast %165 : vector<1x2x8x16xi1> to vector<4x2x8x16xi1>
    %167 = vector.broadcast %cst_60 : f32 to vector<4x2x8x16xf32>
    %168 = arith.select %166, %167, %163 : vector<4x2x8x16xi1>, vector<4x2x8x16xf32>
    %cst_61 = arith.constant dense<0xFF800000> : vector<4x2x8xf32>
    %169 = vector.multi_reduction <maximumf>, %168, %cst_61 [3] : vector<4x2x8x16xf32> to vector<4x2x8xf32>
    %170 = vector.shape_cast %169 : vector<4x2x8xf32> to vector<4x2x8x1xf32>
    %171 = vector.broadcast %170 : vector<4x2x8x1xf32> to vector<4x2x8x16xf32>
    %172 = arith.subf %168, %171 : vector<4x2x8x16xf32>
    %173 = math.exp %172 : vector<4x2x8x16xf32>
    %cst_62 = arith.constant dense<0.000000e+00> : vector<4x2x8xf32>
    %174 = vector.multi_reduction <add>, %173, %cst_62 [3] : vector<4x2x8x16xf32> to vector<4x2x8xf32>
    %175 = vector.shape_cast %174 : vector<4x2x8xf32> to vector<4x2x8x1xf32>
    %176 = tpu.reciprocal %175 {approx = true} : vector<4x2x8x1xf32> -> vector<4x2x8x1xf32>
    %177 = vector.broadcast %176 : vector<4x2x8x1xf32> to vector<4x2x8x16xf32>
    %178 = arith.mulf %173, %177 : vector<4x2x8x16xf32>
    %179 = vector.shape_cast %162 : vector<2x8x16xi1> to vector<1x2x8x16xi1>
    %cst_63 = arith.constant 0.000000e+00 : f32
    %180 = vector.shape_cast %179 : vector<1x2x8x16xi1> to vector<1x2x8x16xi1>
    %181 = vector.broadcast %180 : vector<1x2x8x16xi1> to vector<4x2x8x16xi1>
    %182 = vector.broadcast %cst_63 : f32 to vector<4x2x8x16xf32>
    %183 = arith.select %181, %182, %178 : vector<4x2x8x16xi1>, vector<4x2x8x16xf32>
    %184 = vector.shape_cast %183 : vector<4x2x8x16xf32> to vector<8x8x16xf32>
    "tpu.trace_start"() <{level = 10 : i32, message = "bqk,bkd->bqd"}> : () -> ()
    %cst_64 = arith.constant dense<0.000000e+00> : vector<8x8x8xf32>
    %185 = tpu.matmul %184, %148, %cst_64 {dimension_numbers = #tpu.dot_dimension_numbers<[2], [1], [1], [2], [0, 0, 0, 1, 1, 2], [0], [0]>} : vector<8x8x16xf32>, vector<8x16x8xf32>, vector<8x8x8xf32> -> vector<8x8x8xf32>
    "tpu.trace_stop"() : () -> ()
    %186 = vector.extract_strided_slice %185 {offsets = [0, 0, 0], sizes = [2, 8, 8], strides = [1, 1, 1]} : vector<8x8x8xf32> to vector<2x8x8xf32>
    %187 = vector.shape_cast %186 : vector<2x8x8xf32> to vector<16x8xf32>
    %188 = vector.extract_strided_slice %185 {offsets = [2, 0, 0], sizes = [2, 8, 8], strides = [1, 1, 1]} : vector<8x8x8xf32> to vector<2x8x8xf32>
    %189 = vector.shape_cast %188 : vector<2x8x8xf32> to vector<16x8xf32>
    %190 = vector.extract_strided_slice %185 {offsets = [4, 0, 0], sizes = [2, 8, 8], strides = [1, 1, 1]} : vector<8x8x8xf32> to vector<2x8x8xf32>
    %191 = vector.shape_cast %190 : vector<2x8x8xf32> to vector<16x8xf32>
    %192 = vector.extract_strided_slice %185 {offsets = [6, 0, 0], sizes = [2, 8, 8], strides = [1, 1, 1]} : vector<8x8x8xf32> to vector<2x8x8xf32>
    %193 = vector.shape_cast %192 : vector<2x8x8xf32> to vector<16x8xf32>
    %194 = tpu.concatenate %187, %189, %191, %193 in 1 : vector<16x8xf32>, vector<16x8xf32>, vector<16x8xf32>, vector<16x8xf32> -> vector<16x32xf32>
    %c0_65 = arith.constant 0 : index
    %c0_66 = arith.constant 0 : index
    %195 = vector.load %arg16[%c0_65, %c0_66] : memref<32x32xf32, #tpu.memory_space<vmem>>, vector<32x32xf32>
    %cst_67 = arith.constant dense<0.000000e+00> : vector<16x32xf32>
    %196 = tpu.matmul %194, %195, %cst_67 {dimension_numbers = #tpu.dot_dimension_numbers<[1], [0], [0], [1], [0, 0, 1, 1], [], []>} : vector<16x32xf32>, vector<32x32xf32>, vector<16x32xf32> -> vector<16x32xf32>
    %c0_68 = arith.constant 0 : index
    %c0_69 = arith.constant 0 : index
    %197 = vector.load %arg17[%c0_68, %c0_69] : memref<1x32xf32, #tpu.memory_space<vmem>>, vector<1x32xf32>
    %198 = vector.shape_cast %197 : vector<1x32xf32> to vector<32xf32>
    %199 = vector.shape_cast %198 : vector<32xf32> to vector<1x32xf32>
    %200 = vector.broadcast %199 : vector<1x32xf32> to vector<16x32xf32>
    %201 = arith.addf %196, %200 : vector<16x32xf32>
    %c0_70 = arith.constant 0 : index
    %c0_71 = arith.constant 0 : index
    %202 = vector.load %arg18[%c0_70, %c0_71] : memref<1x32xf32, #tpu.memory_space<vmem>>, vector<1x32xf32>
    %203 = vector.shape_cast %202 : vector<1x32xf32> to vector<32xf32>
    %204 = vector.shape_cast %203 : vector<32xf32> to vector<1x32xf32>
    %205 = vector.broadcast %204 : vector<1x32xf32> to vector<16x32xf32>
    %206 = arith.mulf %201, %205 : vector<16x32xf32>
    %207 = vector.extract_strided_slice %206 {offsets = [0, 0], sizes = [4, 32], strides = [1, 1]} : vector<16x32xf32> to vector<4x32xf32>
    %208 = vector.extract_strided_slice %206 {offsets = [4, 0], sizes = [4, 32], strides = [1, 1]} : vector<16x32xf32> to vector<4x32xf32>
    %209 = vector.extract_strided_slice %206 {offsets = [8, 0], sizes = [4, 32], strides = [1, 1]} : vector<16x32xf32> to vector<4x32xf32>
    %210 = vector.extract_strided_slice %206 {offsets = [12, 0], sizes = [4, 32], strides = [1, 1]} : vector<16x32xf32> to vector<4x32xf32>
    %211 = tpu.concatenate %207, %208, %209, %210 in 1 : vector<4x32xf32>, vector<4x32xf32>, vector<4x32xf32>, vector<4x32xf32> -> vector<4x128xf32>
    %c0_72 = arith.constant 0 : index
    %c0_73 = arith.constant 0 : index
    %c0_74 = arith.constant 0 : index
    %212 = vector.load %arg19[%c0_72, %c0_73, %c0_74] : memref<1x4x128xf32, #tpu.memory_space<vmem>>, vector<1x4x128xf32>
    %213 = vector.shape_cast %212 : vector<1x4x128xf32> to vector<4x128xf32>
    %214 = vector.shape_cast %211 : vector<4x128xf32> to vector<1x4x128xf32>
    tpu.vector_store %arg19[%c0_72, %c0_73, %c0_74], %214 {strides = array<i32>} : memref<1x4x128xf32, #tpu.memory_space<vmem>>, vector<1x4x128xf32>,
    return
  }
  func.func @transform_0(%arg0: i32) -> (i32, i32, i32) {
    %c0_i32 = arith.constant 0 : i32
    %c0_i32_0 = arith.constant 0 : i32
    %c0_i32_1 = arith.constant 0 : i32
    return %arg0, %c0_i32, %c0_i32_0 : i32, i32, i32
  }
  func.func @transform_1(%arg0: i32) -> (i32, i32, i32) {
    %c0_i32 = arith.constant 0 : i32
    %c0_i32_0 = arith.constant 0 : i32
    %c0_i32_1 = arith.constant 0 : i32
    return %arg0, %c0_i32, %c0_i32_0 : i32, i32, i32
  }
  func.func @transform_2(%arg0: i32) -> (i32, i32, i32) {
    %c0_i32 = arith.constant 0 : i32
    %c0_i32_0 = arith.constant 0 : i32
    %c0_i32_1 = arith.constant 0 : i32
    return %arg0, %c0_i32, %c0_i32_0 : i32, i32, i32
  }
  func.func @transform_3(%arg0: i32) -> (i32, i32, i32, i32) {
    %c0_i32 = arith.constant 0 : i32
    %c0_i32_0 = arith.constant 0 : i32
    %c0_i32_1 = arith.constant 0 : i32
    %c0_i32_2 = arith.constant 0 : i32
    return %arg0, %c0_i32, %c0_i32_0, %c0_i32_1 : i32, i32, i32, i32
  }
  func.func @transform_4(%arg0: i32) -> (i32, i32, i32) {
    %c0_i32 = arith.constant 0 : i32
    %c0_i32_0 = arith.constant 0 : i32
    %c0_i32_1 = arith.constant 0 : i32
    %c0_i32_2 = arith.constant 0 : i32
    return %c0_i32, %c0_i32_0, %c0_i32_1 : i32, i32, i32
  }
  func.func @transform_5(%arg0: i32) -> (i32, i32) {
    %c0_i32 = arith.constant 0 : i32
    %c0_i32_0 = arith.constant 0 : i32
    %c0_i32_1 = arith.constant 0 : i32
    return %c0_i32, %c0_i32_0 : i32, i32
  }
  func.func @transform_6(%arg0: i32) -> (i32, i32) {
    %c0_i32 = arith.constant 0 : i32
    %c0_i32_0 = arith.constant 0 : i32
    %c0_i32_1 = arith.constant 0 : i32
    return %c0_i32, %c0_i32_0 : i32, i32
  }
  func.func @transform_7(%arg0: i32) -> (i32, i32) {
    %c0_i32 = arith.constant 0 : i32
    %c0_i32_0 = arith.constant 0 : i32
    %c0_i32_1 = arith.constant 0 : i32
    return %c0_i32, %c0_i32_0 : i32, i32
  }
  func.func @transform_8(%arg0: i32) -> (i32, i32) {
    %c0_i32 = arith.constant 0 : i32
    %c0_i32_0 = arith.constant 0 : i32
    %c0_i32_1 = arith.constant 0 : i32
    return %c0_i32, %c0_i32_0 : i32, i32
  }
  func.func @transform_9(%arg0: i32) -> (i32, i32) {
    %c0_i32 = arith.constant 0 : i32
    %c0_i32_0 = arith.constant 0 : i32
    %c0_i32_1 = arith.constant 0 : i32
    return %c0_i32, %c0_i32_0 : i32, i32
  }
  func.func @transform_10(%arg0: i32) -> (i32, i32) {
    %c0_i32 = arith.constant 0 : i32
    %c0_i32_0 = arith.constant 0 : i32
    %c0_i32_1 = arith.constant 0 : i32
    return %c0_i32, %c0_i32_0 : i32, i32
  }
  func.func @transform_11(%arg0: i32) -> (i32, i32) {
    %c0_i32 = arith.constant 0 : i32
    %c0_i32_0 = arith.constant 0 : i32
    %c0_i32_1 = arith.constant 0 : i32
    return %c0_i32, %c0_i32_0 : i32, i32
  }
  func.func @transform_12(%arg0: i32) -> (i32, i32) {
    %c0_i32 = arith.constant 0 : i32
    %c0_i32_0 = arith.constant 0 : i32
    %c0_i32_1 = arith.constant 0 : i32
    return %c0_i32, %c0_i32_0 : i32, i32
  }
  func.func @transform_13(%arg0: i32) -> (i32, i32) {
    %c0_i32 = arith.constant 0 : i32
    %c0_i32_0 = arith.constant 0 : i32
    %c0_i32_1 = arith.constant 0 : i32
    return %c0_i32, %c0_i32_0 : i32, i32
  }
  func.func @transform_14(%arg0: i32) -> (i32, i32) {
    %c0_i32 = arith.constant 0 : i32
    %c0_i32_0 = arith.constant 0 : i32
    %c0_i32_1 = arith.constant 0 : i32
    return %c0_i32, %c0_i32_0 : i32, i32
  }
  func.func @transform_15(%arg0: i32) -> (i32, i32) {
    %c0_i32 = arith.constant 0 : i32
    %c0_i32_0 = arith.constant 0 : i32
    %c0_i32_1 = arith.constant 0 : i32
    return %c0_i32, %c0_i32_0 : i32, i32
  }
  func.func @transform_16(%arg0: i32) -> (i32, i32) {
    %c0_i32 = arith.constant 0 : i32
    %c0_i32_0 = arith.constant 0 : i32
    %c0_i32_1 = arith.constant 0 : i32
    return %c0_i32, %c0_i32_0 : i32, i32
  }
  func.func @transform_17(%arg0: i32) -> (i32, i32) {
    %c0_i32 = arith.constant 0 : i32
    %c0_i32_0 = arith.constant 0 : i32
    %c0_i32_1 = arith.constant 0 : i32
    return %c0_i32, %c0_i32_0 : i32, i32
  }
  func.func @transform_18(%arg0: i32) -> (i32, i32, i32) {
    %c0_i32 = arith.constant 0 : i32
    %c0_i32_0 = arith.constant 0 : i32
    %c0_i32_1 = arith.constant 0 : i32
    return %arg0, %c0_i32, %c0_i32_0 : i32, i32, i32
  }
}

</mosaic_0001>

<bundles_post_ra>
// kernel: tpu_custom_call.1
= control target key start
LH: loop header
LB: loop body
LE: loop exit
PB: predicated region body
PF: predicated region fallthrough
CT: control target
= control target key end

     0   :  { %s7250_s0 = inlined_call_operand.hbm [shape: f32[1,16,32], index: 0, kind: input, shape index: {}]   ;;  %s7251_s1 = inlined_call_operand.hbm [shape: f32[1,32,32], index: 1, kind: input, shape index: {}]   ;;  %s7252_s2 = inlined_call_operand.hbm [shape: f32[1,32,32], index: 2, kind: input, shape index: {}]   ;;  %s7253_s3 = inlined_call_operand.hbm [shape: s8[1,2,8,16], index: 3, kind: input, shape index: {}]   ;;  %s7254_s4 = inlined_call_operand.hbm [shape: f32[8,16,8], index: 4, kind: input, shape index: {}]   ;;  %s7255_s5 = inlined_call_operand.hbm [shape: f32[1,32], index: 5, kind: input, shape index: {}]   ;;  %s7256_s6 = inlined_call_operand.hbm [shape: f32[1,32], index: 6, kind: input, shape index: {}]   ;;  %s7257_s7 = inlined_call_operand.hbm [shape: f32[1,32], index: 7, kind: input, shape index: {}]   ;;  %s7258_s8 = inlined_call_operand.hbm [shape: f32[1,32], index: 8, kind: input, shape index: {}]   ;;  %s7259_s9 = inlined_call_operand.hbm [shape: f32[32,32], index: 9, kind: input, shape index: {}]   ;;  %s7260_s10 = inlined_call_operand.hbm [shape: f32[1,32], index: 10, kind: input, shape index: {}]   ;;  %s7261_s11 = inlined_call_operand.hbm [shape: f32[32,32], index: 11, kind: input, shape index: {}]   ;;  %s7262_s12 = inlined_call_operand.hbm [shape: f32[1,32], index: 12, kind: input, shape index: {}]   ;;  %s7263_s13 = inlined_call_operand.hbm [shape: f32[32,32], index: 13, kind: input, shape index: {}]   ;;  %s7264_s14 = inlined_call_operand.hbm [shape: f32[1,32], index: 14, kind: input, shape index: {}]   ;;  %s7265_s15 = inlined_call_operand.hbm [shape: f32[32,32], index: 15, kind: input, shape index: {}]   ;;  %s7266_s16 = inlined_call_operand.hbm [shape: f32[1,32], index: 16, kind: input, shape index: {}]   ;;  %s7267_s17 = inlined_call_operand.hbm [shape: f32[1,32], index: 17, kind: input, shape index: {}]   ;;  %s7268_s18 = inlined_call_operand.hbm [shape: f32[1,4,128], index: 18, kind: output, shape index: {}]  }
   0x1   :  { %7277 = sst [smem:[#allocation43_spill]] %s7250_s0 }
   0x2   :  { %7278 = sst [smem:[#allocation44_spill]] %s7251_s1 }
   0x3   :  { %7279 = sst [smem:[#allocation45_spill]] %s7252_s2 }
   0x4   :  { %7280 = sst [smem:[#allocation46_spill]] %s7268_s18 }
   0x5   :  { %23 = vsyncpa [#allocation3], 0 }
   0x6   :  { %24 = vsyncpa [#allocation6], 0 }
   0x7   :  { %25 = vsyncpa [#allocation9], 0 }
   0x8   :  { %26 = vsyncpa [#allocation12], 0 }
   0x9   :  { %27 = vsyncpa [#allocation15], 0 }
   0xa   :  { %28 = vsyncpa [#allocation18], 0 }
   0xb   :  { %29 = vsyncpa [#allocation21], 0 }
   0xc   :  { %30 = vsyncpa [#allocation24], 0 }
   0xd   :  { %31 = vsyncpa [#allocation27], 0 }
   0xe   :  { %32 = vsyncpa [#allocation30], 0 }
   0xf   :  { %33 = vsyncpa [#allocation4], 0  ;;  %s5349_s27 = smov [#allocation5]   ;;  %s5350_s29 = smov [#allocation8]  }
  0x10   :  { %s51_s28 = sshll.u32 %s5349_s27, 4  ;;  %s75_s30 = sshll.u32 %s5350_s29, 4  ;;  %s52_s28 = int_to_ptr.vmem [resolvable:$true] %s51_s28  ;;  %s5478_s30 = int_to_ptr.vmem [resolvable:$true] %s75_s30 }
  0x11   :  { %s7281_s1 = sld [smem:[#allocation44_spill]] }
  0x17   :  { %s4909_s20 = scalar_lea.hbm %s7281_s1, 512 }
  0x18   :  { %p4910_p0 = scmp.ne.s32.totalorder %s7281_s1, %s4909_s20  ;;  %p4913_p1 = scmp.lt.u32.totalorder %s4909_s20, %s7281_s1 }
  0x1a   :  { %p4915_p2 = pnand %p4913_p1, %p4910_p0 }
  0x1c   :  { %4918 = shalt.err (!%p4915_p2)
}
  0x1d   :  { %s4919_s24 = scalar_lea.vmem %s52_s28, 512  ;;  %p4924_p4 = scmp.lt.s32.totalorder %s52_s28, %s52_s28 }
  0x1e   :  { %p4920_p3 = scmp.ne.s32.totalorder %s52_s28, %s4919_s24  ;;  %p4925_p5 = scmp.lt.s32.totalorder %s4919_s24, %s4919_s24 }
  0x20   :  { %p4926_p6 = por %p4925_p5, %p4924_p4 }
  0x22   :  { %p4927_p7 = pnand %p4926_p6, %p4920_p3 }
  0x24   :  { %4930 = shalt.err (!%p4927_p7)
}
  0x25   :  { %s7272_s25 = smov 128   ;;  %s7274_s26 = smov 8  }
  0x26   :  { %57 = dma.hbm_to_vmem [thread:$0]  %s7281_s1, 512, %s52_s28, [#allocation6], %s7272_s25, %s7272_s25, %s7274_s26  }
  0x27   :  { %s4931_s20 = scalar_lea.hbm %s7253_s3, 64 }
  0x28   :  { %p4932_p8 = scmp.ne.s32.totalorder %s7253_s3, %s4931_s20  ;;  %p4935_p9 = scmp.lt.u32.totalorder %s4931_s20, %s7253_s3 }
  0x2a   :  { %p4937_p10 = pnand %p4935_p9, %p4932_p8 }
  0x2c   :  { %4940 = shalt.err (!%p4937_p10)
}
  0x2d   :  { %s4941_s24 = scalar_lea.vmem %s5478_s30, 64  ;;  %p4946_p12 = scmp.lt.s32.totalorder %s5478_s30, %s5478_s30 }
  0x2e   :  { %p4942_p11 = scmp.ne.s32.totalorder %s5478_s30, %s4941_s24  ;;  %p4947_p13 = scmp.lt.s32.totalorder %s4941_s24, %s4941_s24 }
  0x30   :  { %p4948_p0 = por %p4947_p13, %p4946_p12 }
  0x32   :  { %p4949_p1 = pnand %p4948_p0, %p4942_p11 }
  0x34   :  { %4952 = shalt.err (!%p4949_p1)
}
  0x35   :  { %s5353_s28 = smov 32   ;;  %s5354_s1 = smov 2  }
  0x36   :  { %81 = dma.hbm_to_vmem [thread:$0]  %s7253_s3, 64, %s5478_s30, [#allocation9], %s5353_s28, %s5353_s28, %s5354_s1  }
  0x37   :  { %s5355_s0 = smov [#allocation11]   ;;  %s5356_s20 = smov [#allocation14]  }
  0x38   :  { %s100_s19 = sshll.u32 %s5355_s0, 4  ;;  %s120_s21 = sshll.u32 %s5356_s20, 4  ;;  %s101_s19 = int_to_ptr.vmem [resolvable:$true] %s100_s19  ;;  %s121_s21 = int_to_ptr.vmem [resolvable:$true] %s120_s21 }
  0x39   :  { %s4953_s23 = scalar_lea.hbm %s7255_s5, 16 }
  0x3a   :  { %p4954_p2 = scmp.ne.s32.totalorder %s7255_s5, %s4953_s23  ;;  %p4957_p3 = scmp.lt.u32.totalorder %s4953_s23, %s7255_s5 }
  0x3c   :  { %p4959_p4 = pnand %p4957_p3, %p4954_p2 }
  0x3e   :  { %4962 = shalt.err (!%p4959_p4)
}
  0x3f   :  { %s4963_s3 = scalar_lea.vmem %s101_s19, 16  ;;  %s4967_s30 = scalar_lea.vmem %s101_s19, 32 }
  0x40   :  { %p4964_p5 = scmp.ne.s32.totalorder %s101_s19, %s4963_s3  ;;  %p4968_p6 = scmp.lt.s32.totalorder %s101_s19, %s101_s19 }
  0x41   :  { %p4969_p7 = scmp.lt.s32.totalorder %s4967_s30, %s4963_s3 }
  0x43   :  { %p4970_p8 = por %p4969_p7, %p4968_p6 }
  0x45   :  { %p4971_p9 = pnand %p4970_p8, %p4964_p5 }
  0x47   :  { %4974 = shalt.err (!%p4971_p9)
}
  0x48   :  { %103 = dma.hbm_to_vmem [thread:$0]  %s7255_s5, 16, %s101_s19, [#allocation12]  }
  0x49   :  { %s4975_s0 = scalar_lea.hbm %s7257_s7, 16 }
  0x4a   :  { %p4976_p10 = scmp.ne.s32.totalorder %s7257_s7, %s4975_s0  ;;  %p4979_p11 = scmp.lt.u32.totalorder %s4975_s0, %s7257_s7 }
  0x4c   :  { %p4981_p12 = pnand %p4979_p11, %p4976_p10 }
  0x4e   :  { %4984 = shalt.err (!%p4981_p12)
}
  0x4f   :  { %s4985_s2 = scalar_lea.vmem %s121_s21, 16  ;;  %s4989_s23 = scalar_lea.vmem %s121_s21, 32 }
  0x50   :  { %p4986_p13 = scmp.ne.s32.totalorder %s121_s21, %s4985_s2  ;;  %p4990_p0 = scmp.lt.s32.totalorder %s121_s21, %s121_s21 }
  0x51   :  { %p4991_p1 = scmp.lt.s32.totalorder %s4989_s23, %s4985_s2 }
  0x53   :  { %p4992_p2 = por %p4991_p1, %p4990_p0 }
  0x55   :  { %p4993_p3 = pnand %p4992_p2, %p4986_p13 }
  0x57   :  { %4996 = shalt.err (!%p4993_p3)
}
  0x58   :  { %123 = dma.hbm_to_vmem [thread:$0]  %s7257_s7, 16, %s121_s21, [#allocation15]  }
  0x59   :  { %s5357_s24 = smov [#allocation17]   ;;  %s5358_s30 = smov [#allocation20]  }
  0x5a   :  { %s139_s3 = sshll.u32 %s5357_s24, 4  ;;  %s161_s1 = sshll.u32 %s5358_s30, 4  ;;  %s140_s3 = int_to_ptr.vmem [resolvable:$true] %s139_s3  ;;  %s5538_s1 = int_to_ptr.vmem [resolvable:$true] %s161_s1 }
  0x5b   :  { %s4997_s29 = scalar_lea.hbm %s7259_s9, 512 }
  0x5c   :  { %p4998_p4 = scmp.ne.s32.totalorder %s7259_s9, %s4997_s29  ;;  %p5001_p5 = scmp.lt.u32.totalorder %s4997_s29, %s7259_s9 }
  0x5e   :  { %p5003_p6 = pnand %p5001_p5, %p4998_p4 }
  0x60   :  { %5006 = shalt.err (!%p5003_p6)
}
  0x61   :  { %s5007_s7 = scalar_lea.vmem %s140_s3, 512  ;;  %p5012_p8 = scmp.lt.s32.totalorder %s140_s3, %s140_s3 }
  0x62   :  { %p5008_p7 = scmp.ne.s32.totalorder %s140_s3, %s5007_s7  ;;  %p5013_p9 = scmp.lt.s32.totalorder %s5007_s7, %s5007_s7 }
  0x64   :  { %p5014_p10 = por %p5013_p9, %p5012_p8 }
  0x66   :  { %p5015_p11 = pnand %p5014_p10, %p5008_p7 }
  0x68   :  { %5018 = shalt.err (!%p5015_p11)
}
  0x69   :  { %s7282_s21 = smov 8   ;;  %s7283_s22 = smov 128  }
  0x6a   :  { %145 = dma.hbm_to_vmem [thread:$0]  %s7259_s9, 512, %s140_s3, [#allocation18], %s7283_s22, %s7283_s22, %s7282_s21  }
  0x6b   :  { %s5019_s24 = scalar_lea.hbm %s7261_s11, 512 }
  0x6c   :  { %p5020_p12 = scmp.ne.s32.totalorder %s7261_s11, %s5019_s24  ;;  %p5023_p13 = scmp.lt.u32.totalorder %s5019_s24, %s7261_s11 }
  0x6e   :  { %p5025_p0 = pnand %p5023_p13, %p5020_p12 }
  0x70   :  { %5028 = shalt.err (!%p5025_p0)
}
  0x71   :  { %s5029_s0 = scalar_lea.vmem %s5538_s1, 512  ;;  %p5034_p2 = scmp.lt.s32.totalorder %s5538_s1, %s5538_s1 }
  0x72   :  { %p5030_p1 = scmp.ne.s32.totalorder %s5538_s1, %s5029_s0  ;;  %p5035_p3 = scmp.lt.s32.totalorder %s5029_s0, %s5029_s0 }
  0x74   :  { %p5036_p4 = por %p5035_p3, %p5034_p2 }
  0x76   :  { %p5037_p5 = pnand %p5036_p4, %p5030_p1 }
  0x78   :  { %5040 = shalt.err (!%p5037_p5)
}
  0x79   :  { %167 = dma.hbm_to_vmem [thread:$0]  %s7261_s11, 512, %s5538_s1, [#allocation21], %s7283_s22, %s7283_s22, %s7282_s21  }
  0x7a   :  { %s5359_s18 = smov [#allocation23]   ;;  %s5360_s20 = smov [#allocation26]  }
  0x7b   :  { %s183_s26 = sshll.u32 %s5359_s18, 4  ;;  %s205_s7 = sshll.u32 %s5360_s20, 4  ;;  %s184_s26 = int_to_ptr.vmem [resolvable:$true] %s183_s26  ;;  %s5575_s7 = int_to_ptr.vmem [resolvable:$true] %s205_s7 }
  0x7c   :  { %s5041_s5 = scalar_lea.hbm %s7263_s13, 512 }
  0x7d   :  { %p5042_p6 = scmp.ne.s32.totalorder %s7263_s13, %s5041_s5  ;;  %p5045_p7 = scmp.lt.u32.totalorder %s5041_s5, %s7263_s13 }
  0x7f   :  { %p5047_p8 = pnand %p5045_p7, %p5042_p6 }
  0x81   :  { %5050 = shalt.err (!%p5047_p8)
}
  0x82   :  { %s5051_s11 = scalar_lea.vmem %s184_s26, 512  ;;  %p5056_p10 = scmp.lt.s32.totalorder %s184_s26, %s184_s26 }
  0x83   :  { %p5052_p9 = scmp.ne.s32.totalorder %s184_s26, %s5051_s11  ;;  %p5057_p11 = scmp.lt.s32.totalorder %s5051_s11, %s5051_s11 }
  0x85   :  { %p5058_p12 = por %p5057_p11, %p5056_p10 }
  0x87   :  { %p5059_p13 = pnand %p5058_p12, %p5052_p9 }
  0x89   :  { %5062 = shalt.err (!%p5059_p13)
}
  0x8a   :  { %189 = dma.hbm_to_vmem [thread:$0]  %s7263_s13, 512, %s184_s26, [#allocation24], %s7283_s22, %s7283_s22, %s7282_s21  }
  0x8b   :  { %s5063_s9 = scalar_lea.hbm %s7265_s15, 512 }
  0x8c   :  { %p5064_p0 = scmp.ne.s32.totalorder %s7265_s15, %s5063_s9  ;;  %p5067_p1 = scmp.lt.u32.totalorder %s5063_s9, %s7265_s15 }
  0x8e   :  { %p5069_p2 = pnand %p5067_p1, %p5064_p0 }
  0x90   :  { %5072 = shalt.err (!%p5069_p2)
}
  0x91   :  { %s5073_s23 = scalar_lea.vmem %s5575_s7, 512  ;;  %p5078_p4 = scmp.lt.s32.totalorder %s5575_s7, %s5575_s7 }
  0x92   :  { %p5074_p3 = scmp.ne.s32.totalorder %s5575_s7, %s5073_s23  ;;  %p5079_p5 = scmp.lt.s32.totalorder %s5073_s23, %s5073_s23 }
  0x94   :  { %p5080_p6 = por %p5079_p5, %p5078_p4 }
  0x96   :  { %p5081_p7 = pnand %p5080_p6, %p5074_p3 }
  0x98   :  { %5084 = shalt.err (!%p5081_p7)
}
  0x99   :  { %211 = dma.hbm_to_vmem [thread:$0]  %s7265_s15, 512, %s5575_s7, [#allocation27], %s7283_s22, %s7283_s22, %s7282_s21  }
  0x9a   :  { %s5361_s5 = smov [#allocation2]   ;;  %s5362_s24 = smov [#allocation7]  }
  0x9b   :  { %s39_s19 = sshll.u32 %s5361_s5, 4  ;;  %s63_s30 = sshll.u32 %s5362_s24, 4  ;;  %s40_s19 = int_to_ptr.vmem [resolvable:$true] %s39_s19  ;;  %s5612_s30 = int_to_ptr.vmem [resolvable:$true] %s63_s30 }
  0x9c   :  { %s7284_s1 = sld [smem:[#allocation43_spill]] }
  0xa2   :  { %s5085_s25 = scalar_lea.hbm %s7284_s1, 256 }
  0xa3   :  { %p5086_p8 = scmp.ne.s32.totalorder %s7284_s1, %s5085_s25  ;;  %p5089_p9 = scmp.lt.u32.totalorder %s5085_s25, %s7284_s1 }
  0xa5   :  { %p5091_p10 = pnand %p5089_p9, %p5086_p8 }
  0xa7   :  { %5094 = shalt.err (!%p5091_p10)
}
  0xa8   :  { %s5095_s15 = scalar_lea.vmem %s40_s19, 256  ;;  %p5100_p12 = scmp.lt.s32.totalorder %s40_s19, %s40_s19 }
  0xa9   :  { %p5096_p11 = scmp.ne.s32.totalorder %s40_s19, %s5095_s15  ;;  %p5101_p13 = scmp.lt.s32.totalorder %s5095_s15, %s5095_s15 }
  0xab   :  { %p5102_p0 = por %p5101_p13, %p5100_p12 }
  0xad   :  { %p5103_p1 = pnand %p5102_p0, %p5096_p11 }
  0xaf   :  { %5106 = shalt.err (!%p5103_p1)
}
  0xb0   :  { %45 = dma.hbm_to_vmem [thread:$0]  %s7284_s1, 256, %s40_s19, [#allocation3], %s7283_s22, %s7283_s22, %s7282_s21  }
  0xb1   :  { %s7285_s23 = sld [smem:[#allocation45_spill]] }
  0xb7   :  { %s5107_s13 = scalar_lea.hbm %s7285_s23, 512 }
  0xb8   :  { %p5108_p2 = scmp.ne.s32.totalorder %s7285_s23, %s5107_s13  ;;  %p5111_p3 = scmp.lt.u32.totalorder %s5107_s13, %s7285_s23 }
  0xba   :  { %p5113_p4 = pnand %p5111_p3, %p5108_p2 }
  0xbc   :  { %5116 = shalt.err (!%p5113_p4)
}
  0xbd   :  { %s5117_s11 = scalar_lea.vmem %s5612_s30, 512  ;;  %p5122_p6 = scmp.lt.s32.totalorder %s5612_s30, %s5612_s30 }
  0xbe   :  { %p5118_p5 = scmp.ne.s32.totalorder %s5612_s30, %s5117_s11  ;;  %p5123_p7 = scmp.lt.s32.totalorder %s5117_s11, %s5117_s11 }
  0xc0   :  { %p5124_p8 = por %p5123_p7, %p5122_p6 }
  0xc2   :  { %p5125_p9 = pnand %p5124_p8, %p5118_p5 }
  0xc4   :  { %5128 = shalt.err (!%p5125_p9)
}
  0xc5   :  { %69 = dma.hbm_to_vmem [thread:$0]  %s7285_s23, 512, %s5612_s30, [#allocation6], %s7283_s22, %s7283_s22, %s7282_s21  }
  0xc6   :  { %s5363_s25 = smov [#allocation10]   ;;  %s5364_s0 = smov [#allocation13]  }
  0xc7   :  { %s87_s29 = sshll.u32 %s5363_s25, 4  ;;  %s110_s9 = sshll.u32 %s5364_s0, 4  ;;  %s88_s29 = int_to_ptr.vmem [resolvable:$true] %s87_s29  ;;  %s111_s9 = int_to_ptr.vmem [resolvable:$true] %s110_s9 }
  0xc8   :  { %s5129_s7 = scalar_lea.hbm %s7254_s4, 2048 }
  0xc9   :  { %p5130_p10 = scmp.ne.s32.totalorder %s7254_s4, %s5129_s7  ;;  %p5133_p11 = scmp.lt.u32.totalorder %s5129_s7, %s7254_s4 }
  0xcb   :  { %p5135_p12 = pnand %p5133_p11, %p5130_p10 }
  0xcd   :  { %5138 = shalt.err (!%p5135_p12)
}
  0xce   :  { %s5139_s30 = scalar_lea.vmem %s88_s29, 2048  ;;  %p5144_p0 = scmp.lt.s32.totalorder %s88_s29, %s88_s29 }
  0xcf   :  { %p5140_p13 = scmp.ne.s32.totalorder %s88_s29, %s5139_s30  ;;  %p5145_p1 = scmp.lt.s32.totalorder %s5139_s30, %s5139_s30 }
  0xd1   :  { %p5146_p2 = por %p5145_p1, %p5144_p0 }
  0xd3   :  { %p5147_p3 = pnand %p5146_p2, %p5140_p13 }
  0xd5   :  { %5150 = shalt.err (!%p5147_p3)
}
  0xd6   :  { %93 = dma.hbm_to_vmem [thread:$0]  %s7254_s4, 2048, %s88_s29, [#allocation9], %s7283_s22, %s7283_s22, %s7282_s21  }
  0xd7   :  { %s5151_s27 = scalar_lea.hbm %s7256_s6, 16 }
  0xd8   :  { %p5152_p4 = scmp.ne.s32.totalorder %s7256_s6, %s5151_s27  ;;  %p5155_p5 = scmp.lt.u32.totalorder %s5151_s27, %s7256_s6 }
  0xda   :  { %p5157_p6 = pnand %p5155_p5, %p5152_p4 }
  0xdc   :  { %5160 = shalt.err (!%p5157_p6)
}
  0xdd   :  { %s5161_s0 = scalar_lea.vmem %s111_s9, 16  ;;  %s5165_s3 = scalar_lea.vmem %s111_s9, 32 }
  0xde   :  { %p5162_p7 = scmp.ne.s32.totalorder %s111_s9, %s5161_s0  ;;  %p5166_p8 = scmp.lt.s32.totalorder %s111_s9, %s111_s9 }
  0xdf   :  { %p5167_p9 = scmp.lt.s32.totalorder %s5165_s3, %s5161_s0 }
  0xe1   :  { %p5168_p10 = por %p5167_p9, %p5166_p8 }
  0xe3   :  { %p5169_p11 = pnand %p5168_p10, %p5162_p7 }
  0xe5   :  { %5172 = shalt.err (!%p5169_p11)
}
  0xe6   :  { %113 = dma.hbm_to_vmem [thread:$0]  %s7256_s6, 16, %s111_s9, [#allocation12]  }
  0xe7   :  { %s5365_s29 = smov [#allocation16]   ;;  %s5366_s7 = smov [#allocation19]  }
  0xe8   :  { %s130_s15 = sshll.u32 %s5365_s29, 4  ;;  %s152_s18 = sshll.u32 %s5366_s7, 4  ;;  %s131_s15 = int_to_ptr.vmem [resolvable:$true] %s130_s15  ;;  %s153_s18 = int_to_ptr.vmem [resolvable:$true] %s152_s18 }
  0xe9   :  { %s5173_s13 = scalar_lea.hbm %s7258_s8, 16 }
  0xea   :  { %p5174_p12 = scmp.ne.s32.totalorder %s7258_s8, %s5173_s13  ;;  %p5177_p13 = scmp.lt.u32.totalorder %s5173_s13, %s7258_s8 }
  0xec   :  { %p5179_p0 = pnand %p5177_p13, %p5174_p12 }
  0xee   :  { %5182 = shalt.err (!%p5179_p0)
}
  0xef   :  { %s5183_s6 = scalar_lea.vmem %s131_s15, 16  ;;  %s5187_s9 = scalar_lea.vmem %s131_s15, 32 }
  0xf0   :  { %p5184_p1 = scmp.ne.s32.totalorder %s131_s15, %s5183_s6  ;;  %p5188_p2 = scmp.lt.s32.totalorder %s131_s15, %s131_s15 }
  0xf1   :  { %p5189_p3 = scmp.lt.s32.totalorder %s5187_s9, %s5183_s6 }
  0xf3   :  { %p5190_p4 = por %p5189_p3, %p5188_p2 }
  0xf5   :  { %p5191_p5 = pnand %p5190_p4, %p5184_p1 }
  0xf7   :  { %5194 = shalt.err (!%p5191_p5)
}
  0xf8   :  { %133 = dma.hbm_to_vmem [thread:$0]  %s7258_s8, 16, %s131_s15, [#allocation15]  }
  0xf9   :  { %s5195_s1 = scalar_lea.hbm %s7260_s10, 16 }
  0xfa   :  { %p5196_p6 = scmp.ne.s32.totalorder %s7260_s10, %s5195_s1  ;;  %p5199_p7 = scmp.lt.u32.totalorder %s5195_s1, %s7260_s10 }
  0xfc   :  { %p5201_p8 = pnand %p5199_p7, %p5196_p6 }
  0xfe   :  { %5204 = shalt.err (!%p5201_p8)
}
  0xff   :  { %s5205_s22 = scalar_lea.vmem %s153_s18, 16  ;;  %s5209_s29 = scalar_lea.vmem %s153_s18, 32 }
 0x100   :  { %p5206_p9 = scmp.ne.s32.totalorder %s153_s18, %s5205_s22  ;;  %p5210_p10 = scmp.lt.s32.totalorder %s153_s18, %s153_s18 }
 0x101   :  { %p5211_p11 = scmp.lt.s32.totalorder %s5209_s29, %s5205_s22 }
 0x103   :  { %p5212_p12 = por %p5211_p11, %p5210_p10 }
 0x105   :  { %p5213_p13 = pnand %p5212_p12, %p5206_p9 }
 0x107   :  { %5216 = shalt.err (!%p5213_p13)
}
 0x108   :  { %155 = dma.hbm_to_vmem [thread:$0]  %s7260_s10, 16, %s153_s18, [#allocation18]  }
 0x109   :  { %s5367_s7 = smov [#allocation22]   ;;  %s5368_s2 = smov [#allocation25]  }
 0x10a   :  { %s174_s20 = sshll.u32 %s5367_s7, 4  ;;  %s196_s13 = sshll.u32 %s5368_s2, 4  ;;  %s175_s20 = int_to_ptr.vmem [resolvable:$true] %s174_s20  ;;  %s197_s13 = int_to_ptr.vmem [resolvable:$true] %s196_s13 }
 0x10b   :  { %s5217_s26 = scalar_lea.hbm %s7262_s12, 16 }
 0x10c   :  { %p5218_p0 = scmp.ne.s32.totalorder %s7262_s12, %s5217_s26  ;;  %p5221_p1 = scmp.lt.u32.totalorder %s5217_s26, %s7262_s12 }
 0x10e   :  { %p5223_p2 = pnand %p5221_p1, %p5218_p0 }
 0x110   :  { %5226 = shalt.err (!%p5223_p2)
}
 0x111   :  { %s5227_s10 = scalar_lea.vmem %s175_s20, 16  ;;  %s5231_s18 = scalar_lea.vmem %s175_s20, 32 }
 0x112   :  { %p5228_p3 = scmp.ne.s32.totalorder %s175_s20, %s5227_s10  ;;  %p5232_p4 = scmp.lt.s32.totalorder %s175_s20, %s175_s20 }
 0x113   :  { %p5233_p5 = scmp.lt.s32.totalorder %s5231_s18, %s5227_s10 }
 0x115   :  { %p5234_p6 = por %p5233_p5, %p5232_p4 }
 0x117   :  { %p5235_p7 = pnand %p5234_p6, %p5228_p3 }
 0x119   :  { %5238 = shalt.err (!%p5235_p7)
}
 0x11a   :  { %177 = dma.hbm_to_vmem [thread:$0]  %s7262_s12, 16, %s175_s20, [#allocation21]  }
 0x11b   :  { %s5239_s25 = scalar_lea.hbm %s7264_s14, 16 }
 0x11c   :  { %p5240_p8 = scmp.ne.s32.totalorder %s7264_s14, %s5239_s25  ;;  %p5243_p9 = scmp.lt.u32.totalorder %s5239_s25, %s7264_s14 }
 0x11e   :  { %p5245_p10 = pnand %p5243_p9, %p5240_p8 }
 0x120   :  { %5248 = shalt.err (!%p5245_p10)
}
 0x121   :  { %s5249_s29 = scalar_lea.vmem %s197_s13, 16  ;;  %s5253_s8 = scalar_lea.vmem %s197_s13, 32 }
 0x122   :  { %p5250_p11 = scmp.ne.s32.totalorder %s197_s13, %s5249_s29  ;;  %p5254_p12 = scmp.lt.s32.totalorder %s197_s13, %s197_s13 }
 0x123   :  { %p5255_p13 = scmp.lt.s32.totalorder %s5253_s8, %s5249_s29 }
 0x125   :  { %p5256_p0 = por %p5255_p13, %p5254_p12 }
 0x127   :  { %p5257_p1 = pnand %p5256_p0, %p5250_p11 }
 0x129   :  { %5260 = shalt.err (!%p5257_p1)
}
 0x12a   :  { %199 = dma.hbm_to_vmem [thread:$0]  %s7264_s14, 16, %s197_s13, [#allocation24]  }
 0x12b   :  { %s5369_s7 = smov [#allocation28]   ;;  %s5370_s2 = smov [#allocation29]  }
 0x12c   :  { %s218_s20 = sshll.u32 %s5369_s7, 4  ;;  %s228_s30 = sshll.u32 %s5370_s2, 4  ;;  %s219_s20 = int_to_ptr.vmem [resolvable:$true] %s218_s20  ;;  %s229_s30 = int_to_ptr.vmem [resolvable:$true] %s228_s30 }
 0x12d   :  { %s5261_s5 = scalar_lea.hbm %s7266_s16, 16 }
 0x12e   :  { %p5262_p2 = scmp.ne.s32.totalorder %s7266_s16, %s5261_s5  ;;  %p5265_p3 = scmp.lt.u32.totalorder %s5261_s5, %s7266_s16 }
 0x130   :  { %p5267_p4 = pnand %p5265_p3, %p5262_p2 }
 0x132   :  { %5270 = shalt.err (!%p5267_p4)
}
 0x133   :  { %s5271_s14 = scalar_lea.vmem %s219_s20, 16  ;;  %s5275_s13 = scalar_lea.vmem %s219_s20, 32 }
 0x134   :  { %p5272_p5 = scmp.ne.s32.totalorder %s219_s20, %s5271_s14  ;;  %p5276_p6 = scmp.lt.s32.totalorder %s219_s20, %s219_s20 }
 0x135   :  { %p5277_p7 = scmp.lt.s32.totalorder %s5275_s13, %s5271_s14 }
 0x137   :  { %p5278_p8 = por %p5277_p7, %p5276_p6 }
 0x139   :  { %p5279_p9 = pnand %p5278_p8, %p5272_p5 }
 0x13b   :  { %5282 = shalt.err (!%p5279_p9)
}
 0x13c   :  { %221 = dma.hbm_to_vmem [thread:$0]  %s7266_s16, 16, %s219_s20, [#allocation27]  }
 0x13d   :  { %s5283_s1 = scalar_lea.hbm %s7267_s17, 16 }
 0x13e   :  { %p5284_p10 = scmp.ne.s32.totalorder %s7267_s17, %s5283_s1  ;;  %p5287_p11 = scmp.lt.u32.totalorder %s5283_s1, %s7267_s17 }
 0x140   :  { %p5289_p12 = pnand %p5287_p11, %p5284_p10 }
 0x142   :  { %5292 = shalt.err (!%p5289_p12)
}
 0x143   :  { %s5293_s22 = scalar_lea.vmem %s229_s30, 16  ;;  %s5297_s29 = scalar_lea.vmem %s229_s30, 32 }
 0x144   :  { %p5294_p13 = scmp.ne.s32.totalorder %s229_s30, %s5293_s22  ;;  %p5298_p0 = scmp.lt.s32.totalorder %s229_s30, %s229_s30 }
 0x145   :  { %p5299_p1 = scmp.lt.s32.totalorder %s5297_s29, %s5293_s22 }
 0x147   :  { %p5300_p2 = por %p5299_p1, %p5298_p0 }
 0x149   :  { %p5301_p3 = pnand %p5300_p2, %p5294_p13 }
 0x14b   :  { %5304 = shalt.err (!%p5301_p3)
}
 0x14c   :  { %231 = dma.hbm_to_vmem [thread:$0]  %s7267_s17, 16, %s229_s30, [#allocation30]  }
 0x14d   :  { %5327 = dma.done.wait [#allocation3], 256  }
 0x14e   :  { %5328 = vsyncadd [#allocation3], 4294967040 }
 0x14f   :  { %5329 = dma.done.wait [#allocation6], 1024  }
 0x150   :  { %5330 = vsyncadd [#allocation6], 4294966272 }
 0x151   :  { %5331 = dma.done.wait [#allocation9], 2112  }
 0x152   :  { %5332 = vsyncadd [#allocation9], 4294965184 }
 0x153   :  { %5333 = dma.done.wait [#allocation12], 32  }
 0x154   :  { %5334 = vsyncadd [#allocation12], 4294967264 }
 0x155   :  { %5335 = dma.done.wait [#allocation15], 32  }
 0x156   :  { %5336 = vsyncadd [#allocation15], 4294967264 }
 0x157   :  { %5337 = dma.done.wait [#allocation18], 528  }
 0x158   :  { %5338 = vsyncadd [#allocation18], 4294966768 }
 0x159   :  { %5339 = dma.done.wait [#allocation21], 528  }
 0x15a   :  { %5340 = vsyncadd [#allocation21], 4294966768 }
 0x15b   :  { %5341 = dma.done.wait [#allocation24], 528  }
 0x15c   :  { %5342 = vsyncadd [#allocation24], 4294966768 }
 0x15d   :  { %5343 = dma.done.wait [#allocation27], 528  }
 0x15e   :  { %5344 = vsyncadd [#allocation27], 4294966768 }
 0x15f   :  { %5345 = dma.done.wait [#allocation30], 16  }
 0x160   :  { %5346 = vsyncadd [#allocation30], 4294967280  ;;  %vm298_vm0 = vcmask 261120   ;;  %v288_v0 = vld [vmem:[#allocation5] sm:$0xff]  ;;  %v290_v1 = vld [vmem:[#allocation5 + $0x10] sm:$0xff]  ;;  %vm5372_vm1 = vmmov 0  }
 0x161   :  { %v289_v2 = vld [vmem:[#allocation5 + $0x8] sm:$0xff]  ;;  %v344_v3 = vsel %vm298_vm0, %v288_v0, 0.0  ;;  %v350_v4 = vsel %vm298_vm0, %v290_v1, 0.0  ;;  %v291_v5 = vld [vmem:[#allocation5 + $0x18] sm:$0xff]  ;;  %v286_v8 = vld [vmem:[#allocation2] sm:$0xff]  ;;  %vm1724_vm2 = vcmask 64512  }
 0x162   :  { %345 = vadd.xlane.f32.xlu0 %v344_v3  ;;  %351 = vadd.xlane.f32.xlu1 %v350_v4  ;;  %v347_v6 = vsel %vm298_vm0, %v289_v2, 0.0  ;;  %v353_v7 = vsel %vm298_vm0, %v291_v5, 0.0  ;;  %v287_v9 = vld [vmem:[#allocation2 + $0x8] sm:$0xff]  ;;  %v299_v10 = vsel %vm298_vm0, %v286_v8, 0.0  ;;  %v5782_v40 = vld [vmem:[#allocation7] sm:$0xff]  ;;  %v5788_v44 = vld [vmem:[#allocation7 + $0x8] sm:$0xff] }
 0x163   :  { %v302_v11 = vsel %vm298_vm0, %v287_v9, 0.0  ;;  %v416_v43 = vsel %vm298_vm0, %v5782_v40, 0.0  ;;  %v5790_v45 = vld [vmem:[#allocation7 + $0x10] sm:$0xff]  ;;  %v419_v46 = vsel %vm298_vm0, %v5788_v44, 0.0  ;;  %v5796_v48 = vld [vmem:[#allocation7 + $0x18] sm:$0xff]  ;;  %v573_v54 = vld [vmem:[#allocation20 + $0x18] sm:$0xff] }
 0x164   :  { %v422_v47 = vsel %vm298_vm0, %v5790_v45, 0.0  ;;  %v425_v49 = vsel %vm298_vm0, %v5796_v48, 0.0  ;;  %v570_v50 = vld [vmem:[#allocation20] sm:$0xff]  ;;  %v571_v51 = vld [vmem:[#allocation20 + $0x8] sm:$0xff]  ;;  %v572_v53 = vld [vmem:[#allocation20 + $0x10] sm:$0xff]  ;;  %s5374_s17 = smov 112  }
 0x165   :  { %v4675_v52 = vpack.c.bf16 %v571_v51, %v570_v50  ;;  %v4679_v55 = vpack.c.bf16 %v573_v54, %v572_v53  ;;  %v476_v56 = vld [vmem:[#allocation17] sm:$0xff]  ;;  %v477_v57 = vld [vmem:[#allocation17 + $0x8] sm:$0xff]  ;;  %v478_v59 = vld [vmem:[#allocation17 + $0x10] sm:$0xff]  ;;  %s5375_s12 = smov 120   ;;  %s5376_s15 = smov 104   ;;  %vm2136_vm4 = vcmask 130112  }
 0x166   :  { %348 = vadd.xlane.f32.xlu0 %v347_v6  ;;  %354 = vadd.xlane.f32.xlu1 %v353_v7  ;;  %v4667_v58 = vpack.c.bf16 %v477_v57, %v476_v56  ;;  %v479_v60 = vld [vmem:[#allocation17 + $0x18] sm:$0xff]  ;;  %vm5880_vm3 = vmpackc.low %vm1724_vm2, %vm1724_vm2  ;;  %vm2201_vm5 = vcmask 1041409   ;;  %vm2203_vm6 = vcmask 1042434   ;;  %vm2205_vm7 = vcmask 1043459   ;;  %s5378_s7 = smov 16   ;;  %s5379_s20 = smov 24  }
 0x167   :  { %4676 = vmatprep.subr.bf16.mxu1 %v4675_v52  ;;  %v4671_v61 = vpack.c.bf16 %v479_v60, %v478_v59  ;;  %v4372_v53 = vld [vmem:[#allocation11] ss:$0 sm:$0xff]  ;;  %v4373_v57 = vld [vmem:[#allocation13] ss:$0 sm:$0xff]  ;;  %vm2207_vm8 = vcmask 1044484   ;;  %vm2209_vm9 = vcmask 1045509  }
 0x168   :  { %4678 = vmatpush3.bf16.msra.mxu1 %v4675_v52  ;;  %4668 = vmatprep.subr.bf16.mxu0 %v4667_v58  ;;  %vm2211_vm10 = vcmask 1046534   ;;  %vm2213_vm11 = vcmask 1047559   ;;  %vm3516_vm14 = vcmask 130048   ;;  %vm4225_vm15 = vcmask 195584   ;;  %s5381_s2 = smov 96   ;;  %s5382_s30 = smov [#allocation31]  }
 0x169   :  { %4680 = vmatprep.subr.bf16.mxu1 %v4679_v55  ;;  %4670 = vmatpush3.bf16.msra.mxu0 %v4667_v58  ;;  %s4354_s23 = sshll.u32 %s5382_s30, 4  ;;  %s4355_s23 = int_to_ptr.vmem [resolvable:$true] %s4354_s23 }
 0x16a   :  { %300 = vadd.xlane.f32.xlu0 %v299_v10  ;;  %303 = vadd.xlane.f32.xlu1 %v302_v11  ;;  %s5305_s26 = scalar_lea.vmem %s4355_s23, 64  ;;  %p5310_p5 = scmp.lt.s32.totalorder %s4355_s23, %s4355_s23 }
 0x16b   :  { %4672 = vmatprep.subr.bf16.mxu0 %v4671_v61  ;;  %p5306_p4 = scmp.ne.s32.totalorder %s4355_s23, %s5305_s26  ;;  %p5311_p6 = scmp.lt.s32.totalorder %s5305_s26, %s5305_s26 }
 0x16c   :  { %4682 = vmatpush3.bf16.msra.mxu1 %v4679_v55 }
 0x16d   :  { %4674 = vmatpush3.bf16.msra.mxu0 %v4671_v61  ;;  %p5312_p7 = por %p5311_p6, %p5310_p5 }
 0x16f   :  { %p5313_p8 = pnand %p5312_p7, %p5306_p4 }
 0x1ef   :  { %v346_v12 = vpop.xlane.xlu0 %345  ;;  %v352_v13 = vpop.xlane.xlu1 %351 }
 0x1f0   :  { %v356_v14 = vmul.f32 0.03125, %v346_v12  ;;  %v358_v15 = vmul.f32 0.03125, %v352_v13 }
 0x1f2   :  { %v5754_v16 = vsub.f32 %v288_v0, %v356_v14  ;;  %v5756_v17 = vsub.f32 %v290_v1, %v358_v15 }
 0x1f3   :  { %v349_v18 = vpop.xlane.xlu0 %348  ;;  %v355_v19 = vpop.xlane.xlu1 %354 }
 0x1f4   :  { %v357_v20 = vmul.f32 0.03125, %v349_v18  ;;  %v359_v21 = vmul.f32 0.03125, %v355_v19  ;;  %v364_v22 = vmul.f32 %v5754_v16, %v5754_v16  ;;  %v366_v23 = vmul.f32 %v5756_v17, %v5756_v17 }
 0x1f6   :  { %v5762_v24 = vsub.f32 %v289_v2, %v357_v20  ;;  %v5764_v25 = vsub.f32 %v291_v5, %v359_v21  ;;  %v368_v26 = vsel %vm298_vm0, %v364_v22, 0.0  ;;  %v374_v29 = vsel %vm298_vm0, %v366_v23, 0.0  ;;  %v5800_v21 = vld [vmem:[#allocation14] ss:$0 sm:$0xff] }
 0x1f7   :  { %369 = vadd.xlane.f32.xlu0 %v368_v26  ;;  %v301_v27 = vpop.xlane.xlu0 %300  ;;  %v304_v28 = vpop.xlane.xlu1 %303 }
 0x1f8   :  { %v306_v30 = vmul.f32 0.03125, %v301_v27  ;;  %v365_v31 = vmul.f32 %v5762_v24, %v5762_v24  ;;  %v307_v32 = vmul.f32 0.03125, %v304_v28  ;;  %v367_v33 = vmul.f32 %v5764_v25, %v5764_v25  ;;  %v5806_v28 = vld [vmem:[#allocation16] ss:$0 sm:$0xff] }
 0x1fa   :  { %v5772_v34 = vsub.f32 %v286_v8, %v306_v30  ;;  %v371_v35 = vsel %vm298_vm0, %v365_v31, 0.0  ;;  %v5775_v36 = vsub.f32 %v287_v9, %v307_v32  ;;  %v377_v37 = vsel %vm298_vm0, %v367_v33, 0.0 }
 0x1fb   :  { %372 = vadd.xlane.f32.xlu1 %v371_v35  ;;  %375 = vadd.xlane.f32.xlu0 %v374_v29 }
 0x1fc   :  { %v310_v38 = vmul.f32 %v5772_v34, %v5772_v34  ;;  %v311_v39 = vmul.f32 %v5775_v36, %v5775_v36 }
 0x1fe   :  { %v312_v41 = vsel %vm298_vm0, %v310_v38, 0.0  ;;  %v315_v42 = vsel %vm298_vm0, %v311_v39, 0.0 }
 0x1ff   :  { %378 = vadd.xlane.f32.xlu1 %v377_v37  ;;  %313 = vadd.xlane.f32.xlu0 %v312_v41 }
 0x203   :  { %316 = vadd.xlane.f32.xlu1 %v315_v42  ;;  %417 = vadd.xlane.f32.xlu0 %v416_v43 }
 0x207   :  { %420 = vadd.xlane.f32.xlu1 %v419_v46  ;;  %423 = vadd.xlane.f32.xlu0 %v422_v47 }
 0x20b   :  { %426 = vadd.xlane.f32.xlu1 %v425_v49 }
 0x284   :  { %v370_v62 = vpop.xlane.xlu0 %369 }
 0x285   :  { %v380_v63 = vmul.f32 0.03125, %v370_v62 }
 0x287   :  { %v384_v0 = vadd.f32 1e-05, %v380_v63 }
 0x288   :  { %v373_v1 = vpop.xlane.xlu1 %372  ;;  %v376_v2 = vpop.xlane.xlu0 %375 }
 0x289   :  { %4849 = vrsqrt.f32 %v384_v0  ;;  %v381_v3 = vmul.f32 0.03125, %v373_v1  ;;  %v382_v4 = vmul.f32 0.03125, %v376_v2  ;;  %v678_v1 = vld [vmem:[#allocation23] sm:$0xff]  ;;  %v679_v2 = vld [vmem:[#allocation23 + $0x8] sm:$0xff] }
 0x28b   :  { %v385_v5 = vadd.f32 1e-05, %v381_v3  ;;  %v386_v6 = vadd.f32 1e-05, %v382_v4  ;;  %v680_v3 = vld [vmem:[#allocation23 + $0x10] sm:$0xff]  ;;  %v4683_v4 = vpack.c.bf16 %v679_v2, %v678_v1 }
 0x28c   :  { %v379_v7 = vpop.xlane.xlu1 %378  ;;  %v314_v8 = vpop.xlane.xlu0 %313 }
 0x28d   :  { %4851 = vrsqrt.f32 %v385_v5  ;;  %v383_v9 = vmul.f32 0.03125, %v379_v7  ;;  %v318_v10 = vmul.f32 0.03125, %v314_v8  ;;  %v681_v5 = vld [vmem:[#allocation23 + $0x18] sm:$0xff]  ;;  %4684 = vmatprep.subr.bf16.mxu0 %v4683_v4  ;;  %v5373_v7 = vmov 0.0  }
 0x28e   :  { %4853 = vrsqrt.f32 %v386_v6  ;;  %v4687_v6 = vpack.c.bf16 %v681_v5, %v680_v3  ;;  %v888_v8 = vlaneseq }
 0x28f   :  { %v387_v11 = vadd.f32 1e-05, %v383_v9  ;;  %v320_v12 = vadd.f32 1e-05, %v318_v10 }
 0x290   :  { %v317_v13 = vpop.xlane.xlu1 %316  ;;  %v418_v14 = vpop.xlane.xlu0 %417  ;;  %v5852_v9 = vshrl.u32 %v888_v8, 7  ;;  %v2126_v10 = vand.u32 127, %v888_v8 }
 0x291   :  { %4855 = vrsqrt.f32 %v387_v11  ;;  %v319_v15 = vmul.f32 0.03125, %v317_v13  ;;  %v428_v18 = vmul.f32 0.03125, %v418_v14 }
 0x292   :  { %4857 = vrsqrt.f32 %v320_v12  ;;  %v5855_v11 = vsub.s32 %v2126_v10, %v5852_v9  ;;  %v2131_v12 = vadd.s32 4294967288, %v2126_v10 }
 0x293   :  { %v4850_v19 = vpop.eup %4849  ;;  %v321_v20 = vadd.f32 1e-05, %v319_v15  ;;  %v5803_v22 = vsub.f32 %v5782_v40, %v428_v18 }
 0x294   :  { %v392_v23 = vmul.f32 %v4850_v19, %v5754_v16  ;;  %v421_v26 = vpop.xlane.xlu1 %420  ;;  %v424_v27 = vpop.xlane.xlu0 %423  ;;  %v5858_v13 = vsub.s32 %v2131_v12, %v5852_v9 }
 0x295   :  { %4859 = vrsqrt.f32 %v321_v20  ;;  %v429_v29 = vmul.f32 0.03125, %v421_v26  ;;  %v430_v30 = vmul.f32 0.03125, %v424_v27  ;;  %v436_v31 = vmul.f32 %v5803_v22, %v5803_v22 }
 0x296   :  { %v402_v32 = vmul.f32 %v5800_v21, %v392_v23 }
 0x297   :  { %v4852_v33 = vpop.eup %4851  ;;  %v5812_v35 = vsub.f32 %v5788_v44, %v429_v29  ;;  %v5815_v37 = vsub.f32 %v5790_v45, %v430_v30  ;;  %v440_v16 = vsel %vm298_vm0, %v436_v31, 0.0 }
 0x298   :  { %v4854_v38 = vpop.eup %4853  ;;  %v412_v39 = vadd.f32 %v5806_v28, %v402_v32  ;;  %v393_v40 = vmul.f32 %v4852_v33, %v5762_v24  ;;  %v427_v41 = vpop.xlane.xlu1 %426  ;;  %441 = vadd.xlane.f32.xlu0 %v440_v16 }
 0x299   :  { %v394_v42 = vmul.f32 %v4854_v38, %v5756_v17  ;;  %v431_v43 = vmul.f32 0.03125, %v427_v41  ;;  %v437_v46 = vmul.f32 %v5812_v35, %v5812_v35  ;;  %v438_v44 = vmul.f32 %v5815_v37, %v5815_v37 }
 0x29a   :  { %4524 = vmatprep.mubr.msk.f32.mxu1 %vm298_vm0, %v412_v39  ;;  %v403_v45 = vmul.f32 %v5800_v21, %v393_v40 }
 0x29b   :  { %v4856_v47 = vpop.eup %4855  ;;  %v404_v49 = vmul.f32 %v5800_v21, %v394_v42  ;;  %v5829_v24 = vsub.f32 %v5796_v48, %v431_v43  ;;  %v443_v50 = vsel %vm298_vm0, %v437_v46, 0.0  ;;  %v446_v17 = vsel %vm298_vm0, %v438_v44, 0.0 }
 0x29c   :  { %v4858_v51 = vpop.eup %4857  ;;  %v413_v52 = vadd.f32 %v5806_v28, %v403_v45  ;;  %v395_v54 = vmul.f32 %v4856_v47, %v5764_v25  ;;  %444 = vadd.xlane.f32.xlu1 %v443_v50  ;;  %447 = vadd.xlane.f32.xlu0 %v446_v17  ;;  %v4379_v50 = vld [vmem:[#allocation22] ss:$0 sm:$0xff] }
 0x29d   :  { %v414_v55 = vadd.f32 %v5806_v28, %v404_v49  ;;  %v324_v56 = vmul.f32 %v4858_v51, %v5772_v34  ;;  %v439_v48 = vmul.f32 %v5829_v24, %v5829_v24 }
 0x29e   :  { %4525 = vmatmul.mubr.msk.f32.vlgmr.msra.gmra.mrb[0].mxu1 %vm298_vm0, %v413_v52  ;;  %v405_v58 = vmul.f32 %v5800_v21, %v395_v54 }
 0x29f   :  { %v4860_v59 = vpop.eup %4859  ;;  %4527 = vmatprep.mubr.msk.f32.mxu1 %vm298_vm0, %v414_v55  ;;  %v332_v60 = vmul.f32 %v4372_v53, %v324_v56  ;;  %v449_v25 = vsel %vm298_vm0, %v439_v48, 0.0 }
 0x2a0   :  { %v325_v61 = vmul.f32 %v4860_v59, %v5775_v36  ;;  %v415_v62 = vadd.f32 %v5806_v28, %v405_v58  ;;  %450 = vadd.xlane.f32.xlu1 %v449_v25  ;;  %v5371_v36 = vmov 0.0|0.0  }
 0x2a1   :  { %v340_v34 = vadd.f32 %v4373_v57, %v332_v60  ;;  %4691 = vmatprep.subr.bf16.mxu1 %v5371_v36 }
 0x2a2   :  { %v333_v63 = vmul.f32 %v4372_v53, %v325_v61  ;;  %4528 = vmatmul.mubr.msk.f32.gmra.mrb[2].mxu1 %vm298_vm0, %v415_v62 }
 0x2a3   :  { %4513 = vmatprep.mubr.msk.f32.mxu0 %vm298_vm0, %v340_v34  ;;  %4548 = vmatprep.mubr.msk.f32.mxu1 %vm5372_vm1, %v5373_v7 }
 0x2a4   :  { %v341_v0 = vadd.f32 %v4373_v57, %v333_v63  ;;  %v4376_v57 = vld [vmem:[#allocation19] ss:$0 sm:$0xff] }
 0x2a6   :  { %4514 = vmatmul.mubr.msk.f32.vlgmr.msra.gmra.mrb[0].mxu0 %vm298_vm0, %v341_v0  ;;  %v5377_v0 = vmov 1966171168  }
 0x2a7   :  { %4686 = vmatpush3.bf16.msra.mxu0 %v4683_v4  ;;  %v886_v1 = vunpack.c.l.s4 %v5377_v0 }
 0x2a8   :  { %4688 = vmatprep.subr.bf16.mxu0 %v4687_v6 }
 0x2a9   :  { %v887_v2 = vunpack.c.0.s8 %v886_v1 }
 0x2ab   :  { %4690 = vmatpush3.bf16.msra.mxu0 %v4687_v6  ;;  %v5915_v3 = vsub.s32 %v887_v2, %v5852_v9  ;;  %v5920_v6 = vsub.s32 0, %v5852_v9 }
 0x2ac   :  { %4695 = vmatprep.subr.bf16.mxu0 %v5371_v36 }
 0x325   :  { %v442_v14 = vpop.xlane.xlu0 %441 }
 0x326   :  { %v452_v15 = vmul.f32 0.03125, %v442_v14 }
 0x328   :  { %v456_v18 = vadd.f32 1e-05, %v452_v15  ;;  %v5926_v15 = vld [vmem:[#allocation10] sm:$0xff] }
 0x329   :  { %v445_v19 = vpop.xlane.xlu1 %444  ;;  %v448_v20 = vpop.xlane.xlu0 %447 }
 0x32a   :  { %4861 = vrsqrt.f32 %v456_v18  ;;  %v453_v23 = vmul.f32 0.03125, %v445_v19  ;;  %v454_v26 = vmul.f32 0.03125, %v448_v20 }
 0x32c   :  { %v457_v27 = vadd.f32 1e-05, %v453_v23  ;;  %v458_v29 = vadd.f32 1e-05, %v454_v26 }
 0x32d   :  { %v451_v30 = vpop.xlane.xlu1 %450 }
 0x32e   :  { %4863 = vrsqrt.f32 %v457_v27  ;;  %v455_v31 = vmul.f32 0.03125, %v451_v30 }
 0x32f   :  { %4865 = vrsqrt.f32 %v458_v29 }
 0x330   :  { %v459_v32 = vadd.f32 1e-05, %v455_v31  ;;  %v5935_v31 = vld [vmem:[#allocation10 + $0x10] sm:$0xff] }
 0x332   :  { %4867 = vrsqrt.f32 %v459_v32 }
 0x334   :  { %v4862_v33 = vpop.eup %4861 }
 0x335   :  { %v464_v16 = vmul.f32 %v4862_v33, %v5803_v22 }
 0x337   :  { %v468_v38 = vmul.f32 %v5800_v21, %v464_v16 }
 0x338   :  { %v4864_v39 = vpop.eup %4863 }
 0x339   :  { %v4866_v40 = vpop.eup %4865  ;;  %v465_v41 = vmul.f32 %v4864_v39, %v5812_v35  ;;  %v472_v42 = vadd.f32 %v5806_v28, %v468_v38 }
 0x33a   :  { %v466_v43 = vmul.f32 %v4866_v40, %v5815_v37  ;;  %v5943_v40 = vld [vmem:[#allocation10 + $0x20] sm:$0xff] }
 0x33b   :  { %4538 = vmatprep.mubr.msk.f32.mxu0 %vm298_vm0, %v472_v42  ;;  %v469_v46 = vmul.f32 %v5800_v21, %v465_v41 }
 0x33c   :  { %v4868_v44 = vpop.eup %4867  ;;  %v470_v45 = vmul.f32 %v5800_v21, %v466_v43  ;;  %v5947_v43 = vld [vmem:[#allocation10 + $0x8] sm:$0xff] }
 0x33d   :  { %v473_v47 = vadd.f32 %v5806_v28, %v469_v46  ;;  %v467_v22 = vmul.f32 %v4868_v44, %v5829_v24 }
 0x33e   :  { %v474_v49 = vadd.f32 %v5806_v28, %v470_v45  ;;  %v5954_v45 = vld [vmem:[#allocation10 + $0x40] sm:$0xff] }
 0x33f   :  { %4539 = vmatmul.mubr.msk.f32.vlgmr.msra.gmra.mrb[2].mxu0 %vm298_vm0, %v473_v47  ;;  %v471_v35 = vmul.f32 %v5800_v21, %v467_v22 }
 0x340   :  { %4541 = vmatprep.mubr.msk.f32.mxu0 %vm298_vm0, %v474_v49 }
 0x341   :  { %v475_v37 = vadd.f32 %v5806_v28, %v471_v35 }
 0x343   :  { %4542 = vmatmul.mubr.msk.f32.gmra.mrb[4].mxu0 %vm298_vm0, %v475_v37 }
 0x344   :  { %4555 = vmatprep.mubr.msk.f32.mxu0 %vm5372_vm1, %v5373_v7 }
 0x371   :  { %v4526_v17 = vpop.f32.mrb[0].mxu1 }
 0x372   :  { %v665_v51 = vadd.f32 %v4526_v17, %v4379_v50  ;;  %v659_v24 = vpop.f32.mrb[1].mxu1 }
 0x373   :  { %v660_v52 = vadd.f32 %v4379_v50, %v659_v24 }
 0x375   :  { %v4692_v21 = vpack.c.bf16 %v665_v51, %v660_v52  ;;  %v4529_v54 = vpop.f32.mrb[2].mxu1  ;;  %v4794_v28 = vpack.i.bf16 %v665_v51, %v660_v52  ;;  %v5967_v52 = vld [vmem:[#allocation10 + $0x18] sm:$0xff] }
 0x376   :  { %v675_v55 = vadd.f32 %v4529_v54, %v4379_v50  ;;  %v669_v56 = vpop.f32.mrb[3].mxu1 }
 0x377   :  { %v670_v48 = vadd.f32 %v4379_v50, %v669_v56  ;;  %4795 = vrot.lane.b32.xlu1 %v4794_v28, %s5374_s17  ;;  %4694 = vmatpush3.bf16.xpose.msk.msra.mxu1 %vm5880_vm3, %v4692_v21 }
 0x378   :  { %4790 = vrot.lane.b32.xlu0 %v4794_v28, %s5375_s12  ;;  %4699 = vmatprep.subr.bf16.mxu1 %v5371_v36 }
 0x379   :  { %v4696_v58 = vpack.c.bf16 %v675_v55, %v670_v48  ;;  %v4515_v59 = vpop.f32.mrb[0].mxu0  ;;  %v4804_v60 = vpack.i.bf16 %v675_v55, %v670_v48 }
 0x37a   :  { %v565_v25 = vadd.f32 %v4515_v59, %v4376_v57  ;;  %v559_v61 = vpop.f32.mrb[1].mxu0 }
 0x37b   :  { %v560_v62 = vadd.f32 %v4376_v57, %v559_v61  ;;  %4698 = vmatpush3.bf16.xpose.msk.msra.mxu0 %vm5880_vm3, %v4696_v58  ;;  %v5974_v57 = vld [vmem:[#allocation10 + $0x28] sm:$0xff] }
 0x37c   :  { %v569_v34 = vmul.f32 0.35355338, %v565_v25  ;;  %4800 = vrot.lane.b32.xlu0 %v4794_v28, %s5376_s15  ;;  %4703 = vmatprep.subr.bf16.mxu0 %v5371_v36 }
 0x37d   :  { %v5893_v63 = vmul.f32 0.35355338, %v560_v62 }
 0x37e   :  { %790 = vrot.lane.b32.xlu1 %v569_v34, %s5375_s12  ;;  %v940_v4 = vrot.slane %v569_v34, %v5915_v3  ;;  %v933_v18 = vcombine.high %v569_v34, %v569_v34 }
 0x37f   :  { %4549 = vmatmul.mubr.msk.f32.vlgmr.msra.gmra.mrb[4].mxu1 %vm1724_vm2, %v5893_v63  ;;  %v891_v8 = vrot.slane %v5893_v63, %v5915_v3  ;;  %v884_v37 = vcombine.high %v5893_v63, %v5893_v63 }
 0x380   :  { %788 = vrot.lane.b32.xlu0 %v5893_v63, %s5375_s12  ;;  %4562 = vmatprep.mubr.msk.f32.mxu1 %vm5372_vm1, %v5373_v7  ;;  %v956_v5 = vrot.slane %v940_v4, %v5915_v3  ;;  %v948_v14 = vcombine.high %v940_v4, %v940_v4  ;;  %v947_v9 = vrot.slane %v933_v18, %v5915_v3 }
 0x381   :  { %v907_v12 = vrot.slane %v891_v8, %v5915_v3  ;;  %v899_v32 = vcombine.high %v891_v8, %v891_v8  ;;  %v898_v54 = vrot.slane %v884_v37, %v5915_v3 }
 0x382   :  { %794 = vrot.lane.b32.xlu1 %v569_v34, %s5374_s17  ;;  %4556 = vmatmul.mubr.msk.f32.vlgmr.msra.gmra.mrb[6].mxu0 %vm1724_vm2, %v569_v34  ;;  %v1311_v10 = vrot.slane %v956_v5, %v5920_v6  ;;  %v970_v23 = vrot.slane %v948_v14, %v5915_v3  ;;  %v978_v30 = vcombine.high %v956_v5, %v956_v5  ;;  %v5994_v14 = vld [vmem:[#allocation10 + $0x30] sm:$0xff] }
 0x383   :  { %4569 = vmatprep.mubr.msk.f32.mxu0 %vm5372_vm1, %v5373_v7  ;;  %v1279_v20 = vrot.slane %v907_v12, %v5920_v6  ;;  %v5941_v39 = vrot.slane %v947_v9, %v5915_v3  ;;  %v5952_v44 = vrot.slane %v899_v32, %v5915_v3  ;;  %v929_v21 = vcombine.high %v907_v12, %v907_v12 }
 0x384   :  { %792 = vrot.lane.b32.xlu0 %v5893_v63, %s5374_s17  ;;  %v1612_v19 = vmul.f32 %v1311_v10, %v5926_v15  ;;  %v1315_v29 = vrot.slane %v970_v23, %v5920_v6  ;;  %v1319_v38 = vrot.slane %v978_v30, %v5920_v6  ;;  %v1613_v47 = vmul.f32 %v1311_v10, %v5947_v43 }
 0x385   :  { %v1596_v27 = vmul.f32 %v1279_v20, %v5926_v15  ;;  %v1327_v46 = vrot.slane %v5941_v39, %v5920_v6  ;;  %v1283_v35 = vrot.slane %v5952_v44, %v5920_v6  ;;  %v1597_v17 = vmul.f32 %v1279_v20, %v5947_v43 }
 0x386   :  { %798 = vrot.lane.b32.xlu1 %v569_v34, %s5376_s15  ;;  %v1773_v26 = vsel %vm1724_vm2, %v1612_v19, 0.0  ;;  %v1614_v16 = vmul.f32 %v1315_v29, %v5935_v31  ;;  %v1616_v42 = vmul.f32 %v1319_v38, %v5943_v40  ;;  %v1776_v50 = vsel %vm1724_vm2, %v1613_v47, 0.0  ;;  %v5984_v34 = vld [vmem:[#allocation10 + $0x48] sm:$0xff] }
 0x387   :  { %v1725_v33 = vsel %vm1724_vm2, %v1596_v27, 0.0  ;;  %v1620_v49 = vmul.f32 %v1327_v46, %v5954_v45  ;;  %v1598_v24 = vmul.f32 %v1283_v35, %v5935_v31  ;;  %v1728_v28 = vsel %vm1724_vm2, %v1597_v17, 0.0  ;;  %v6003_v27 = vld [vmem:[#allocation10 + $0x50] sm:$0xff] }
 0x388   :  { %796 = vrot.lane.b32.xlu0 %v5893_v63, %s5376_s15  ;;  %v1779_v41 = vsel %vm1724_vm2, %v1614_v16, 0.0  ;;  %v1785_v22 = vsel %vm1724_vm2, %v1616_v42, 0.0  ;;  %v1615_v55 = vmul.f32 %v1315_v29, %v5967_v52  ;;  %v1599_v56 = vmul.f32 %v1283_v35, %v5967_v52  ;;  %v6014_v42 = vld [vmem:[#allocation10 + $0x60] sm:$0xff] }
 0x389   :  { %v1797_v51 = vsel %vm1724_vm2, %v1620_v49, 0.0  ;;  %v1731_v48 = vsel %vm1724_vm2, %v1598_v24, 0.0  ;;  %v1287_v58 = vrot.slane %v929_v21, %v5920_v6  ;;  %v5978_v59 = vrot.slane %v898_v54, %v5915_v3  ;;  %v6020_v49 = vld [vmem:[#allocation10 + $0x58] sm:$0xff]  ;;  %v6028_v21 = vld [vmem:[#allocation10 + $0x68] sm:$0xff] }
 0x38a   :  { %4805 = vrot.lane.b32.xlu1 %v4804_v60, %s5375_s12  ;;  %v1734_v25 = vsel %vm1724_vm2, %v1599_v56, 0.0  ;;  %v1617_v61 = vmul.f32 %v1319_v38, %v5974_v57  ;;  %v980_v0 = vcombine.high %v970_v23, %v970_v23  ;;  %v949_v1 = vcombine.high %v947_v9, %v947_v9  ;;  %v6011_v38 = vld [vmem:[#allocation10 + $0x38] sm:$0xff] }
 0x38b   :  { %v1600_v62 = vmul.f32 %v1287_v58, %v5943_v40  ;;  %v1295_v63 = vrot.slane %v5978_v59, %v5920_v6  ;;  %v1621_v4 = vmul.f32 %v1327_v46, %v5984_v34  ;;  %v1601_v19 = vmul.f32 %v1287_v58, %v5974_v57 }
 0x38c   :  { %v1788_v2 = vsel %vm1724_vm2, %v1617_v61, 0.0  ;;  %v1323_v10 = vrot.slane %v980_v0, %v5920_v6  ;;  %v977_v12 = vrot.slane %v949_v1, %v5915_v3  ;;  %v931_v32 = vcombine.high %v5952_v44, %v5952_v44 }
 0x38d   :  { %v1737_v5 = vsel %vm1724_vm2, %v1600_v62, 0.0  ;;  %v1604_v8 = vmul.f32 %v1295_v63, %v5954_v45  ;;  %v1800_v18 = vsel %vm1724_vm2, %v1621_v4, 0.0  ;;  %v1740_v29 = vsel %vm1724_vm2, %v1601_v19, 0.0 }
 0x38e   :  { %4810 = vrot.lane.b32.xlu1 %v4804_v60, %s5374_s17  ;;  %v1618_v23 = vmul.f32 %v1323_v10, %v5994_v14  ;;  %v1331_v9 = vrot.slane %v977_v12, %v5920_v6  ;;  %v1605_v30 = vmul.f32 %v1295_v63, %v5984_v34  ;;  %v1619_v47 = vmul.f32 %v1323_v10, %v6011_v38 }
 0x38f   :  { %v1749_v20 = vsel %vm1724_vm2, %v1604_v8, 0.0  ;;  %v1291_v35 = vrot.slane %v931_v32, %v5920_v6 }
 0x390   :  { %v1622_v16 = vmul.f32 %v1331_v9, %v6003_v27  ;;  %v1752_v46 = vsel %vm1724_vm2, %v1605_v30, 0.0  ;;  %v1623_v17 = vmul.f32 %v1331_v9, %v6020_v49  ;;  %v883_v9 = vld [vmem:[#allocation10 + $0x78] sm:$0xff] }
 0x391   :  { %v1602_v24 = vmul.f32 %v1291_v35, %v5994_v14  ;;  %v1603_v62 = vmul.f32 %v1291_v35, %v6011_v38 }
 0x392   :  { %4815 = vrot.lane.b32.xlu1 %v4804_v60, %s5376_s15  ;;  %v1782_v60 = vsel %vm1724_vm2, %v1615_v55, 0.0  ;;  %v1803_v44 = vsel %vm1724_vm2, %v1622_v16, 0.0  ;;  %v1806_v55 = vsel %vm1724_vm2, %v1623_v17, 0.0 }
 0x393   :  { %v1746_v4 = vsel %vm1724_vm2, %v1603_v62, 0.0 }
 0x3a7   :  { %1774 = vadd.xlane.f32.xlu0 %v1773_v26  ;;  %v979_v26 = vcombine.high %v5941_v39, %v5941_v39  ;;  %v900_v39 = vcombine.high %v898_v54, %v898_v54 }
 0x3a9   :  { %v928_v37 = vrot.slane %v900_v39, %v5915_v3 }
 0x3ab   :  { %1726 = vadd.xlane.f32.xlu0 %v1725_v33  ;;  %v1791_v33 = vsel %vm1724_vm2, %v1618_v23, 0.0  ;;  %v1299_v54 = vrot.slane %v928_v37, %v5920_v6  ;;  %v932_v1 = vcombine.high %v928_v37, %v928_v37 }
 0x3ad   :  { %v1606_v58 = vmul.f32 %v1299_v54, %v6003_v27 }
 0x3af   :  { %1780 = vadd.xlane.f32.xlu0 %v1779_v41  ;;  %v1335_v41 = vrot.slane %v979_v26, %v5920_v6 }
 0x3b1   :  { %v1625_v56 = vmul.f32 %v1335_v41, %v6028_v21 }
 0x3b3   :  { %1786 = vadd.xlane.f32.xlu0 %v1785_v22  ;;  %v1624_v22 = vmul.f32 %v1335_v41, %v6014_v42  ;;  %v1812_v61 = vsel %vm1724_vm2, %v1625_v56, 0.0 }
 0x3b6   :  { %1777 = vadd.xlane.f32.xlu1 %v1776_v50  ;;  %v1794_v50 = vsel %vm1724_vm2, %v1619_v47, 0.0 }
 0x3b7   :  { %1798 = vadd.xlane.f32.xlu0 %v1797_v51  ;;  %v1809_v51 = vsel %vm1724_vm2, %v1624_v22, 0.0 }
 0x3ba   :  { %1729 = vadd.xlane.f32.xlu1 %v1728_v28  ;;  %v930_v28 = vcombine.high %v5978_v59, %v5978_v59  ;;  %v1755_v59 = vsel %vm1724_vm2, %v1606_v58, 0.0 }
 0x3bb   :  { %1732 = vadd.xlane.f32.xlu0 %v1731_v48  ;;  %v1743_v48 = vsel %vm1724_vm2, %v1602_v24, 0.0 }
 0x3be   :  { %1783 = vadd.xlane.f32.xlu1 %v1782_v60  ;;  %v1303_v60 = vrot.slane %v930_v28, %v5920_v6 }
 0x3bf   :  { %1735 = vadd.xlane.f32.xlu0 %v1734_v25  ;;  %v981_v25 = vcombine.high %v977_v12, %v977_v12  ;;  %v1307_v12 = vrot.slane %v932_v1, %v5920_v6 }
 0x3c0   :  { %v1608_v63 = vmul.f32 %v1303_v60, %v6014_v42  ;;  %v1609_v19 = vmul.f32 %v1303_v60, %v6028_v21 }
 0x3c1   :  { %v1339_v0 = vrot.slane %v981_v25, %v5920_v6 }
 0x3c2   :  { %1789 = vadd.xlane.f32.xlu1 %v1788_v2  ;;  %v882_v2 = vld [vmem:[#allocation10 + $0x70] sm:$0xff]  ;;  %v1761_v8 = vsel %vm1724_vm2, %v1608_v63, 0.0  ;;  %v1764_v26 = vsel %vm1724_vm2, %v1609_v19, 0.0 }
 0x3c3   :  { %1738 = vadd.xlane.f32.xlu0 %v1737_v5  ;;  %v1607_v5 = vmul.f32 %v1299_v54, %v6020_v49  ;;  %v1626_v10 = vmul.f32 %v1339_v0, %v882_v2  ;;  %v1610_v23 = vmul.f32 %v1307_v12, %v882_v2 }
 0x3c5   :  { %v1767_v30 = vsel %vm1724_vm2, %v1610_v23, 0.0 }
 0x3c6   :  { %1801 = vadd.xlane.f32.xlu1 %v1800_v18  ;;  %v1758_v18 = vsel %vm1724_vm2, %v1607_v5, 0.0 }
 0x3c7   :  { %1750 = vadd.xlane.f32.xlu0 %v1749_v20  ;;  %v1815_v20 = vsel %vm1724_vm2, %v1626_v10, 0.0 }
 0x3ca   :  { %1741 = vadd.xlane.f32.xlu1 %v1740_v29  ;;  %v1627_v29 = vmul.f32 %v1339_v0, %v883_v9 }
 0x3cb   :  { %1792 = vadd.xlane.f32.xlu0 %v1791_v33  ;;  %v1611_v33 = vmul.f32 %v1307_v12, %v883_v9 }
 0x3cc   :  { %v1818_v32 = vsel %vm1724_vm2, %v1627_v29, 0.0 }
 0x3ce   :  { %1753 = vadd.xlane.f32.xlu1 %v1752_v46 }
 0x3cf   :  { %1804 = vadd.xlane.f32.xlu0 %v1803_v44  ;;  %v1770_v44 = vsel %vm1724_vm2, %v1611_v33, 0.0 }
 0x3d2   :  { %1795 = vadd.xlane.f32.xlu1 %v1794_v50 }
 0x3d3   :  { %1810 = vadd.xlane.f32.xlu0 %v1809_v51 }
 0x3d6   :  { %1807 = vadd.xlane.f32.xlu1 %v1806_v55 }
 0x3d7   :  { %1744 = vadd.xlane.f32.xlu0 %v1743_v48 }
 0x3da   :  { %1813 = vadd.xlane.f32.xlu1 %v1812_v61 }
 0x3db   :  { %1756 = vadd.xlane.f32.xlu0 %v1755_v59 }
 0x3de   :  { %1747 = vadd.xlane.f32.xlu1 %v1746_v4 }
 0x3df   :  { %1762 = vadd.xlane.f32.xlu0 %v1761_v8 }
 0x3e2   :  { %1759 = vadd.xlane.f32.xlu1 %v1758_v18 }
 0x3e3   :  { %1816 = vadd.xlane.f32.xlu0 %v1815_v20 }
 0x3e6   :  { %1765 = vadd.xlane.f32.xlu1 %v1764_v26 }
 0x3e7   :  { %1768 = vadd.xlane.f32.xlu0 %v1767_v30 }
 0x3e9   :  { %v4796_v46 = vpop.permute.xlu1 %4795 }
 0x3ea   :  { %v4791_v16 = vpop.permute.xlu0 %4790  ;;  %1819 = vadd.xlane.f32.xlu1 %v1818_v32  ;;  %v4798_v37 = vunpack.i.h.bf16 %v4796_v46  ;;  %v4797_v50 = vunpack.i.l.bf16 %v4796_v46 }
 0x3eb   :  { %v4793_v41 = vunpack.i.h.bf16 %v4791_v16  ;;  %v4792_v39 = vunpack.i.l.bf16 %v4791_v16 }
 0x3ec   :  { %v4708_v28 = vpack.c.bf16 %v4798_v37, %v4797_v50 }
 0x3ed   :  { %v4700_v47 = vpack.c.bf16 %v4793_v41, %v4792_v39 }
 0x3ee   :  { %v4801_v22 = vpop.permute.xlu0 %4800  ;;  %1771 = vadd.xlane.f32.xlu1 %v1770_v44 }
 0x3ef   :  { %4702 = vmatpush3.bf16.xpose.msk.msra.mxu1 %vm5880_vm3, %v4700_v47  ;;  %v4803_v59 = vunpack.i.h.bf16 %v4801_v22  ;;  %v4802_v63 = vunpack.i.l.bf16 %v4801_v22 }
 0x3f0   :  { %v6056_v35 = vpop.permute.xlu1 %790  ;;  %4707 = vmatprep.subr.bf16.mxu1 %v5371_v36 }
 0x3f1   :  { %v6061_v17 = vrot.slane %v6056_v35, %v5915_v3  ;;  %v4716_v23 = vpack.c.bf16 %v4803_v59, %v4802_v63  ;;  %v1031_v63 = vcombine.high %v6056_v35, %v6056_v35 }
 0x3f2   :  { %v6063_v51 = vpop.permute.xlu0 %788 }
 0x3f3   :  { %v6069_v54 = vrot.slane %v6061_v17, %v5915_v3  ;;  %v6073_v55 = vrot.slane %v6063_v51, %v5915_v3  ;;  %v1046_v22 = vcombine.high %v6061_v17, %v6061_v17 }
 0x3f4   :  { %v6065_v24 = vpop.permute.xlu1 %794 }
 0x3f5   :  { %v6077_v56 = vrot.slane %v6065_v24, %v5915_v3  ;;  %v1375_v58 = vrot.slane %v6069_v54, %v5920_v6  ;;  %v6104_v1 = vrot.slane %v6073_v55, %v5915_v3 }
 0x3f6   :  { %v6079_v48 = vpop.permute.xlu0 %792  ;;  %4563 = vmatmul.mubr.msk.f32.vlgmr.msra.gmra.mrb[6].mxu1 %vm1724_vm2, %v6063_v51 }
 0x3f7   :  { %4710 = vmatpush3.bf16.xpose.msk.msra.mxu1 %vm5880_vm3, %v4708_v28  ;;  %v1645_v25 = vmul.f32 %v1375_v58, %v5947_v43  ;;  %v1644_v61 = vmul.f32 %v1375_v58, %v5926_v15  ;;  %4576 = vmatprep.mubr.msk.f32.mxu1 %vm5372_vm1, %v5373_v7  ;;  %v6096_v62 = vrot.slane %v6077_v56, %v5915_v3 }
 0x3f8   :  { %v6087_v60 = vpop.permute.xlu1 %798  ;;  %4715 = vmatprep.subr.bf16.mxu1 %v5371_v36  ;;  %v6112_v8 = vrot.slane %v6079_v48, %v5915_v3  ;;  %v1343_v29 = vrot.slane %v6104_v1, %v5920_v6 }
 0x3f9   :  { %v6100_v0 = vrot.slane %v6087_v60, %v5915_v3  ;;  %v1872_v2 = vsel %vm1724_vm2, %v1645_v25, 0.0  ;;  %v1869_v4 = vsel %vm1724_vm2, %v1644_v61, 0.0  ;;  %v1439_v5 = vrot.slane %v6096_v62, %v5920_v6 }
 0x3fa   :  { %v6114_v10 = vpop.permute.xlu0 %796  ;;  %1873 = vadd.xlane.f32.xlu1 %v1872_v2  ;;  %1870 = vadd.xlane.f32.xlu0 %v1869_v4  ;;  %v6138_v39 = vrot.slane %v6112_v8, %v5915_v3  ;;  %v1629_v37 = vmul.f32 %v1343_v29, %v5947_v43  ;;  %v1628_v59 = vmul.f32 %v1343_v29, %v5926_v15 }
 0x3fb   :  { %v1677_v18 = vmul.f32 %v1439_v5, %v5947_v43  ;;  %v1676_v19 = vmul.f32 %v1439_v5, %v5926_v15  ;;  %v6120_v20 = vrot.slane %v6100_v0, %v5915_v3  ;;  %v6126_v30 = vrot.slane %v6114_v10, %v5915_v3 }
 0x3fc   :  { %v4806_v12 = vpop.permute.xlu1 %4805  ;;  %v1407_v58 = vrot.slane %v6138_v39, %v5920_v6  ;;  %v1824_v2 = vsel %vm1724_vm2, %v1629_v37, 0.0 }
 0x3fd   :  { %v4808_v9 = vunpack.i.h.bf16 %v4806_v12  ;;  %v4807_v26 = vunpack.i.l.bf16 %v4806_v12  ;;  %v1968_v32 = vsel %vm1724_vm2, %v1677_v18, 0.0  ;;  %v1965_v33 = vsel %vm1724_vm2, %v1676_v19, 0.0 }
 0x3fe   :  { %4577 = vmatmul.mubr.msk.f32.vlgmr.msra.gmra.mrb[8].mxu1 %vm1724_vm2, %v6079_v48  ;;  %v1503_v16 = vrot.slane %v6120_v20, %v5920_v6  ;;  %1969 = vadd.xlane.f32.xlu1 %v1968_v32  ;;  %v6157_v25 = vrot.slane %v6126_v30, %v5915_v3  ;;  %v1661_v4 = vmul.f32 %v1407_v58, %v5947_v43  ;;  %v1821_v19 = vsel %vm1724_vm2, %v1628_v59, 0.0 }
 0x3ff   :  { %v4704_v41 = vpack.c.bf16 %v4808_v9, %v4807_v26  ;;  %4718 = vmatpush3.bf16.xpose.msk.msra.mxu1 %vm5880_vm3, %v4716_v23  ;;  %1966 = vadd.xlane.f32.xlu0 %v1965_v33  ;;  %v6169_v12 = vrot.slane %v1046_v22, %v5915_v3  ;;  %v1660_v23 = vmul.f32 %v1407_v58, %v5926_v15 }
 0x400   :  { %v4811_v46 = vpop.permute.xlu1 %4810  ;;  %v1709_v47 = vmul.f32 %v1503_v16, %v5947_v43  ;;  %v1708_v44 = vmul.f32 %v1503_v16, %v5926_v15  ;;  %4590 = vmatprep.mubr.msk.f32.mxu1 %vm5372_vm1, %v5373_v7  ;;  %4723 = vmatprep.subr.bf16.mxu1 %v5371_v36  ;;  %v1471_v5 = vrot.slane %v6157_v25, %v5920_v6  ;;  %v1920_v29 = vsel %vm1724_vm2, %v1661_v4, 0.0 }
 0x401   :  { %4706 = vmatpush3.bf16.xpose.msk.msra.mxu0 %vm5880_vm3, %v4704_v41  ;;  %v4813_v17 = vunpack.i.h.bf16 %v4811_v46  ;;  %v4812_v61 = vunpack.i.l.bf16 %v4811_v46  ;;  %v6176_v26 = vrot.slane %v1031_v63, %v5915_v3  ;;  %v1379_v33 = vrot.slane %v6169_v12, %v5920_v6 }
 0x402   :  { %v2064_v50 = vsel %vm1724_vm2, %v1709_v47, 0.0  ;;  %v2061_v28 = vsel %vm1724_vm2, %v1708_v44, 0.0  ;;  %4711 = vmatprep.subr.bf16.mxu0 %v5371_v36  ;;  %v1693_v32 = vmul.f32 %v1471_v5, %v5947_v43  ;;  %v1917_v46 = vsel %vm1724_vm2, %v1660_v23, 0.0 }
 0x403   :  { %2065 = vadd.xlane.f32.xlu1 %v2064_v50  ;;  %2062 = vadd.xlane.f32.xlu0 %v2061_v28  ;;  %v4712_v18 = vpack.c.bf16 %v4813_v17, %v4812_v61  ;;  %v1692_v47 = vmul.f32 %v1471_v5, %v5926_v15  ;;  %v1144_v44 = vcombine.high %v6077_v56, %v6077_v56  ;;  %v4384_v56 = vld [vmem:[#allocation25] ss:$0 sm:$0xff] }
 0x404   :  { %v4816_v9 = vpop.permute.xlu1 %4815  ;;  %v2016_v43 = vsel %vm1724_vm2, %v1693_v32, 0.0  ;;  %v1647_v22 = vmul.f32 %v1379_v33, %v5967_v52  ;;  %v6200_v37 = vrot.slane %v6176_v26, %v5915_v3  ;;  %v1646_v28 = vmul.f32 %v1379_v33, %v5935_v31 }
 0x405   :  { %v4818_v16 = vunpack.i.h.bf16 %v4816_v9  ;;  %v4817_v41 = vunpack.i.l.bf16 %v4816_v9  ;;  %v2013_v15 = vsel %vm1724_vm2, %v1692_v47, 0.0  ;;  %v1129_v58 = vcombine.high %v6065_v24, %v6065_v24 }
 0x406   :  { %4591 = vmatmul.mubr.msk.f32.vlgmr.msra.gmra.mrb[10].mxu1 %vm1724_vm2, %v6114_v10  ;;  %v1878_v17 = vsel %vm1724_vm2, %v1647_v22, 0.0  ;;  %v1391_v59 = vrot.slane %v6200_v37, %v5920_v6  ;;  %v6217_v63 = vrot.slane %v1144_v44, %v5915_v3  ;;  %v1875_v53 = vsel %vm1724_vm2, %v1646_v28, 0.0 }
 0x407   :  { %1825 = vadd.xlane.f32.xlu1 %v1824_v2  ;;  %1822 = vadd.xlane.f32.xlu0 %v1821_v19  ;;  %v4720_v50 = vpack.c.bf16 %v4818_v16, %v4817_v41  ;;  %v6227_v19 = vrot.slane %v1129_v58, %v5915_v3  ;;  %v1174_v23 = vcombine.high %v6096_v62, %v6096_v62 }
 0x408   :  { %4570 = vmatmul.mubr.msk.f32.vlgmr.msra.gmra.mrb[8].mxu0 %vm1724_vm2, %v6056_v35  ;;  %v1076_v35 = vcombine.high %v6069_v54, %v6069_v54  ;;  %4604 = vmatprep.mubr.msk.f32.mxu1 %vm5372_vm1, %v5373_v7  ;;  %v1443_v32 = vrot.slane %v6217_v63, %v5920_v6  ;;  %v1652_v41 = vmul.f32 %v1391_v59, %v5954_v45 }
 0x409   :  { %4714 = vmatpush3.bf16.xpose.msk.msra.mxu0 %vm5880_vm3, %v4712_v18  ;;  %4583 = vmatprep.mubr.msk.f32.mxu0 %vm5372_vm1, %v5373_v7  ;;  %v1242_v44 = vcombine.high %v6100_v0, %v6100_v0  ;;  %v1227_v0 = vcombine.high %v6087_v60, %v6087_v60 }
 0x40a   :  { %4719 = vmatprep.subr.bf16.mxu0 %v5371_v36  ;;  %v1383_v54 = vrot.slane %v1076_v35, %v5920_v6  ;;  %v1679_v22 = vmul.f32 %v1443_v32, %v5967_v52  ;;  %v1678_v28 = vmul.f32 %v1443_v32, %v5935_v31  ;;  %v997_v32 = vcombine.high %v6073_v55, %v6073_v55 }
 0x40b   :  { %1921 = vadd.xlane.f32.xlu1 %v1920_v29  ;;  %1918 = vadd.xlane.f32.xlu0 %v1917_v46  ;;  %v1653_v29 = vmul.f32 %v1391_v59, %v5984_v34 }
 0x40c   :  { %v1649_v61 = vmul.f32 %v1383_v54, %v5974_v57  ;;  %v1971_v59 = vsel %vm1724_vm2, %v1678_v28, 0.0 }
 0x40e   :  { %v1884_v9 = vsel %vm1724_vm2, %v1649_v61, 0.0  ;;  %v6266_v61 = vrot.slane %v1242_v44, %v5915_v3  ;;  %v982_v44 = vcombine.high %v6063_v51, %v6063_v51 }
 0x40f   :  { %2017 = vadd.xlane.f32.xlu1 %v2016_v43  ;;  %2014 = vadd.xlane.f32.xlu0 %v2013_v15  ;;  %v1896_v43 = vsel %vm1724_vm2, %v1653_v29, 0.0  ;;  %v1893_v15 = vsel %vm1724_vm2, %v1652_v41, 0.0 }
 0x410   :  { %4584 = vmatmul.mubr.msk.f32.vlgmr.msra.gmra.mrb[10].mxu0 %vm1724_vm2, %v6065_v24  ;;  %v1648_v24 = vmul.f32 %v1383_v54, %v5943_v40  ;;  %v1447_v54 = vrot.slane %v1174_v23, %v5920_v6  ;;  %v1272_v23 = vcombine.high %v6120_v20, %v6120_v20 }
 0x411   :  { %4722 = vmatpush3.bf16.xpose.msk.msra.mxu0 %vm5880_vm3, %v4720_v50  ;;  %4597 = vmatprep.mubr.msk.f32.mxu0 %vm5372_vm1, %v5373_v7  ;;  %v6252_v50 = vrot.slane %v6227_v19, %v5915_v3 }
 0x412   :  { %v4540_v2 = vpop.f32.mrb[2].mxu0  ;;  %4735 = vmatprep.subr.bf16.mxu0 %v5371_v36  ;;  %v1881_v16 = vsel %vm1724_vm2, %v1648_v24, 0.0  ;;  %v1681_v58 = vmul.f32 %v1447_v54, %v5974_v57 }
 0x413   :  { %1879 = vadd.xlane.f32.xlu1 %v1878_v17  ;;  %v6222_v4 = vadd.f32 %v4540_v2, %v4384_v56  ;;  %v767_v5 = vpop.f32.mrb[3].mxu0  ;;  %1876 = vadd.xlane.f32.xlu0 %v1875_v53  ;;  %v1455_v17 = vrot.slane %v6252_v50, %v5920_v6  ;;  %v1680_v2 = vmul.f32 %v1447_v54, %v5943_v40 }
 0x414   :  { %v6224_v18 = vadd.f32 %v4384_v56, %v767_v5  ;;  %v1980_v53 = vsel %vm1724_vm2, %v1681_v58, 0.0  ;;  %v1507_v5 = vrot.slane %v6266_v61, %v5920_v6  ;;  %v6299_v54 = vrot.slane %v997_v32, %v5915_v3 }
 0x415   :  { %v1685_v24 = vmul.f32 %v1455_v17, %v5984_v34  ;;  %v1684_v29 = vmul.f32 %v1455_v17, %v5954_v45  ;;  %v1027_v17 = vcombine.high %v6104_v1, %v6104_v1 }
 0x416   :  { %v4543_v33 = vpop.f32.mrb[4].mxu0  ;;  %v4724_v35 = vpack.c.bf16 %v6222_v4, %v6224_v18  ;;  %v1347_v58 = vrot.slane %v6299_v54, %v5920_v6 }
 0x417   :  { %1885 = vadd.xlane.f32.xlu1 %v1884_v9  ;;  %v6239_v46 = vadd.f32 %v4543_v33, %v4384_v56  ;;  %v777_v47 = vpop.f32.mrb[5].mxu0  ;;  %1882 = vadd.xlane.f32.xlu0 %v1881_v16  ;;  %v1977_v9 = vsel %vm1724_vm2, %v1680_v2, 0.0  ;;  %v1992_v33 = vsel %vm1724_vm2, %v1685_v24, 0.0  ;;  %v1511_v16 = vrot.slane %v1272_v23, %v5920_v6 }
 0x418   :  { %4598 = vmatmul.mubr.msk.f32.vlgmr.msra.gmra.mrb[12].mxu0 %vm1724_vm2, %v6087_v60  ;;  %v6243_v62 = vadd.f32 %v4384_v56, %v777_v47  ;;  %4725 = vmatpush3.bf16.msra.mxu1 %v4724_v35  ;;  %v1974_v56 = vsel %vm1724_vm2, %v1679_v22, 0.0  ;;  %v6271_v60 = vrot.slane %v1227_v0, %v5915_v3  ;;  %v1711_v35 = vmul.f32 %v1507_v5, %v5967_v52 }
 0x419   :  { %4726 = vmatprep.subr.bf16.mxu1 %v5371_v36  ;;  %4632 = vmatprep.mubr.msk.f32.mxu0 %vm5372_vm1, %v5373_v7  ;;  %v1989_v20 = vsel %vm1724_vm2, %v1684_v29, 0.0  ;;  %v1710_v47 = vmul.f32 %v1507_v5, %v5935_v31  ;;  %v1712_v28 = vmul.f32 %v1511_v16, %v5943_v40  ;;  %v6304_v0 = vrot.slane %v982_v44, %v5915_v3 }
 0x41a   :  { %v6288_v41 = vrot.slane %v6271_v60, %v5915_v3  ;;  %v2070_v55 = vsel %vm1724_vm2, %v1711_v35, 0.0  ;;  %v1631_v5 = vmul.f32 %v1347_v58, %v5967_v52  ;;  %v1351_v23 = vrot.slane %v1027_v17, %v5920_v6 }
 0x41b   :  { %1897 = vadd.xlane.f32.xlu1 %v1896_v43  ;;  %1894 = vadd.xlane.f32.xlu0 %v1893_v15  ;;  %v1713_v43 = vmul.f32 %v1511_v16, %v5974_v57  ;;  %v2067_v15 = vsel %vm1724_vm2, %v1710_v47, 0.0  ;;  %v1630_v29 = vmul.f32 %v1347_v58, %v5935_v31  ;;  %v1193_v17 = vcombine.high %v6126_v30, %v6126_v30 }
 0x41c   :  { %v1519_v22 = vrot.slane %v6288_v41, %v5920_v6  ;;  %v1633_v35 = vmul.f32 %v1351_v23, %v5974_v57  ;;  %v1632_v44 = vmul.f32 %v1351_v23, %v5943_v40  ;;  %v1178_v30 = vcombine.high %v6114_v10, %v6114_v10 }
 0x41d   :  { %v2076_v51 = vsel %vm1724_vm2, %v1713_v43, 0.0  ;;  %v1827_v47 = vsel %vm1724_vm2, %v1630_v29, 0.0 }
 0x41e   :  { %v1716_v2 = vmul.f32 %v1519_v22, %v5954_v45  ;;  %v1836_v43 = vsel %vm1724_vm2, %v1633_v35, 0.0  ;;  %v6378_v10 = vrot.slane %v1178_v30, %v5915_v3 }
 0x41f   :  { %1975 = vadd.xlane.f32.xlu1 %v1974_v56  ;;  %1972 = vadd.xlane.f32.xlu0 %v1971_v59  ;;  %v1717_v56 = vmul.f32 %v1519_v22, %v5984_v34  ;;  %v2073_v59 = vsel %vm1724_vm2, %v1712_v28, 0.0  ;;  %v1125_v28 = vcombine.high %v6138_v39, %v6138_v39 }
 0x420   :  { %v2085_v1 = vsel %vm1724_vm2, %v1716_v2, 0.0 }
 0x421   :  { %v2088_v24 = vsel %vm1724_vm2, %v1717_v56, 0.0 }
 0x423   :  { %1981 = vadd.xlane.f32.xlu1 %v1980_v53  ;;  %1978 = vadd.xlane.f32.xlu0 %v1977_v9  ;;  %v1095_v53 = vcombine.high %v6112_v8, %v6112_v8  ;;  %v6321_v9 = vrot.slane %v6304_v0, %v5915_v3  ;;  %v1080_v8 = vcombine.high %v6079_v48, %v6079_v48 }
 0x425   :  { %v1359_v16 = vrot.slane %v6321_v9, %v5920_v6  ;;  %v6341_v48 = vrot.slane %v1080_v8, %v5915_v3 }
 0x427   :  { %1993 = vadd.xlane.f32.xlu1 %v1992_v33  ;;  %1990 = vadd.xlane.f32.xlu0 %v1989_v20  ;;  %v1830_v33 = vsel %vm1724_vm2, %v1631_v5, 0.0  ;;  %v6334_v20 = vrot.slane %v1095_v53, %v5915_v3  ;;  %v1637_v22 = vmul.f32 %v1359_v16, %v5984_v34  ;;  %v1636_v56 = vmul.f32 %v1359_v16, %v5954_v45 }
 0x428   :  { %v1415_v53 = vrot.slane %v1125_v28, %v5920_v6 }
 0x429   :  { %v1845_v39 = vsel %vm1724_vm2, %v1636_v56, 0.0 }
 0x42a   :  { %v1665_v8 = vmul.f32 %v1415_v53, %v5974_v57 }
 0x42b   :  { %2071 = vadd.xlane.f32.xlu1 %v2070_v55  ;;  %2068 = vadd.xlane.f32.xlu0 %v2067_v15  ;;  %v1411_v15 = vrot.slane %v6334_v20, %v5920_v6 }
 0x42d   :  { %v1663_v2 = vmul.f32 %v1411_v15, %v5967_v52  ;;  %v1662_v5 = vmul.f32 %v1411_v15, %v5935_v31  ;;  %v1932_v15 = vsel %vm1724_vm2, %v1665_v8, 0.0 }
 0x42f   :  { %2077 = vadd.xlane.f32.xlu1 %v2076_v51  ;;  %2074 = vadd.xlane.f32.xlu0 %v2073_v59  ;;  %v1833_v51 = vsel %vm1724_vm2, %v1632_v44, 0.0  ;;  %v1848_v59 = vsel %vm1724_vm2, %v1637_v22, 0.0  ;;  %v1926_v29 = vsel %vm1724_vm2, %v1663_v2, 0.0  ;;  %v1923_v35 = vsel %vm1724_vm2, %v1662_v5, 0.0 }
 0x430   :  { %v1223_v22 = vcombine.high %v6157_v25, %v6157_v25  ;;  %v6394_v25 = vrot.slane %v6378_v10, %v5915_v3 }
 0x433   :  { %2089 = vadd.xlane.f32.xlu1 %v2088_v24  ;;  %2086 = vadd.xlane.f32.xlu0 %v2085_v1  ;;  %v6358_v24 = vrot.slane %v6341_v48, %v5915_v3  ;;  %v6367_v1 = vrot.slane %v1193_v17, %v5915_v3 }
 0x434   :  { %v6325_v32 = vpop.xlane.xlu0 %1774 }
 0x437   :  { %1831 = vadd.xlane.f32.xlu1 %v1830_v33  ;;  %1828 = vadd.xlane.f32.xlu0 %v1827_v47  ;;  %v1423_v33 = vrot.slane %v6358_v24, %v5920_v6  ;;  %v1664_v47 = vmul.f32 %v1415_v53, %v5943_v40  ;;  %v1479_v53 = vrot.slane %v1223_v22, %v5920_v6 }
 0x438   :  { %v6338_v55 = vpop.xlane.xlu0 %1726 }
 0x439   :  { %v1669_v28 = vmul.f32 %v1423_v33, %v5984_v34  ;;  %v1929_v56 = vsel %vm1724_vm2, %v1664_v47, 0.0 }
 0x43b   :  { %1837 = vadd.xlane.f32.xlu1 %v1836_v43  ;;  %1834 = vadd.xlane.f32.xlu0 %v1833_v51  ;;  %v1475_v43 = vrot.slane %v6367_v1, %v5920_v6  ;;  %v1668_v51 = vmul.f32 %v1423_v33, %v5954_v45  ;;  %v1944_v30 = vsel %vm1724_vm2, %v1669_v28, 0.0 }
 0x43c   :  { %v1781_v58 = vpop.xlane.xlu0 %1780 }
 0x43d   :  { %v1695_v2 = vmul.f32 %v1475_v43, %v5967_v52  ;;  %v1694_v8 = vmul.f32 %v1475_v43, %v5935_v31  ;;  %v2311_v52 = vrot.slane %v6325_v32, %v5855_v11  ;;  %v1487_v31 = vrot.slane %v6394_v25, %v5920_v6 }
 0x43e   :  { %v1047_v32 = vcombine.high %v6176_v26, %v6176_v26  ;;  %v4727_v43 = vpack.c.bf16 %v6239_v46, %v6243_v62 }
 0x43f   :  { %1849 = vadd.xlane.f32.xlu1 %v1848_v59  ;;  %1846 = vadd.xlane.f32.xlu0 %v1845_v39  ;;  %v1078_v39 = vcombine.high %v6169_v12, %v6169_v12  ;;  %v6410_v12 = vpack.i.bf16 %v6222_v4, %v6224_v18  ;;  %v2022_v18 = vsel %vm1724_vm2, %v1695_v2, 0.0 }
 0x440   :  { %v6362_v23 = vpop.xlane.xlu0 %1786 }
 0x441   :  { %v2329_v26 = vrot.slane %v6362_v23, %v5855_v11  ;;  %v1387_v2 = vrot.slane %v1078_v39, %v5920_v6 }
 0x443   :  { %1927 = vadd.xlane.f32.xlu1 %v1926_v29  ;;  %v1778_v16 = vpop.xlane.xlu1 %1777  ;;  %1924 = vadd.xlane.f32.xlu0 %v1923_v35  ;;  %v1941_v29 = vsel %vm1724_vm2, %v1668_v51, 0.0  ;;  %v6406_v35 = vpack.i.bf16 %v6239_v46, %v6243_v62  ;;  %v2019_v51 = vsel %vm1724_vm2, %v1694_v8, 0.0 }
 0x444   :  { %v6375_v44 = vpop.xlane.xlu0 %1798  ;;  %v2315_v5 = vrot.slane %v1778_v16, %v5858_v13  ;;  %v2320_v16 = vrot.slane %v1781_v58, %v5855_v11  ;;  %v1697_v58 = vmul.f32 %v1479_v53, %v5974_v57  ;;  %v6432_v57 = vrot.slane %v1047_v32, %v5915_v3 }
 0x445   :  { %v1700_v32 = vmul.f32 %v1487_v31, %v5954_v45 }
 0x446   :  { %v2028_v8 = vsel %vm1724_vm2, %v1697_v58, 0.0  ;;  %v1395_v58 = vrot.slane %v6432_v57, %v5920_v6 }
 0x447   :  { %1933 = vadd.xlane.f32.xlu1 %v1932_v15  ;;  %v6388_v17 = vpop.xlane.xlu1 %1729  ;;  %1930 = vadd.xlane.f32.xlu0 %v1929_v56  ;;  %v2316_v15 = vsel %vm2136_vm4, %v2315_v5, %v2311_v52 }
 0x448   :  { %v1733_v59 = vpop.xlane.xlu0 %1732 }
 0x44b   :  { %1945 = vadd.xlane.f32.xlu1 %v1944_v30  ;;  %v1784_v33 = vpop.xlane.xlu1 %1783  ;;  %1942 = vadd.xlane.f32.xlu0 %v1941_v29  ;;  %v1696_v30 = vmul.f32 %v1479_v53, %v5943_v40  ;;  %v1701_v40 = vmul.f32 %v1487_v31, %v5984_v34  ;;  %v2135_v34 = vrot.slane %v6388_v17, %v5858_v13  ;;  %v2037_v17 = vsel %vm1724_vm2, %v1700_v32, 0.0 }
 0x44c   :  { %v2324_v47 = vrot.slane %v1784_v33, %v5858_v13  ;;  %v1736_v22 = vpop.xlane.xlu0 %1735  ;;  %v2130_v31 = vrot.slane %v6338_v55, %v5855_v11  ;;  %v1655_v55 = vmul.f32 %v1395_v58, %v6020_v49 }
 0x44d   :  { %v2145_v23 = vrot.slane %v1736_v22, %v5858_v13  ;;  %v2141_v22 = vrot.slane %v1733_v59, %v5855_v11  ;;  %v2040_v45 = vsel %vm1724_vm2, %v1701_v40, 0.0 }
 0x44e   :  { %v2325_v4 = vsel %vm2136_vm4, %v2324_v47, %v2320_v16  ;;  %v2025_v16 = vsel %vm1724_vm2, %v1696_v30, 0.0  ;;  %v1650_v30 = vmul.f32 %v1387_v2, %v5994_v14 }
 0x44f   :  { %v2380_v28 = vsel %vm2201_vm5, %v2325_v4, %v2316_v15  ;;  %2023 = vadd.xlane.f32.xlu1 %v2022_v18  ;;  %v1790_v56 = vpop.xlane.xlu1 %1789  ;;  %2020 = vadd.xlane.f32.xlu0 %v2019_v51  ;;  %v1651_v4 = vmul.f32 %v1387_v2, %v6011_v38  ;;  %v1176_v2 = vcombine.high %v6217_v63, %v6217_v63 }
 0x450   :  { %v2333_v5 = vrot.slane %v1790_v56, %v5858_v13  ;;  %v1739_v29 = vpop.xlane.xlu0 %1738  ;;  %v2146_v56 = vsel %vm2136_vm4, %v2145_v23, %v2141_v22  ;;  %v1887_v32 = vsel %vm1724_vm2, %v1650_v30, 0.0 }
 0x451   :  { %v1451_v63 = vrot.slane %v1176_v2, %v5920_v6 }
 0x452   :  { %v2334_v52 = vsel %vm2136_vm4, %v2333_v5, %v2329_v26  ;;  %v6435_v33 = vpop.f32.mrb[4].mxu1  ;;  %v2150_v26 = vrot.slane %v1739_v29, %v5855_v11  ;;  %v1145_v29 = vcombine.high %v6227_v19, %v6227_v19 }
 0x453   :  { %v6441_v53 = vsel %vm2203_vm6, %v2334_v52, %v2380_v28  ;;  %2029 = vadd.xlane.f32.xlu1 %v2028_v8  ;;  %v4550_v39 = vpop.f32.mrb[5].mxu1  ;;  %v1802_v47 = vpop.xlane.xlu1 %1801  ;;  %2026 = vadd.xlane.f32.xlu0 %v2025_v16  ;;  %v1077_v28 = vcombine.high %v6200_v37, %v6200_v37  ;;  %v2137_v52 = vsel %vm2136_vm4, %v2135_v34, %v2130_v31  ;;  %v1890_v8 = vsel %vm1724_vm2, %v1651_v4, 0.0 }
 0x454   :  { %v6445_v15 = vpop.xlane.xlu0 %1750  ;;  %v2202_v23 = vsel %vm2201_vm5, %v2146_v56, %v2137_v52  ;;  %v1654_v34 = vmul.f32 %v1395_v58, %v6003_v27  ;;  %v6486_v19 = vrot.slane %v1145_v29, %v5915_v3 }
 0x455   :  { %v6451_v18 = vpop.f32.mrb[6].mxu0  ;;  %v1399_v40 = vrot.slane %v1077_v28, %v5920_v6  ;;  %v1902_v28 = vsel %vm1724_vm2, %v1655_v55, 0.0 }
 0x456   :  { %v4557_v51 = vpop.f32.mrb[7].mxu0  ;;  %v1899_v31 = vsel %vm1724_vm2, %v1654_v34, 0.0  ;;  %v1274_v34 = vcombine.high %v6266_v61, %v6266_v61 }
 0x457   :  { %2041 = vadd.xlane.f32.xlu1 %v2040_v45  ;;  %v1742_v59 = vpop.xlane.xlu1 %1741  ;;  %2038 = vadd.xlane.f32.xlu0 %v2037_v17  ;;  %v1657_v51 = vmul.f32 %v1399_v40, %v6028_v21  ;;  %v2351_v45 = vrot.slane %v1802_v47, %v5858_v13  ;;  %v1656_v17 = vmul.f32 %v1399_v40, %v6014_v42 }
 0x458   :  { %v2154_v5 = vrot.slane %v1742_v59, %v5858_v13  ;;  %v1793_v37 = vpop.xlane.xlu0 %1792  ;;  %v1175_v47 = vcombine.high %v6252_v50, %v6252_v50  ;;  %v1682_v50 = vmul.f32 %v1451_v63, %v5994_v14 }
 0x459   :  { %v2338_v58 = vrot.slane %v1793_v37, %v5855_v11  ;;  %v1908_v52 = vsel %vm1724_vm2, %v1657_v51, 0.0  ;;  %v1459_v37 = vrot.slane %v6486_v19, %v5920_v6 }
 0x45a   :  { %v2155_v16 = vsel %vm2136_vm4, %v2154_v5, %v2150_v26  ;;  %v2347_v26 = vrot.slane %v6375_v44, %v5855_v11  ;;  %v1905_v44 = vsel %vm1724_vm2, %v1656_v17, 0.0 }
 0x45b   :  { %v6476_v39 = vsel %vm2203_vm6, %v2155_v16, %v2202_v23  ;;  %1891 = vadd.xlane.f32.xlu1 %v1890_v8  ;;  %v6479_v4 = vpop.xlane.xlu1 %1753  ;;  %1888 = vadd.xlane.f32.xlu0 %v1887_v32  ;;  %v1683_v8 = vmul.f32 %v1451_v63, %v6011_v38  ;;  %v1687_v63 = vmul.f32 %v1459_v37, %v6020_v49 }
 0x45c   :  { %v1805_v22 = vpop.xlane.xlu0 %1804  ;;  %v2352_v55 = vsel %vm2136_vm4, %v2351_v45, %v2347_v26  ;;  %v1686_v17 = vmul.f32 %v1459_v37, %v6003_v27 }
 0x45d   :  { %v2356_v16 = vrot.slane %v1805_v22, %v5855_v11  ;;  %v1986_v51 = vsel %vm1724_vm2, %v1683_v8, 0.0  ;;  %v1463_v22 = vrot.slane %v1175_v47, %v5920_v6  ;;  %v1998_v47 = vsel %vm1724_vm2, %v1687_v63, 0.0 }
 0x45e   :  { %v1995_v8 = vsel %vm1724_vm2, %v1686_v17, 0.0 }
 0x45f   :  { %1903 = vadd.xlane.f32.xlu1 %v1902_v28  ;;  %v1796_v56 = vpop.xlane.xlu1 %1795  ;;  %1900 = vadd.xlane.f32.xlu0 %v1899_v31  ;;  %v1983_v31 = vsel %vm1724_vm2, %v1682_v50, 0.0  ;;  %v2168_v50 = vrot.slane %v6445_v15, %v5855_v11 }
 0x460   :  { %v2342_v59 = vrot.slane %v1796_v56, %v5858_v13  ;;  %v1811_v30 = vpop.xlane.xlu0 %1810 }
 0x461   :  { %v2365_v61 = vrot.slane %v1811_v30, %v5855_v11  ;;  %v2172_v30 = vrot.slane %v6479_v4, %v5858_v13  ;;  %v1273_v4 = vcombine.high %v6288_v41, %v6288_v41 }
 0x462   :  { %v2343_v5 = vsel %vm2136_vm4, %v2342_v59, %v2338_v58  ;;  %v1515_v59 = vrot.slane %v1274_v34, %v5920_v6 }
 0x463   :  { %v2382_v40 = vsel %vm2205_vm7, %v2343_v5, %v6441_v53  ;;  %1909 = vadd.xlane.f32.xlu1 %v1908_v52  ;;  %v1808_v23 = vpop.xlane.xlu1 %1807  ;;  %1906 = vadd.xlane.f32.xlu0 %v1905_v44  ;;  %v1243_v53 = vcombine.high %v6271_v60, %v6271_v60  ;;  %v1689_v5 = vmul.f32 %v1463_v22, %v6028_v21 }
 0x464   :  { %v2360_v2 = vrot.slane %v1808_v23, %v5858_v13  ;;  %v2383_v29 = vsel %vm2207_vm8, %v2352_v55, %v2382_v40  ;;  %v1745_v32 = vpop.xlane.xlu0 %1744  ;;  %v1688_v55 = vmul.f32 %v1463_v22, %v6014_v42  ;;  %v1715_v34 = vmul.f32 %v1515_v59, %v6011_v38 }
 0x465   :  { %v6530_v52 = vrot.slane %v1243_v53, %v5915_v3  ;;  %v2159_v44 = vrot.slane %v1745_v32, %v5855_v11  ;;  %v2173_v32 = vsel %vm2136_vm4, %v2172_v30, %v2168_v50  ;;  %v1714_v41 = vmul.f32 %v1515_v59, %v5994_v14 }
 0x466   :  { %v2361_v28 = vsel %vm2136_vm4, %v2360_v2, %v2356_v16  ;;  %v2001_v15 = vsel %vm1724_vm2, %v1688_v55, 0.0  ;;  %v1527_v22 = vrot.slane %v1273_v4, %v5920_v6  ;;  %v2082_v38 = vsel %vm1724_vm2, %v1715_v34, 0.0  ;;  %v6583_v4 = vld [vmem:[#allocation10 + $0x38] sm:$0xff] }
 0x467   :  { %v2384_v45 = vsel %vm2209_vm9, %v2361_v28, %v2383_v29  ;;  %1987 = vadd.xlane.f32.xlu1 %v1986_v51  ;;  %v1814_v56 = vpop.xlane.xlu1 %1813  ;;  %1984 = vadd.xlane.f32.xlu0 %v1983_v31  ;;  %v2004_v29 = vsel %vm1724_vm2, %v1689_v5, 0.0  ;;  %v1523_v53 = vrot.slane %v6530_v52, %v5920_v6  ;;  %v1029_v31 = vcombine.high %v6299_v54, %v6299_v54 }
 0x468   :  { %v2369_v60 = vrot.slane %v1814_v56, %v5858_v13  ;;  %v6523_v58 = vpop.xlane.xlu0 %1756  ;;  %v2079_v17 = vsel %vm1724_vm2, %v1714_v41, 0.0 }
 0x46a   :  { %v2370_v26 = vsel %vm2136_vm4, %v2369_v60, %v2365_v61  ;;  %v1718_v61 = vmul.f32 %v1523_v53, %v6003_v27  ;;  %v1721_v60 = vmul.f32 %v1527_v22, %v6028_v21  ;;  %v1720_v27 = vmul.f32 %v1527_v22, %v6014_v42 }
 0x46b   :  { %1999 = vadd.xlane.f32.xlu1 %v1998_v47  ;;  %v1748_v37 = vpop.xlane.xlu1 %1747  ;;  %v2385_v40 = vsel %vm2211_vm10, %v2370_v26, %v2384_v45  ;;  %1996 = vadd.xlane.f32.xlu0 %v1995_v8  ;;  %v1719_v45 = vmul.f32 %v1523_v53, %v6020_v49  ;;  %v1355_v26 = vrot.slane %v1029_v31, %v5920_v6  ;;  %v6590_v53 = vld [vmem:[#allocation10 + $0x30] sm:$0xff] }
 0x46c   :  { %v2163_v23 = vrot.slane %v1748_v37, %v5858_v13  ;;  %v1763_v16 = vpop.xlane.xlu0 %1762  ;;  %v2091_v47 = vsel %vm1724_vm2, %v1718_v61, 0.0  ;;  %v2177_v21 = vrot.slane %v6523_v58, %v5855_v11 }
 0x46d   :  { %v2094_v49 = vsel %vm1724_vm2, %v1719_v45, 0.0  ;;  %v2186_v37 = vrot.slane %v1763_v16, %v5855_v11  ;;  %v1635_v58 = vmul.f32 %v6583_v4, %v1355_v26  ;;  %v2097_v16 = vsel %vm1724_vm2, %v1720_v27, 0.0 }
 0x46e   :  { %v2164_v2 = vsel %vm2136_vm4, %v2163_v23, %v2159_v44  ;;  %v2100_v44 = vsel %vm1724_vm2, %v1721_v60, 0.0  ;;  %v1028_v23 = vcombine.high %v6321_v9, %v6321_v9  ;;  %v1634_v9 = vmul.f32 %v6590_v53, %v1355_v26  ;;  %v4905_v60 = vld [vmem:[#allocation10 + $0x68] sm:$0xff] }
 0x46f   :  { %v2206_v28 = vsel %vm2205_vm7, %v2164_v2, %v6476_v39  ;;  %2005 = vadd.xlane.f32.xlu1 %v2004_v29  ;;  %v1760_v51 = vpop.xlane.xlu1 %1759  ;;  %2002 = vadd.xlane.f32.xlu0 %v2001_v15  ;;  %v998_v39 = vcombine.high %v6304_v0, %v6304_v0  ;;  %v1096_v45 = vcombine.high %v6341_v48, %v6341_v48  ;;  %v1842_v31 = vsel %vm1724_vm2, %v1635_v58, 0.0 }
 0x470   :  { %v2208_v63 = vsel %vm2207_vm8, %v2173_v32, %v2206_v28  ;;  %v1817_v56 = vpop.xlane.xlu0 %1816  ;;  %v2181_v59 = vrot.slane %v1760_v51, %v5858_v13  ;;  %v1367_v22 = vrot.slane %v1028_v23, %v5920_v6  ;;  %v1126_v27 = vcombine.high %v6358_v24, %v6358_v24 }
 0x471   :  { %v6568_v54 = vrot.slane %v998_v39, %v5915_v3  ;;  %v2374_v30 = vrot.slane %v1817_v56, %v5855_v11  ;;  %v4903_v39 = vld [vmem:[#allocation10 + $0x58] sm:$0xff]  ;;  %v6616_v26 = vrot.slane %v1096_v45, %v5915_v3  ;;  %v1194_v58 = vcombine.high %v6378_v10, %v6378_v10 }
 0x472   :  { %v2182_v50 = vsel %vm2136_vm4, %v2181_v59, %v2177_v21  ;;  %v1641_v59 = vmul.f32 %v4905_v60, %v1367_v22  ;;  %v1431_v23 = vrot.slane %v1126_v27, %v5920_v6 }
 0x473   :  { %2083 = vadd.xlane.f32.xlu1 %v2082_v38  ;;  %v1766_v14 = vpop.xlane.xlu1 %1765  ;;  %2080 = vadd.xlane.f32.xlu0 %v2079_v17  ;;  %v1363_v2 = vrot.slane %v6568_v54, %v5920_v6  ;;  %v2210_v41 = vsel %vm2209_vm9, %v2182_v50, %v2208_v63  ;;  %v1127_v38 = vcombine.high %v6334_v20, %v6334_v20  ;;  %v4904_v63 = vld [vmem:[#allocation10 + $0x50] sm:$0xff] }
 0x474   :  { %v2190_v0 = vrot.slane %v1766_v14, %v5858_v13  ;;  %v1769_v55 = vpop.xlane.xlu0 %1768 }
 0x475   :  { %v2195_v28 = vrot.slane %v1769_v55, %v5855_v11  ;;  %v1639_v56 = vmul.f32 %v4903_v39, %v1363_v2  ;;  %v1638_v14 = vmul.f32 %v4904_v63, %v1363_v2 }
 0x476   :  { %v2191_v29 = vsel %vm2136_vm4, %v2190_v0, %v2186_v37 }
 0x477   :  { %2095 = vadd.xlane.f32.xlu1 %v2094_v49  ;;  %v1820_v5 = vpop.xlane.xlu1 %1819  ;;  %2092 = vadd.xlane.f32.xlu0 %v2091_v47  ;;  %v2212_v17 = vsel %vm2211_vm10, %v2191_v29, %v2210_v41  ;;  %v1854_v48 = vsel %vm1724_vm2, %v1639_v56, 0.0  ;;  %v1419_v49 = vrot.slane %v1127_v38, %v5920_v6  ;;  %v1851_v0 = vsel %vm1724_vm2, %v1638_v14, 0.0  ;;  %v4906_v47 = vld [vmem:[#allocation10 + $0x60] sm:$0xff] }
 0x478   :  { %v2378_v8 = vrot.slane %v1820_v5, %v5858_v13  ;;  %v1640_v5 = vmul.f32 %v4906_v47, %v1367_v22  ;;  %v1672_v10 = vmul.f32 %v4906_v47, %v1431_v23 }
 0x479   :  { %v1667_v21 = vmul.f32 %v6583_v4, %v1419_v49  ;;  %v1666_v37 = vmul.f32 %v6590_v53, %v1419_v49 }
 0x47a   :  { %v2379_v42 = vsel %vm2136_vm4, %v2378_v8, %v2374_v30  ;;  %v1427_v30 = vrot.slane %v6616_v26, %v5920_v6  ;;  %v1857_v8 = vsel %vm1724_vm2, %v1640_v5, 0.0 }
 0x47b   :  { %2101 = vadd.xlane.f32.xlu1 %v2100_v44  ;;  %v1772_v34 = vpop.xlane.xlu1 %1771  ;;  %v2386_v32 = vsel %vm2213_vm11, %v2379_v42, %v2385_v40  ;;  %2098 = vadd.xlane.f32.xlu0 %v2097_v16  ;;  %v1938_v24 = vsel %vm1724_vm2, %v1667_v21, 0.0  ;;  %v1225_v42 = vcombine.high %v6367_v1, %v6367_v1  ;;  %v1935_v2 = vsel %vm1724_vm2, %v1666_v37, 0.0 }
 0x47c   :  { %v2199_v15 = vrot.slane %v1772_v34, %v5858_v13  ;;  %v6597_v51 = vadd.f32 %v6451_v18, %v2386_v32  ;;  %v1839_v18 = vsel %vm1724_vm2, %v1634_v9, 0.0  ;;  %v1671_v50 = vmul.f32 %v4903_v39, %v1427_v30 }
 0x47d   :  { %v1670_v29 = vmul.f32 %v4904_v63, %v1427_v30  ;;  %v1673_v32 = vmul.f32 %v4905_v60, %v1431_v23  ;;  %v1030_v23 = vcombine.high %v6568_v54, %v6568_v54 }
 0x47e   :  { %v2200_v40 = vsel %vm2136_vm4, %v2199_v15, %v2195_v28  ;;  %v1950_v9 = vsel %vm1724_vm2, %v1671_v50, 0.0  ;;  %v1483_v28 = vrot.slane %v1225_v42, %v5920_v6  ;;  %v6645_v15 = vrot.slane %v1194_v58, %v5915_v3 }
 0x47f   :  { %1843 = vadd.xlane.f32.xlu1 %v1842_v31  ;;  %v2214_v61 = vsel %vm2213_vm11, %v2200_v40, %v2212_v17  ;;  %1840 = vadd.xlane.f32.xlu0 %v1839_v18  ;;  %v1947_v1 = vsel %vm1724_vm2, %v1670_v29, 0.0  ;;  %v1956_v38 = vsel %vm1724_vm2, %v1673_v32, 0.0  ;;  %v1224_v3 = vcombine.high %v6394_v25, %v6394_v25 }
 0x480   :  { %v6611_v20 = vadd.f32 %v6435_v33, %v2214_v61  ;;  %v1860_v33 = vsel %vm1724_vm2, %v1641_v59, 0.0  ;;  %v1699_v45 = vmul.f32 %v6583_v4, %v1483_v28  ;;  %v1491_v40 = vrot.slane %v6645_v15, %v5920_v6 }
 0x481   :  { %v1953_v31 = vsel %vm1724_vm2, %v1672_v10, 0.0  ;;  %v1698_v56 = vmul.f32 %v6590_v53, %v1483_v28  ;;  %v1495_v4 = vrot.slane %v1224_v3, %v5920_v6  ;;  %v1371_v29 = vrot.slane %v1030_v23, %v5920_v6 }
 0x482   :  { %v2034_v14 = vsel %vm1724_vm2, %v1699_v45, 0.0  ;;  %v1703_v61 = vmul.f32 %v4903_v39, %v1491_v40  ;;  %v1702_v59 = vmul.f32 %v4904_v63, %v1491_v40  ;;  %v1177_v39 = vcombine.high %v6486_v19, %v6486_v19 }
 0x483   :  { %1855 = vadd.xlane.f32.xlu1 %v1854_v48  ;;  %1852 = vadd.xlane.f32.xlu0 %v1851_v0  ;;  %v1079_v48 = vcombine.high %v6432_v57, %v6432_v57  ;;  %v2031_v25 = vsel %vm1724_vm2, %v1698_v56, 0.0  ;;  %v1705_v5 = vmul.f32 %v4905_v60, %v1495_v4  ;;  %v1226_v40 = vcombine.high %v6645_v15, %v6645_v15 }
 0x484   :  { %v2046_v0 = vsel %vm1724_vm2, %v1703_v61, 0.0  ;;  %v2043_v57 = vsel %vm1724_vm2, %v1702_v59, 0.0  ;;  %v1467_v60 = vrot.slane %v1177_v39, %v5920_v6 }
 0x485   :  { %v1403_v27 = vrot.slane %v1079_v48, %v5920_v6  ;;  %v2052_v30 = vsel %vm1724_vm2, %v1705_v5, 0.0  ;;  %v1499_v48 = vrot.slane %v1226_v40, %v5920_v6 }
 0x487   :  { %1861 = vadd.xlane.f32.xlu1 %v1860_v33  ;;  %1858 = vadd.xlane.f32.xlu0 %v1857_v8  ;;  %v6627_v55 = vpop.xlane.xlu1 %1873  ;;  %v6629_v44 = vpop.xlane.xlu0 %1870  ;;  %v1704_v33 = vmul.f32 %v4906_v47, %v1495_v4  ;;  %v4907_v8 = vld [vmem:[#allocation10 + $0x78] sm:$0xff] }
 0x488   :  { %v1659_v37 = vmul.f32 %v4907_v8, %v1403_v27 }
 0x489   :  { %v2049_v19 = vsel %vm1724_vm2, %v1704_v33, 0.0  ;;  %v1707_v33 = vmul.f32 %v4907_v8, %v1499_v48 }
 0x48a   :  { %v1914_v58 = vsel %vm1724_vm2, %v1659_v37, 0.0 }
 0x48b   :  { %1939 = vadd.xlane.f32.xlu1 %v1938_v24  ;;  %1936 = vadd.xlane.f32.xlu0 %v1935_v2  ;;  %v6638_v16 = vpop.xlane.xlu1 %1969  ;;  %v4908_v24 = vld [vmem:[#allocation10 + $0x70] sm:$0xff]  ;;  %v1691_v2 = vmul.f32 %v4907_v8, %v1467_v60 }
 0x48c   :  { %v6640_v34 = vpop.xlane.xlu0 %1966  ;;  %v1658_v50 = vmul.f32 %v4908_v24, %v1403_v27  ;;  %v1690_v32 = vmul.f32 %v4908_v24, %v1467_v60  ;;  %v1642_v3 = vmul.f32 %v4908_v24, %v1371_v29 }
 0x48d   :  { %v2010_v10 = vsel %vm1724_vm2, %v1691_v2, 0.0 }
 0x48e   :  { %v1911_v54 = vsel %vm1724_vm2, %v1658_v50, 0.0  ;;  %v1863_v15 = vsel %vm1724_vm2, %v1642_v3, 0.0 }
 0x48f   :  { %1951 = vadd.xlane.f32.xlu1 %v1950_v9  ;;  %1948 = vadd.xlane.f32.xlu0 %v1947_v1  ;;  %v1128_v9 = vcombine.high %v6616_v26, %v6616_v26  ;;  %v2007_v26 = vsel %vm1724_vm2, %v1690_v32, 0.0 }
 0x490   :  { %v6648_v41 = vpop.xlane.xlu1 %2065  ;;  %v6650_v22 = vpop.xlane.xlu0 %2062 }
 0x491   :  { %v1435_v45 = vrot.slane %v1128_v9, %v5920_v6 }
 0x493   :  { %1957 = vadd.xlane.f32.xlu1 %v1956_v38  ;;  %1954 = vadd.xlane.f32.xlu0 %v1953_v31  ;;  %v1643_v38 = vmul.f32 %v4907_v8, %v1371_v29  ;;  %v1675_v4 = vmul.f32 %v4907_v8, %v1435_v45  ;;  %v1674_v59 = vmul.f32 %v4908_v24, %v1435_v45 }
 0x494   :  { %v6660_v17 = vpop.xlane.xlu1 %1825  ;;  %v6662_v18 = vpop.xlane.xlu0 %1822 }
 0x495   :  { %v1866_v61 = vsel %vm1724_vm2, %v1643_v38, 0.0  ;;  %v1959_v37 = vsel %vm1724_vm2, %v1674_v59, 0.0  ;;  %v2483_v59 = vrot.slane %v6662_v18, %v5855_v11 }
 0x497   :  { %2035 = vadd.xlane.f32.xlu1 %v2034_v14  ;;  %2032 = vadd.xlane.f32.xlu0 %v2031_v25  ;;  %v4426_v14 = vld [vmem:[#allocation8] sm:$0xf]   ;;  %v1275_v25 = vcombine.high %v6530_v52, %v6530_v52  ;;  %v1706_v52 = vmul.f32 %v4908_v24, %v1499_v48 }
 0x498   :  { %v6669_v49 = vpop.xlane.xlu1 %1921  ;;  %v6671_v53 = vpop.xlane.xlu0 %1918  ;;  %v4428_v5 = vunpack.c.1.s8 %v4426_v14  ;;  %v4427_v39 = vunpack.c.0.s8 %v4426_v14 }
 0x499   :  { %v2055_v29 = vsel %vm1724_vm2, %v1706_v52, 0.0 }
 0x49a   :  { %v6723_v23 = vcvt.s32.f32 %v4428_v5  ;;  %v6727_v50 = vcvt.s32.f32 %v4427_v39 }
 0x49b   :  { %2047 = vadd.xlane.f32.xlu1 %v2046_v0  ;;  %2044 = vadd.xlane.f32.xlu0 %v2043_v57  ;;  %v1962_v57 = vsel %vm1724_vm2, %v1675_v4, 0.0 }
 0x49c   :  { %v6678_v21 = vpop.xlane.xlu1 %2017  ;;  %v6680_v63 = vpop.xlane.xlu0 %2014  ;;  %vm3503_vm12 = vcmp.eq.f32.partialorder %v6723_v23, 0.0  ;;  %vm3502_vm13 = vcmp.eq.f32.partialorder %v6727_v50, 0.0 }
 0x49d   :  { %v6749_v38 = vsel %vm3502_vm13, -3.4028235e+38, %v6611_v20 }
 0x49f   :  { %2053 = vadd.xlane.f32.xlu1 %v2052_v30  ;;  %2050 = vadd.xlane.f32.xlu0 %v2049_v19  ;;  %v1531_v30 = vrot.slane %v1275_v25, %v5920_v6 }
 0x4a0   :  { %v6687_v47 = vpop.xlane.xlu1 %1879  ;;  %v6689_v42 = vpop.xlane.xlu0 %1876 }
 0x4a1   :  { %v1723_v2 = vmul.f32 %v4907_v8, %v1531_v30  ;;  %v1722_v6 = vmul.f32 %v4908_v24, %v1531_v30  ;;  %v6742_v8 = vsel %vm3503_vm12, -3.4028235e+38, %v6597_v51 }
 0x4a2   :  { %v3520_v40 = vsel %vm3516_vm14, %v6742_v8, -inf }
 0x4a3   :  { %1915 = vadd.xlane.f32.xlu1 %v1914_v58  ;;  %1912 = vadd.xlane.f32.xlu0 %v1911_v54  ;;  %v2058_v58 = vsel %vm1724_vm2, %v1707_v33, 0.0  ;;  %v2106_v32 = vsel %vm1724_vm2, %v1723_v2, 0.0 }
 0x4a4   :  { %v6696_v28 = vpop.xlane.xlu1 %1885  ;;  %v6698_v1 = vpop.xlane.xlu0 %1882 }
 0x4a7   :  { %2011 = vadd.xlane.f32.xlu1 %v2010_v10  ;;  %2008 = vadd.xlane.f32.xlu0 %v2007_v26  ;;  %v2103_v10 = vsel %vm1724_vm2, %v1722_v6, 0.0  ;;  %v3517_v26 = vsel %vm3516_vm14, %v6749_v38, -inf }
 0x4a8   :  { %v6705_v31 = vpop.xlane.xlu1 %1897  ;;  %v6707_v56 = vpop.xlane.xlu0 %1894 }
 0x4ab   :  { %1867 = vadd.xlane.f32.xlu1 %v1866_v61  ;;  %1864 = vadd.xlane.f32.xlu0 %v1863_v15  ;;  %v2487_v15 = vrot.slane %v6660_v17, %v5858_v13 }
 0x4ac   :  { %v6714_v0 = vpop.xlane.xlu1 %1975  ;;  %v6716_v27 = vpop.xlane.xlu0 %1972 }
 0x4af   :  { %1963 = vadd.xlane.f32.xlu1 %v1962_v57  ;;  %1960 = vadd.xlane.f32.xlu0 %v1959_v37 }
 0x4b0   :  { %v6721_v60 = vpop.xlane.xlu1 %1981  ;;  %v6725_v19 = vpop.xlane.xlu0 %1978 }
 0x4b3   :  { %2059 = vadd.xlane.f32.xlu1 %v2058_v58  ;;  %2056 = vadd.xlane.f32.xlu0 %v2055_v29  ;;  %v2488_v58 = vsel %vm2136_vm4, %v2487_v15, %v2483_v59  ;;  %v2831_v59 = vrot.slane %v6669_v49, %v5858_v13 }
 0x4b4   :  { %v6731_v9 = vpop.xlane.xlu1 %1993  ;;  %v6734_v54 = vpop.xlane.xlu0 %1990 }
 0x4b7   :  { %2107 = vadd.xlane.f32.xlu1 %v2106_v32  ;;  %2104 = vadd.xlane.f32.xlu0 %v2103_v10 }
 0x4b8   :  { %v6744_v24 = vpop.xlane.xlu1 %2071  ;;  %v6751_v45 = vpop.xlane.xlu0 %2068 }
 0x4bb   :  { %3521 = vmax.xlane.f32.xlu1 %v3520_v40  ;;  %3518 = vmax.xlane.f32.xlu0 %v3517_v26 }
 0x4bc   :  { %v6757_v51 = vpop.xlane.xlu1 %2077  ;;  %v6759_v3 = vpop.xlane.xlu0 %2074 }
 0x4c0   :  { %v6761_v14 = vpop.xlane.xlu1 %2089  ;;  %v6763_v61 = vpop.xlane.xlu0 %2086 }
 0x4c4   :  { %v1832_v20 = vpop.xlane.xlu1 %1831  ;;  %v1829_v48 = vpop.xlane.xlu0 %1828 }
 0x4c5   :  { %v2496_v4 = vrot.slane %v1832_v20, %v5858_v13  ;;  %v2492_v25 = vrot.slane %v1829_v48, %v5855_v11 }
 0x4c7   :  { %v2497_v5 = vsel %vm2136_vm4, %v2496_v4, %v2492_v25 }
 0x4c8   :  { %v1838_v39 = vpop.xlane.xlu1 %1837  ;;  %v1835_v33 = vpop.xlane.xlu0 %1834  ;;  %v2552_v2 = vsel %vm2201_vm5, %v2497_v5, %v2488_v58  ;;  %v2827_v5 = vrot.slane %v6671_v53, %v5855_v11 }
 0x4c9   :  { %v2505_v57 = vrot.slane %v1838_v39, %v5858_v13  ;;  %v6773_v30 = vpop.f32.mrb[6].mxu1  ;;  %v2501_v37 = vrot.slane %v1835_v33, %v5855_v11 }
 0x4ca   :  { %v4564_v52 = vpop.f32.mrb[7].mxu1  ;;  %v2832_v58 = vsel %vm2136_vm4, %v2831_v59, %v2827_v5 }
 0x4cb   :  { %v2506_v17 = vsel %vm2136_vm4, %v2505_v57, %v2501_v37 }
 0x4cc   :  { %v1850_v29 = vpop.xlane.xlu1 %1849  ;;  %v6780_v18 = vsel %vm2203_vm6, %v2506_v17, %v2552_v2  ;;  %v1847_v32 = vpop.xlane.xlu0 %1846 }
 0x4cd   :  { %v2523_v6 = vrot.slane %v1850_v29, %v5858_v13  ;;  %v2519_v10 = vrot.slane %v1847_v32, %v5855_v11 }
 0x4cf   :  { %v6785_v40 = vsel %vm2136_vm4, %v2523_v6, %v2519_v10 }
 0x4d0   :  { %v1928_v26 = vpop.xlane.xlu1 %1927  ;;  %v1925_v4 = vpop.xlane.xlu0 %1924 }
 0x4d1   :  { %v2840_v20 = vrot.slane %v1928_v26, %v5858_v13  ;;  %v6788_v48 = vpop.f32.mrb[8].mxu1  ;;  %v2836_v25 = vrot.slane %v1925_v4, %v5855_v11 }
 0x4d2   :  { %v4578_v15 = vpop.f32.mrb[9].mxu1 }
 0x4d3   :  { %v2841_v39 = vsel %vm2136_vm4, %v2840_v20, %v2836_v25 }
 0x4d4   :  { %v1934_v57 = vpop.xlane.xlu1 %1933  ;;  %v1931_v37 = vpop.xlane.xlu0 %1930  ;;  %v2896_v2 = vsel %vm2201_vm5, %v2841_v39, %v2832_v58 }
 0x4d5   :  { %v2849_v33 = vrot.slane %v1934_v57, %v5858_v13  ;;  %v2845_v52 = vrot.slane %v1931_v37, %v5855_v11  ;;  %v3175_v57 = vrot.slane %v6678_v21, %v5858_v13  ;;  %v2664_v21 = vrot.slane %v6689_v42, %v5855_v11 }
 0x4d6   :  { %v2659_v42 = vrot.slane %v6627_v55, %v5858_v13 }
 0x4d7   :  { %v2850_v17 = vsel %vm2136_vm4, %v2849_v33, %v2845_v52  ;;  %v3171_v33 = vrot.slane %v6680_v63, %v5855_v11 }
 0x4d8   :  { %v1946_v29 = vpop.xlane.xlu1 %1945  ;;  %v6802_v49 = vsel %vm2203_vm6, %v2850_v17, %v2896_v2  ;;  %v1943_v6 = vpop.xlane.xlu0 %1942 }
 0x4d9   :  { %v2867_v53 = vrot.slane %v1946_v29, %v5858_v13  ;;  %v6805_v32 = vpop.f32.mrb[10].mxu1  ;;  %v2863_v10 = vrot.slane %v1943_v6, %v5855_v11  ;;  %v3176_v29 = vsel %vm2136_vm4, %v3175_v57, %v3171_v33  ;;  %v2668_v6 = vrot.slane %v6687_v47, %v5858_v13 }
 0x4da   :  { %v4592_v26 = vpop.f32.mrb[11].mxu1  ;;  %v2655_v57 = vrot.slane %v6629_v44, %v5855_v11  ;;  %v2695_v44 = vrot.slane %v6705_v31, %v5858_v13 }
 0x4db   :  { %v6808_v20 = vpop.f32.mrb[8].mxu0  ;;  %v6811_v4 = vsel %vm2136_vm4, %v2867_v53, %v2863_v10 }
 0x4dc   :  { %v2024_v25 = vpop.xlane.xlu1 %2023  ;;  %v4571_v15 = vpop.f32.mrb[9].mxu0 }
 0x4dd   :  { %v3184_v59 = vrot.slane %v2024_v25, %v5858_v13  ;;  %v2021_v5 = vpop.xlane.xlu0 %2020  ;;  %v2677_v15 = vrot.slane %v6696_v28, %v5858_v13 }
 0x4de   :  { %v3180_v39 = vrot.slane %v2021_v5, %v5855_v11 }
 0x4e0   :  { %v3185_v37 = vsel %vm2136_vm4, %v3184_v59, %v3180_v39  ;;  %v2030_v52 = vpop.xlane.xlu1 %2029  ;;  %v2673_v59 = vrot.slane %v6698_v1, %v5855_v11 }
 0x4e1   :  { %v3193_v58 = vrot.slane %v2030_v52, %v5858_v13  ;;  %v2027_v2 = vpop.xlane.xlu0 %2026  ;;  %v3240_v63 = vsel %vm2201_vm5, %v3185_v37, %v3176_v29  ;;  %v2669_v37 = vsel %vm2136_vm4, %v2668_v6, %v2664_v21  ;;  %v2691_v6 = vrot.slane %v6707_v56, %v5855_v11 }
 0x4e2   :  { %v3189_v17 = vrot.slane %v2027_v2, %v5855_v11  ;;  %v2678_v52 = vsel %vm2136_vm4, %v2677_v15, %v2673_v59 }
 0x4e3   :  { %v6823_v53 = vpop.f32.mrb[10].mxu0  ;;  %v2696_v31 = vsel %vm2136_vm4, %v2695_v44, %v2691_v6  ;;  %v3365_v44 = vrot.slane %v6757_v51, %v5858_v13  ;;  %v3361_v6 = vrot.slane %v6759_v3, %v5855_v11  ;;  %v3379_v51 = vrot.slane %v6763_v61, %v5855_v11 }
 0x4e4   :  { %v3194_v10 = vsel %vm2136_vm4, %v3193_v58, %v3189_v17  ;;  %v2042_v26 = vpop.xlane.xlu1 %2041  ;;  %v4585_v25 = vpop.f32.mrb[11].mxu0  ;;  %v2660_v17 = vsel %vm2136_vm4, %v2659_v42, %v2655_v57 }
 0x4e5   :  { %v6836_v5 = vsel %vm2203_vm6, %v3194_v10, %v3240_v63  ;;  %v3211_v47 = vrot.slane %v2042_v26, %v5858_v13  ;;  %v2039_v39 = vpop.xlane.xlu0 %2038  ;;  %v2724_v29 = vsel %vm2201_vm5, %v2669_v37, %v2660_v17  ;;  %v3356_v17 = vrot.slane %v6744_v24, %v5858_v13 }
 0x4e6   :  { %v3207_v33 = vrot.slane %v2039_v39, %v5855_v11  ;;  %v2725_v63 = vsel %vm2203_vm6, %v2678_v52, %v2724_v29 }
 0x4e8   :  { %v6846_v28 = vsel %vm2136_vm4, %v3211_v47, %v3207_v33  ;;  %v1892_v1 = vpop.xlane.xlu1 %1891 }
 0x4e9   :  { %v2686_v58 = vrot.slane %v1892_v1, %v5858_v13  ;;  %v1889_v2 = vpop.xlane.xlu0 %1888 }
 0x4ea   :  { %v2682_v55 = vrot.slane %v1889_v2, %v5855_v11 }
 0x4eb   :  { %v6857_v21 = vpop.f32.mrb[12].mxu0 }
 0x4ec   :  { %v2687_v10 = vsel %vm2136_vm4, %v2686_v58, %v2682_v55  ;;  %v1904_v26 = vpop.xlane.xlu1 %1903  ;;  %v4599_v25 = vpop.f32.mrb[13].mxu0  ;;  %v3352_v55 = vrot.slane %v6751_v45, %v5855_v11  ;;  %v3366_v45 = vsel %vm2136_vm4, %v3365_v44, %v3361_v6 }
 0x4ed   :  { %v2726_v15 = vsel %vm2205_vm7, %v2687_v10, %v2725_v63  ;;  %v2704_v59 = vrot.slane %v1904_v26, %v5858_v13  ;;  %v1901_v47 = vpop.xlane.xlu0 %1900  ;;  %v3347_v10 = vrot.slane %v6648_v41, %v5858_v13  ;;  %v3343_v26 = vrot.slane %v6650_v22, %v5855_v11 }
 0x4ee   :  { %v2700_v39 = vrot.slane %v1901_v47, %v5855_v11  ;;  %v2727_v42 = vsel %vm2207_vm8, %v2696_v31, %v2726_v15  ;;  %v3357_v24 = vsel %vm2136_vm4, %v3356_v17, %v3352_v55  ;;  %v3383_v15 = vrot.slane %v6761_v14, %v5858_v13 }
 0x4ef   :  { %v3348_v47 = vsel %vm2136_vm4, %v3347_v10, %v3343_v26 }
 0x4f0   :  { %v2705_v56 = vsel %vm2136_vm4, %v2704_v59, %v2700_v39  ;;  %v6867_v57 = vpop.xlane.xlu1 %1909  ;;  %v3412_v22 = vsel %vm2201_vm5, %v3357_v24, %v3348_v47  ;;  %v3384_v14 = vsel %vm2136_vm4, %v3383_v15, %v3379_v51 }
 0x4f1   :  { %v6870_v33 = vsel %vm2209_vm9, %v2705_v56, %v2727_v42  ;;  %v6872_v37 = vpop.xlane.xlu0 %1906  ;;  %v3413_v39 = vsel %vm2203_vm6, %v3366_v45, %v3412_v22 }
 0x4f4   :  { %v6874_v1 = vpop.xlane.xlu1 %1987 }
 0x4f5   :  { %v6876_v52 = vpop.xlane.xlu0 %1984 }
 0x4f8   :  { %v6878_v58 = vpop.xlane.xlu1 %1999 }
 0x4f9   :  { %v6880_v2 = vpop.xlane.xlu0 %1996 }
 0x4fc   :  { %v6886_v29 = vpop.xlane.xlu1 %2005 }
 0x4fd   :  { %v6892_v63 = vpop.xlane.xlu0 %2002 }
 0x500   :  { %v2084_v25 = vpop.xlane.xlu1 %2083 }
 0x501   :  { %v3374_v3 = vrot.slane %v2084_v25, %v5858_v13  ;;  %v2081_v59 = vpop.xlane.xlu0 %2080 }
 0x502   :  { %v3370_v41 = vrot.slane %v2081_v59, %v5855_v11 }
 0x504   :  { %v3375_v31 = vsel %vm2136_vm4, %v3374_v3, %v3370_v41  ;;  %v6910_v42 = vpop.xlane.xlu1 %2095 }
 0x505   :  { %v3414_v56 = vsel %vm2205_vm7, %v3375_v31, %v3413_v39  ;;  %v6914_v61 = vpop.xlane.xlu0 %2092 }
 0x506   :  { %v6917_v17 = vsel %vm2207_vm8, %v3384_v14, %v3414_v56 }
 0x508   :  { %v6919_v55 = vpop.xlane.xlu1 %2101 }
 0x509   :  { %v6921_v44 = vpop.xlane.xlu0 %2098 }
 0x50c   :  { %v1844_v6 = vpop.xlane.xlu1 %1843 }
 0x50d   :  { %v2514_v10 = vrot.slane %v1844_v6, %v5858_v13  ;;  %v1841_v26 = vpop.xlane.xlu0 %1840 }
 0x50e   :  { %v2510_v24 = vrot.slane %v1841_v26, %v5855_v11 }
 0x510   :  { %v2515_v25 = vsel %vm2136_vm4, %v2514_v10, %v2510_v24  ;;  %v6926_v45 = vpop.xlane.xlu1 %1855 }
 0x511   :  { %v2554_v15 = vsel %vm2205_vm7, %v2515_v25, %v6780_v18  ;;  %v6930_v51 = vpop.xlane.xlu0 %1852 }
 0x512   :  { %v6934_v3 = vsel %vm2207_vm8, %v6785_v40, %v2554_v15 }
 0x514   :  { %v6936_v59 = vpop.xlane.xlu1 %1861 }
 0x515   :  { %v6938_v47 = vpop.xlane.xlu0 %1858 }
 0x518   :  { %v1940_v41 = vpop.xlane.xlu1 %1939 }
 0x519   :  { %v2858_v22 = vrot.slane %v1940_v41, %v5858_v13  ;;  %v1937_v39 = vpop.xlane.xlu0 %1936 }
 0x51a   :  { %v2854_v31 = vrot.slane %v1937_v39, %v5855_v11 }
 0x51c   :  { %v2859_v14 = vsel %vm2136_vm4, %v2858_v22, %v2854_v31  ;;  %v6943_v56 = vpop.xlane.xlu1 %1951  ;;  %v3012_v22 = vrot.slane %v6714_v0, %v5858_v13 }
 0x51d   :  { %v2898_v18 = vsel %vm2205_vm7, %v2859_v14, %v6802_v49  ;;  %v6947_v6 = vpop.xlane.xlu0 %1948  ;;  %v3008_v49 = vrot.slane %v6716_v27, %v5855_v11  ;;  %v2999_v14 = vrot.slane %v6640_v34, %v5855_v11  ;;  %v3030_v34 = vrot.slane %v6874_v1, %v5858_v13 }
 0x51e   :  { %v6951_v40 = vsel %vm2207_vm8, %v6811_v4, %v2898_v18  ;;  %v3003_v4 = vrot.slane %v6638_v16, %v5858_v13  ;;  %v3021_v18 = vrot.slane %v6721_v60, %v5858_v13  ;;  %v3026_v60 = vrot.slane %v6876_v52, %v5855_v11 }
 0x51f   :  { %v3039_v1 = vrot.slane %v6731_v9, %v5858_v13  ;;  %v3035_v52 = vrot.slane %v6734_v54, %v5855_v11  ;;  %v3053_v9 = vrot.slane %v6892_v63, %v5855_v11 }
 0x520   :  { %v6953_v10 = vpop.xlane.xlu1 %1957 }
 0x521   :  { %v6955_v26 = vpop.xlane.xlu0 %1954 }
 0x524   :  { %v2036_v24 = vpop.xlane.xlu1 %2035 }
 0x525   :  { %v3202_v25 = vrot.slane %v2036_v24, %v5858_v13  ;;  %v2033_v15 = vpop.xlane.xlu0 %2032  ;;  %v3017_v24 = vrot.slane %v6725_v19, %v5855_v11  ;;  %v3004_v19 = vsel %vm2136_vm4, %v3003_v4, %v2999_v14  ;;  %v3048_v4 = vrot.slane %v6878_v58, %v5858_v13 }
 0x526   :  { %v3198_v41 = vrot.slane %v2033_v15, %v5855_v11  ;;  %v2532_v58 = vrot.slane %v6926_v45, %v5858_v13 }
 0x528   :  { %v3203_v39 = vsel %vm2136_vm4, %v3202_v25, %v3198_v41  ;;  %v6966_v31 = vpop.xlane.xlu1 %2047  ;;  %v3013_v25 = vsel %vm2136_vm4, %v3012_v22, %v3008_v49  ;;  %v2713_v41 = vrot.slane %v6867_v57, %v5858_v13  ;;  %v3031_v49 = vsel %vm2136_vm4, %v3030_v34, %v3026_v60 }
 0x529   :  { %v3242_v0 = vsel %vm2205_vm7, %v3203_v39, %v6836_v5  ;;  %v6976_v27 = vpop.xlane.xlu0 %2044  ;;  %v3022_v5 = vsel %vm2136_vm4, %v3021_v18, %v3017_v24  ;;  %v3068_v22 = vsel %vm2201_vm5, %v3013_v25, %v3004_v19  ;;  %v3044_v57 = vrot.slane %v6880_v2, %v5855_v11 }
 0x52a   :  { %v6980_v16 = vsel %vm2207_vm8, %v6846_v28, %v3242_v0  ;;  %v2709_v28 = vrot.slane %v6872_v37, %v5855_v11  ;;  %v3069_v37 = vsel %vm2203_vm6, %v3022_v5, %v3068_v22  ;;  %v3057_v24 = vrot.slane %v6886_v29, %v5858_v13 }
 0x52b   :  { %v3070_v25 = vsel %vm2205_vm7, %v3031_v49, %v3069_v37  ;;  %v2528_v2 = vrot.slane %v6930_v51, %v5855_v11  ;;  %v3040_v60 = vsel %vm2136_vm4, %v3039_v1, %v3035_v52  ;;  %v3049_v29 = vsel %vm2136_vm4, %v3048_v4, %v3044_v57 }
 0x52c   :  { %v6987_v15 = vpop.xlane.xlu1 %2053  ;;  %v2714_v18 = vsel %vm2136_vm4, %v2713_v41, %v2709_v28  ;;  %v2541_v19 = vrot.slane %v6936_v59, %v5858_v13  ;;  %v2537_v5 = vrot.slane %v6938_v47, %v5855_v11  ;;  %v3071_v51 = vsel %vm2207_vm8, %v3040_v60, %v3070_v25 }
 0x52d   :  { %v6995_v39 = vpop.xlane.xlu0 %2050  ;;  %v2729_v63 = vsel %vm2211_vm10, %v2714_v18, %v6870_v33  ;;  %v3058_v28 = vsel %vm2136_vm4, %v3057_v24, %v3053_v9  ;;  %v3072_v33 = vsel %vm2209_vm9, %v3049_v29, %v3071_v51  ;;  %v2533_v49 = vsel %vm2136_vm4, %v2532_v58, %v2528_v2 }
 0x52e   :  { %v2876_v4 = vrot.slane %v6943_v56, %v5858_v13  ;;  %v2872_v57 = vrot.slane %v6947_v6, %v5855_v11  ;;  %v2885_v37 = vrot.slane %v6953_v10, %v5858_v13  ;;  %v3073_v18 = vsel %vm2211_vm10, %v3058_v28, %v3072_v33 }
 0x52f   :  { %v2542_v24 = vsel %vm2136_vm4, %v2541_v19, %v2537_v5  ;;  %v3220_v29 = vrot.slane %v6966_v31, %v5858_v13 }
 0x530   :  { %v1916_v14 = vpop.xlane.xlu1 %1915 }
 0x531   :  { %v2722_v54 = vrot.slane %v1916_v14, %v5858_v13  ;;  %v1913_v0 = vpop.xlane.xlu0 %1912  ;;  %v2881_v14 = vrot.slane %v6955_v26, %v5855_v11  ;;  %v2556_v26 = vsel %vm2209_vm9, %v2533_v49, %v6934_v3  ;;  %v3229_v3 = vrot.slane %v6987_v15, %v5858_v13 }
 0x532   :  { %v2718_v34 = vrot.slane %v1913_v0, %v5855_v11  ;;  %v2557_v2 = vsel %vm2211_vm10, %v2542_v24, %v2556_v26  ;;  %v3392_v15 = vrot.slane %v6910_v42, %v5858_v13 }
 0x533   :  { %v2886_v60 = vsel %vm2136_vm4, %v2885_v37, %v2881_v14 }
 0x534   :  { %v2723_v45 = vsel %vm2136_vm4, %v2722_v54, %v2718_v34  ;;  %v2012_v41 = vpop.xlane.xlu1 %2011  ;;  %v2877_v34 = vsel %vm2136_vm4, %v2876_v4, %v2872_v57 }
 0x535   :  { %v3066_v22 = vrot.slane %v2012_v41, %v5858_v13  ;;  %v2009_v1 = vpop.xlane.xlu0 %2008  ;;  %v2730_v52 = vsel %vm2213_vm11, %v2723_v45, %v2729_v63  ;;  %v3216_v63 = vrot.slane %v6976_v27, %v5855_v11  ;;  %v3225_v45 = vrot.slane %v6995_v39, %v5855_v11 }
 0x536   :  { %v3062_v59 = vrot.slane %v2009_v1, %v5855_v11  ;;  %v2805_v47 = vadd.f32 %v6808_v20, %v2730_v52  ;;  %v3388_v1 = vrot.slane %v6914_v61, %v5855_v11  ;;  %v3401_v39 = vrot.slane %v6919_v55, %v5858_v13 }
 0x537   :  { %v3397_v52 = vrot.slane %v6921_v44, %v5855_v11  ;;  %v2900_v33 = vsel %vm2209_vm9, %v2877_v34, %v6951_v40  ;;  %v3221_v42 = vsel %vm2136_vm4, %v3220_v29, %v3216_v63  ;;  %v3230_v61 = vsel %vm2136_vm4, %v3229_v3, %v3225_v45 }
 0x538   :  { %v3067_v9 = vsel %vm2136_vm4, %v3066_v22, %v3062_v59  ;;  %v1868_v54 = vpop.xlane.xlu1 %1867  ;;  %v7050_v20 = vsel %vm3503_vm12, -3.4028235e+38, %v2805_v47  ;;  %v2901_v49 = vsel %vm2211_vm10, %v2886_v60, %v2900_v33  ;;  %v3244_v14 = vsel %vm2209_vm9, %v3221_v42, %v6980_v16 }
 0x539   :  { %v2550_v56 = vrot.slane %v1868_v54, %v5858_v13  ;;  %v1865_v6 = vpop.xlane.xlu0 %1864  ;;  %v3526_v10 = vsel %vm3516_vm14, %v7050_v20, -inf  ;;  %v3074_v0 = vsel %vm2213_vm11, %v3067_v9, %v3073_v18  ;;  %v3393_v18 = vsel %vm2136_vm4, %v3392_v15, %v3388_v1 }
 0x53a   :  { %v2546_v25 = vrot.slane %v1865_v6, %v5855_v11  ;;  %3527 = vmax.xlane.f32.xlu1 %v3526_v10  ;;  %v3149_v58 = vadd.f32 %v6823_v53, %v3074_v0  ;;  %v3245_v24 = vsel %vm2211_vm10, %v3230_v61, %v3244_v14  ;;  %v3402_v6 = vsel %vm2136_vm4, %v3401_v39, %v3397_v52 }
 0x53c   :  { %v2551_v19 = vsel %vm2136_vm4, %v2550_v56, %v2546_v25  ;;  %v1964_v5 = vpop.xlane.xlu1 %1963  ;;  %v7072_v53 = vsel %vm3503_vm12, -3.4028235e+38, %v3149_v58  ;;  %v3416_v58 = vsel %vm2209_vm9, %v3393_v18, %v6917_v17 }
 0x53d   :  { %v2894_v41 = vrot.slane %v1964_v5, %v5858_v13  ;;  %v1961_v51 = vpop.xlane.xlu0 %1960  ;;  %v3532_v31 = vsel %vm3516_vm14, %v7072_v53, -inf  ;;  %v2558_v27 = vsel %vm2213_vm11, %v2551_v19, %v2557_v2  ;;  %v3417_v2 = vsel %vm2211_vm10, %v3402_v6, %v3416_v58 }
 0x53e   :  { %v2890_v28 = vrot.slane %v1961_v51, %v5855_v11  ;;  %3533 = vmax.xlane.f32.xlu1 %v3532_v31  ;;  %v2633_v22 = vadd.f32 %v6773_v30, %v2558_v27 }
 0x540   :  { %v2895_v59 = vsel %vm2136_vm4, %v2894_v41, %v2890_v28  ;;  %v2060_v47 = vpop.xlane.xlu1 %2059  ;;  %v3510_v30 = vsel %vm3502_vm13, -3.4028235e+38, %v2633_v22 }
 0x541   :  { %v3238_v55 = vrot.slane %v2060_v47, %v5858_v13  ;;  %v2057_v4 = vpop.xlane.xlu0 %2056  ;;  %v3523_v44 = vsel %vm3516_vm14, %v3510_v30, -inf  ;;  %v2902_v57 = vsel %vm2213_vm11, %v2895_v59, %v2901_v49 }
 0x542   :  { %v3234_v40 = vrot.slane %v2057_v4, %v5855_v11  ;;  %3524 = vmax.xlane.f32.xlu0 %v3523_v44  ;;  %v2977_v37 = vadd.f32 %v6788_v48, %v2902_v57 }
 0x544   :  { %v3239_v9 = vsel %vm2136_vm4, %v3238_v55, %v3234_v40  ;;  %v2108_v54 = vpop.xlane.xlu1 %2107  ;;  %v3512_v56 = vsel %vm3502_vm13, -3.4028235e+38, %v2977_v37 }
 0x545   :  { %v3410_v10 = vrot.slane %v2108_v54, %v5858_v13  ;;  %v2105_v0 = vpop.xlane.xlu0 %2104  ;;  %v3529_v48 = vsel %vm3516_vm14, %v3512_v56, -inf  ;;  %v3246_v26 = vsel %vm2213_vm11, %v3239_v9, %v3245_v24 }
 0x546   :  { %v3406_v16 = vrot.slane %v2105_v0, %v5855_v11  ;;  %3530 = vmax.xlane.f32.xlu0 %v3529_v48  ;;  %v3321_v25 = vadd.f32 %v6805_v32, %v3246_v26 }
 0x548   :  { %v3411_v34 = vsel %vm2136_vm4, %v3410_v10, %v3406_v16  ;;  %v3514_v13 = vsel %vm3502_vm13, -3.4028235e+38, %v3321_v25  ;;  %v3522_v19 = vpop.xlane.xlu1 %3521 }
 0x549   :  { %v3535_v60 = vsel %vm3516_vm14, %v3514_v13, -inf  ;;  %v3418_v29 = vsel %vm2213_vm11, %v3411_v34, %v3417_v2  ;;  %v3519_v17 = vpop.xlane.xlu0 %3518  ;;  %v3542_v5 = vsub.f32 %v6742_v8, %v3522_v19 }
 0x54a   :  { %3536 = vmax.xlane.f32.xlu0 %v3535_v60  ;;  %v3493_v11 = vadd.f32 %v6857_v21, %v3418_v29  ;;  %v3541_v21 = vsub.f32 %v6749_v38, %v3519_v17 }
 0x54b   :  { %v3551_v45 = vmul.f32 1.442695, %v3542_v5 }
 0x54c   :  { %v3515_v32 = vsel %vm3503_vm12, -3.4028235e+38, %v3493_v11  ;;  %v3549_v3 = vmul.f32 1.442695, %v3541_v21 }
 0x54d   :  { %v3538_v63 = vsel %vm3516_vm14, %v3515_v32, -inf }
 0x54e   :  { %3539 = vmax.xlane.f32.xlu1 %v3538_v63  ;;  %4869 = vpow2.f32 %v3549_v3 }
 0x54f   :  { %4871 = vpow2.f32 %v3551_v45 }
 0x558   :  { %v7138_v41 = vpop.eup %4869 }
 0x559   :  { %v3565_v51 = vsel %vm3516_vm14, %v7138_v41, 0.0  ;;  %v7142_v31 = vpop.eup %4871 }
 0x55a   :  { %v3568_v27 = vsel %vm3516_vm14, %v7142_v31, 0.0 }
 0x55f   :  { %4825 = vrot.lane.b32.xlu1 %v6406_v35, %s5375_s12 }
 0x560   :  { %4820 = vrot.lane.b32.xlu0 %v6410_v12, %s5375_s12 }
 0x563   :  { %4830 = vrot.lane.b32.xlu1 %v6410_v12, %s5374_s17 }
 0x567   :  { %4835 = vrot.lane.b32.xlu1 %v6406_v35, %s5374_s17 }
 0x57f   :  { %3566 = vadd.xlane.f32.xlu0 %v3565_v51 }
 0x58b   :  { %3569 = vadd.xlane.f32.xlu1 %v3568_v27 }
 0x5c7   :  { %v3528_v38 = vpop.xlane.xlu1 %3527 }
 0x5c8   :  { %v3544_v15 = vsub.f32 %v7050_v20, %v3528_v38 }
 0x5ca   :  { %v3555_v28 = vmul.f32 1.442695, %v3544_v15 }
 0x5cb   :  { %v3534_v22 = vpop.xlane.xlu1 %3533 }
 0x5cc   :  { %4873 = vpow2.f32 %v3555_v28  ;;  %v3546_v8 = vsub.f32 %v7072_v53, %v3534_v22 }
 0x5ce   :  { %v3559_v1 = vmul.f32 1.442695, %v3546_v8 }
 0x5cf   :  { %v3525_v39 = vpop.xlane.xlu0 %3524 }
 0x5d0   :  { %4875 = vpow2.f32 %v3559_v1  ;;  %v3543_v52 = vsub.f32 %v3510_v30, %v3525_v39 }
 0x5d2   :  { %v3553_v33 = vmul.f32 1.442695, %v3543_v52 }
 0x5d3   :  { %v3531_v49 = vpop.xlane.xlu0 %3530 }
 0x5d4   :  { %4877 = vpow2.f32 %v3553_v33  ;;  %v3545_v42 = vsub.f32 %v3512_v56, %v3531_v49 }
 0x5d6   :  { %v7148_v59 = vpop.eup %4873  ;;  %v3557_v47 = vmul.f32 1.442695, %v3545_v42 }
 0x5d7   :  { %v3537_v61 = vpop.xlane.xlu0 %3536  ;;  %v3574_v20 = vsel %vm3516_vm14, %v7148_v59, 0.0 }
 0x5d8   :  { %4879 = vpow2.f32 %v3557_v47  ;;  %v3547_v55 = vsub.f32 %v3514_v13, %v3537_v61  ;;  %3575 = vadd.xlane.f32.xlu1 %v3574_v20 }
 0x5da   :  { %v7152_v4 = vpop.eup %4875  ;;  %v3561_v53 = vmul.f32 1.442695, %v3547_v55 }
 0x5db   :  { %v3540_v44 = vpop.xlane.xlu1 %3539  ;;  %v3580_v30 = vsel %vm3516_vm14, %v7152_v4, 0.0  ;;  %v4821_v25 = vpop.permute.xlu0 %4820 }
 0x5dc   :  { %4881 = vpow2.f32 %v3561_v53  ;;  %v3548_v57 = vsub.f32 %v3515_v32, %v3540_v44  ;;  %3581 = vadd.xlane.f32.xlu1 %v3580_v30 }
 0x5de   :  { %v4878_v40 = vpop.eup %4877  ;;  %v3563_v37 = vmul.f32 1.442695, %v3548_v57 }
 0x5df   :  { %v7156_v14 = vpop.permute.xlu1 %4825  ;;  %v3571_v18 = vsel %vm3516_vm14, %v4878_v40, 0.0 }
 0x5e0   :  { %4883 = vpow2.f32 %v3563_v37  ;;  %3572 = vadd.xlane.f32.xlu0 %v3571_v18  ;;  %v4828_v5 = vunpack.i.h.bf16 %v7156_v14  ;;  %v4827_v45 = vunpack.i.l.bf16 %v7156_v14 }
 0x5e2   :  { %v7159_v24 = vpop.eup %4879  ;;  %v4733_v8 = vpack.c.bf16 %v4828_v5, %v4827_v45 }
 0x5e3   :  { %v4831_v9 = vpop.permute.xlu1 %4830  ;;  %v3577_v54 = vsel %vm3516_vm14, %v7159_v24, 0.0 }
 0x5e4   :  { %v4833_v56 = vunpack.i.h.bf16 %v4831_v9  ;;  %v4832_v6 = vunpack.i.l.bf16 %v4831_v9  ;;  %3578 = vadd.xlane.f32.xlu0 %v3577_v54 }
 0x5e6   :  { %v7163_v10 = vpop.eup %4881  ;;  %v4736_v0 = vpack.c.bf16 %v4833_v56, %v4832_v6  ;;  %v4228_v56 = vld [vmem:[#allocation26] sm:$0xff]  ;;  %v4229_v6 = vld [vmem:[#allocation26 + $0x8] sm:$0xff] }
 0x5e7   :  { %v3583_v48 = vsel %vm3516_vm14, %v7163_v10, 0.0  ;;  %v4836_v2 = vpop.permute.xlu1 %4835 }
 0x5e8   :  { %4737 = vmatpush3.bf16.msra.mxu0 %v4736_v0  ;;  %3584 = vadd.xlane.f32.xlu0 %v3583_v48  ;;  %v4838_v38 = vunpack.i.h.bf16 %v4836_v2  ;;  %v4837_v15 = vunpack.i.l.bf16 %v4836_v2  ;;  %v4230_v0 = vld [vmem:[#allocation26 + $0x10] sm:$0xff]  ;;  %v4231_v48 = vld [vmem:[#allocation26 + $0x18] sm:$0xff] }
 0x5e9   :  { %4741 = vmatprep.subr.bf16.mxu0 %v5371_v36 }
 0x5ea   :  { %v7168_v26 = vpop.eup %4883  ;;  %v4739_v47 = vpack.c.bf16 %v4838_v38, %v4837_v15 }
 0x5eb   :  { %v3586_v16 = vsel %vm3516_vm14, %v7168_v26, 0.0 }
 0x5ec   :  { %3587 = vadd.xlane.f32.xlu1 %v3586_v16  ;;  %v4751_v16 = vpack.c.bf16 %v4231_v48, %v4230_v0 }
 0x5fd   :  { %4845 = vrot.lane.b32.xlu1 %v6406_v35, %s5376_s15  ;;  %v4823_v35 = vunpack.i.h.bf16 %v4821_v25 }
 0x5fe   :  { %4840 = vrot.lane.b32.xlu0 %v6410_v12, %s5376_s15  ;;  %v4822_v12 = vunpack.i.l.bf16 %v4821_v25 }
 0x600   :  { %v4730_v63 = vpack.c.bf16 %v4823_v35, %v4822_v12 }
 0x60c   :  { %v3567_v58 = vpop.xlane.xlu0 %3566 }
 0x60d   :  { %4885 = vrcp.f32 %v3567_v58 }
 0x617   :  { %v4886_v34 = vpop.eup %4885 }
 0x618   :  { %v3570_v13 = vpop.xlane.xlu1 %3569  ;;  %v3597_v60 = vmul.f32 %v4886_v34, %v7138_v41 }
 0x619   :  { %4887 = vrcp.f32 %v3570_v13 }
 0x61a   :  { %v3605_v29 = vsel %vm3502_vm13, 0.0, %v3597_v60 }
 0x61b   :  { %4605 = vmatmul.mubr.msk.f32.vlgmr.msra.gmra.mrb[12].mxu1 %vm3516_vm14, %v3605_v29 }
 0x61c   :  { %4728 = vmatpush3.bf16.msra.mxu1 %v4727_v43  ;;  %4611 = vmatprep.mubr.msk.f32.mxu1 %vm5372_vm1, %v5373_v7 }
 0x61d   :  { %4729 = vmatprep.subr.bf16.mxu1 %v5371_v36 }
 0x623   :  { %v4888_v11 = vpop.eup %4887 }
 0x624   :  { %v3598_v32 = vmul.f32 %v4888_v11, %v7142_v31 }
 0x626   :  { %v3606_v17 = vsel %vm3503_vm12, 0.0, %v3598_v32 }
 0x627   :  { %4612 = vmatmul.mubr.msk.f32.vlgmr.msra.gmra.mrb[14].mxu1 %vm3516_vm14, %v3606_v17 }
 0x628   :  { %4731 = vmatpush3.bf16.msra.mxu1 %v4730_v63  ;;  %4618 = vmatprep.mubr.msk.f32.mxu1 %vm5372_vm1, %v5373_v7 }
 0x629   :  { %4732 = vmatprep.subr.bf16.mxu1 %v5371_v36 }
 0x665   :  { %v3576_v46 = vpop.xlane.xlu1 %3575 }
 0x666   :  { %4889 = vrcp.f32 %v3576_v46 }
 0x669   :  { %v3582_v43 = vpop.xlane.xlu1 %3581 }
 0x66d   :  { %v3573_v62 = vpop.xlane.xlu0 %3572 }
 0x66e   :  { %4891 = vrcp.f32 %v3573_v62 }
 0x66f   :  { %4893 = vrcp.f32 %v3582_v43 }
 0x670   :  { %v4890_v19 = vpop.eup %4889 }
 0x671   :  { %v3579_v21 = vpop.xlane.xlu0 %3578  ;;  %v3600_v28 = vmul.f32 %v4890_v19, %v7148_v59 }
 0x672   :  { %4895 = vrcp.f32 %v3579_v21 }
 0x673   :  { %v3608_v59 = vsel %vm3503_vm12, 0.0, %v3600_v28 }
 0x675   :  { %v3585_v3 = vpop.xlane.xlu0 %3584 }
 0x676   :  { %4897 = vrcp.f32 %v3585_v3 }
 0x678   :  { %v4892_v41 = vpop.eup %4891 }
 0x679   :  { %v3588_v51 = vpop.xlane.xlu1 %3587  ;;  %v4841_v31 = vpop.permute.xlu0 %4840  ;;  %v3599_v27 = vmul.f32 %v4892_v41, %v4878_v40  ;;  %v4421_v41 = vld [vmem:[#allocation28] ss:$0 sm:$0xff] }
 0x67a   :  { %4899 = vrcp.f32 %v3588_v51  ;;  %v4894_v22 = vpop.eup %4893  ;;  %v4843_v1 = vunpack.i.h.bf16 %v4841_v31  ;;  %v4842_v39 = vunpack.i.l.bf16 %v4841_v31  ;;  %v4424_v31 = vld [vmem:[#allocation29] ss:$0 sm:$0xff] }
 0x67b   :  { %v3607_v52 = vsel %vm3502_vm13, 0.0, %v3599_v27  ;;  %v3602_v61 = vmul.f32 %v4894_v22, %v7152_v4 }
 0x67c   :  { %v4896_v33 = vpop.eup %4895  ;;  %4619 = vmatmul.mubr.msk.f32.vlgmr.msra.gmra.mrb[16].mxu1 %vm3516_vm14, %v3607_v52  ;;  %v4742_v20 = vpack.c.bf16 %v4843_v1, %v4842_v39 }
 0x67d   :  { %4734 = vmatpush3.bf16.msra.mxu1 %v4733_v8  ;;  %v4846_v49 = vpop.permute.xlu1 %4845  ;;  %4625 = vmatprep.mubr.msk.f32.mxu1 %vm5372_vm1, %v5373_v7  ;;  %v3601_v42 = vmul.f32 %v4896_v33, %v7159_v24  ;;  %v3610_v40 = vsel %vm3503_vm12, 0.0, %v3602_v61 }
 0x67e   :  { %4738 = vmatprep.subr.bf16.mxu1 %v5371_v36  ;;  %v4848_v55 = vunpack.i.h.bf16 %v4846_v49  ;;  %v4847_v53 = vunpack.i.l.bf16 %v4846_v49 }
 0x67f   :  { %v3609_v44 = vsel %vm3502_vm13, 0.0, %v3601_v42 }
 0x680   :  { %v4898_v30 = vpop.eup %4897  ;;  %4626 = vmatmul.mubr.msk.f32.vlgmr.msra.gmra.mrb[18].mxu1 %vm3516_vm14, %v3608_v59  ;;  %4633 = vmatmul.mubr.msk.f32.vlgmr.msra.gmra.mrb[14].mxu0 %vm3516_vm14, %v3609_v44  ;;  %v4745_v4 = vpack.c.bf16 %v4848_v55, %v4847_v53 }
 0x681   :  { %4740 = vmatpush3.bf16.msra.mxu1 %v4739_v47  ;;  %4743 = vmatpush3.bf16.msra.mxu0 %v4742_v20  ;;  %v3603_v57 = vmul.f32 %v4898_v30, %v7163_v10  ;;  %v4747_v10 = vpack.c.bf16 %v4229_v6, %v4228_v56 }
 0x682   :  { %4639 = vmatprep.mubr.msk.f32.mxu1 %vm5372_vm1, %v5373_v7  ;;  %4646 = vmatprep.mubr.msk.f32.mxu0 %vm5372_vm1, %v5373_v7 }
 0x683   :  { %4744 = vmatprep.subr.bf16.mxu1 %v5371_v36  ;;  %v3611_v37 = vsel %vm3502_vm13, 0.0, %v3603_v57  ;;  %4748 = vmatprep.subr.bf16.mxu0 %v4747_v10 }
 0x684   :  { %v4900_v14 = vpop.eup %4899  ;;  %4640 = vmatmul.mubr.msk.f32.vlgmr.msra.gmra.mrb[20].mxu1 %vm3516_vm14, %v3610_v40  ;;  %4647 = vmatmul.mubr.msk.f32.vlgmr.msra.gmra.mrb[16].mxu0 %vm3516_vm14, %v3611_v37 }
 0x685   :  { %4746 = vmatpush3.bf16.msra.mxu1 %v4745_v4  ;;  %4653 = vmatprep.mubr.msk.f32.mxu1 %vm5372_vm1, %v5373_v7  ;;  %v3604_v18 = vmul.f32 %v4900_v14, %v7168_v26  ;;  %vm4343_vm1 = vcmask 523264  }
 0x686   :  { %4750 = vmatpush3.bf16.msra.mxu0 %v4747_v10 }
 0x687   :  { %v3612_v36 = vsel %vm3503_vm12, 0.0, %v3604_v18  ;;  %4752 = vmatprep.subr.bf16.mxu0 %v4751_v16 }
 0x688   :  { %4654 = vmatmul.mubr.msk.f32.vlgmr.msra.gmra.mrb[22].mxu1 %vm3516_vm14, %v3612_v36 }
 0x68a   :  { %4754 = vmatpush3.bf16.msra.mxu0 %v4751_v16 }
 0x6ee   :  { %v3682_v24 = vpop.f32.mrb[12].mxu1 }
 0x6ef   :  { %v4606_v9 = vpop.f32.mrb[13].mxu1 }
 0x6fa   :  { %v3755_v50 = vpop.f32.mrb[14].mxu1 }
 0x6fb   :  { %v4613_v54 = vpop.f32.mrb[15].mxu1 }
 0x74f   :  { %v3828_v7 = vpop.f32.mrb[16].mxu1 }
 0x750   :  { %4199 = vrot.lane.b32.xlu0 %v3828_v7, %s7282_s21  ;;  %v4620_v23 = vpop.f32.mrb[17].mxu1 }
 0x753   :  { %v3901_v26 = vpop.f32.mrb[18].mxu1  ;;  %v3974_v25 = vpop.f32.mrb[14].mxu0 }
 0x754   :  { %v4634_v58 = vpop.f32.mrb[15].mxu0  ;;  %4207 = vrot.lane.b32.xlu0 %v3974_v25, %s5378_s7  ;;  %4201 = vrot.lane.b32.xlu1 %v3901_v26, %s7282_s21  ;;  %v4627_v2 = vpop.f32.mrb[19].mxu1  ;;  %s5380_s21 = smov 64  }
 0x757   :  { %v4047_v34 = vpop.f32.mrb[20].mxu1  ;;  %v4120_v13 = vpop.f32.mrb[16].mxu0 }
 0x758   :  { %v4648_v60 = vpop.f32.mrb[17].mxu0  ;;  %4215 = vrot.lane.b32.xlu0 %v4120_v13, %s5379_s20  ;;  %4209 = vrot.lane.b32.xlu1 %v4047_v34, %s5378_s7  ;;  %v4641_v29 = vpop.f32.mrb[21].mxu1 }
 0x75b   :  { %v4193_v35 = vpop.f32.mrb[22].mxu1 }
 0x75c   :  { %4217 = vrot.lane.b32.xlu1 %v4193_v35, %s5379_s20  ;;  %v4655_v12 = vpop.f32.mrb[23].mxu1 }
 0x7c2   :  { %v4200_v11 = vpop.permute.xlu0 %4199 }
 0x7c3   :  { %v4221_v17 = vsel %vm1724_vm2, %v3682_v24, %v4200_v11 }
 0x7c6   :  { %v4208_v32 = vpop.permute.xlu0 %4207  ;;  %v4202_v63 = vpop.permute.xlu1 %4201 }
 0x7c7   :  { %v4223_v46 = vsel %vm3516_vm14, %v4221_v17, %v4208_v32  ;;  %v4222_v3 = vsel %vm1724_vm2, %v3755_v50, %v4202_v63  ;;  %vm4345_vm2 = vcmask 785408  }
 0x7ca   :  { %v4216_v62 = vpop.permute.xlu0 %4215  ;;  %v4210_v43 = vpop.permute.xlu1 %4209 }
 0x7cb   :  { %v4226_v21 = vsel %vm4225_vm15, %v4223_v46, %v4216_v62  ;;  %v4224_v19 = vsel %vm3516_vm14, %v4222_v3, %v4210_v43 }
 0x7cc   :  { %4664 = vmatprep.mubr.msk.f32.mxu0 %vm298_vm0, %v4226_v21 }
 0x7ce   :  { %v4218_v5 = vpop.permute.xlu1 %4217 }
 0x7cf   :  { %v4227_v45 = vsel %vm4225_vm15, %v4224_v19, %v4218_v5 }
 0x7d0   :  { %4665 = vmatmul.mubr.msk.f32.vlgmr.msra.gmra.mrb[18].mxu0 %vm298_vm0, %v4227_v45 }
 0x8a3   :  { %v4666_v51 = vpop.f32.mrb[18].mxu0 }
 0x8a4   :  { %v4317_v27 = vadd.f32 %v4666_v51, %v4421_v41  ;;  %v4311_v38 = vpop.f32.mrb[19].mxu0 }
 0x8a5   :  { %v4312_v15 = vadd.f32 %v4421_v41, %v4311_v38 }
 0x8a6   :  { %v4328_v28 = vmul.f32 %v4424_v31, %v4317_v27 }
 0x8a7   :  { %v4327_v22 = vmul.f32 %v4424_v31, %v4312_v15 }
 0x8a8   :  { %4335 = vrot.lane.b32.xlu1 %v4328_v28, %s5380_s21  ;;  %v4338_v1 = vrot.slane %v4328_v28, 4 }
 0x8a9   :  { %v4330_v8 = vrot.slane %v4327_v22, 4 }
 0x8ab   :  { %4331 = vrot.lane.b32.xlu0 %v4330_v8, %s5353_s28 }
 0x8af   :  { %4339 = vrot.lane.b32.xlu0 %v4338_v1, %s5381_s2 }
 0x91a   :  { %v4336_v33 = vpop.permute.xlu1 %4335 }
 0x91d   :  { %v4332_v39 = vpop.permute.xlu0 %4331 }
 0x91e   :  { %v4342_v52 = vsel %vm298_vm0, %v4327_v22, %v4332_v39 }
 0x91f   :  { %v4344_v49 = vsel %vm4343_vm1, %v4342_v52, %v4336_v33 }
 0x921   :  { %v4340_v42 = vpop.permute.xlu0 %4339 }
 0x922   :  { %v4346_v47 = vsel %vm4345_vm2, %v4344_v49, %v4340_v42 }
 0x923   :  { %4347 = vst [vmem:[#allocation31] sm:$0xf] %v4346_v47 }
 0x924   :  { %5316 = shalt.err (!%p5313_p8)
}
 0x925   :  { %s7288_s6 = sld [smem:[#allocation46_spill]] }
 0x92b   :  { %s5317_s9 = scalar_lea.hbm %s7288_s6, 64 }
 0x92c   :  { %p5318_p9 = scmp.ne.s32.totalorder %s7288_s6, %s5317_s9  ;;  %p5321_p10 = scmp.lt.u32.totalorder %s5317_s9, %s7288_s6 }
 0x92e   :  { %p5323_p11 = pnand %p5321_p10, %p5318_p9 }
 0x930   :  { %5326 = shalt.err (!%p5323_p11)
}
 0x931   :  { %4357 = dma.vmem_to_hbm [thread:$0]  %s4355_s23, 64, %s7288_s6, [#allocation4]  }
 0x932   :  { %5347 = dma.done.wait [#allocation4], 64  }
 0x933   :  { %5348 = vsyncadd [#allocation4], 4294967232 }
 0x934   :  { %4361 = vsyncpa [#allocation3], 1 }
 0x935   :  { %4362 = vsyncpa [#allocation6], 1 }
 0x936   :  { %4363 = vsyncpa [#allocation9], 1 }
 0x937   :  { %4364 = vsyncpa [#allocation12], 1 }
 0x938   :  { %4365 = vsyncpa [#allocation15], 1 }
 0x939   :  { %4366 = vsyncpa [#allocation18], 1 }
 0x93a   :  { %4367 = vsyncpa [#allocation21], 1 }
 0x93b   :  { %4368 = vsyncpa [#allocation24], 1 }
 0x93c   :  { %4369 = vsyncpa [#allocation27], 1 }
 0x93d   :  { %4370 = vsyncpa [#allocation30], 1 }
 0x93e   :  { %4371 = vsyncpa [#allocation4], 1 }

</bundles_post_ra>
